<compile_context>
chip_gen: v5e
topology: v5e:2x2
jax: 0.10.0
libtpu: 0.0.40
codegen_flags: <defaults>
</compile_context>

<pallas_src>
import jax
import jax.numpy as jnp
from jax.experimental import pallas as pl
from jax.experimental.pallas import tpu as pltpu


def simple_detector_kernel(x_ref, w_ref, b_ref, o_ref):
    # x_ref: (TILE_N, HW, C) bf16 (or f32 on the channels-last fast path)
    # w_ref: (C, F) bf16, already pre-scaled by 1/HW
    # b_ref: (1, F)  f32
    # o_ref: (TILE_N, F) f32
    #
    # AdaptiveAvgPool2d(1): spatial reduction over the sublane axis; the 1/HW of
    # the mean is folded into the pre-scaled weight, so a plain sum suffices.
    pooled = jnp.sum(x_ref[...], axis=1).astype(jnp.bfloat16)        # (TILE_N, C)
    # Linear(2048 -> F): canonical (M,K)x(K,N) bf16 MXU matmul, f32 accumulation.
    y = jnp.dot(pooled, w_ref[...], preferred_element_type=jnp.float32)
    y = y + b_ref[...]                                                # bias (f32)
    o_ref[...] = jnp.maximum(y, 0.0).astype(o_ref.dtype)             # ReLU


def simple_detector(img_feats, weight, bias, *, channels_last=False, tile_n=None):
    """SimpleDetector forward.

    img_feats: (N, C, H, W) when channels_last=False (PyTorch NCHW, as in the
               module), or (N, H, W, C) when channels_last=True (preferred: no
               layout pass at all).
    weight:    (F, C)  (torch nn.Linear layout);  bias: (F,).
    Returns (N, F) float32.
    """
    if channels_last:
        N, H, W, C = img_feats.shape
    else:
        N, C, H, W = img_feats.shape
    F = weight.shape[0]
    HW = H * W

    # ---- one-time operand prep (cheap / fused by XLA) -----------------------
    if channels_last:
        # No transpose needed; stream in the producer's dtype (an extra cast
        # pass would only add HBM traffic -- the kernel casts after pooling).
        x = img_feats.reshape(N, HW, C)
    else:
        # Single fused pass: read f32 NCHW once, write bf16 channels-last once.
        x = jnp.transpose(img_feats, (0, 2, 3, 1)).reshape(N, HW, C)
        x = x.astype(jnp.bfloat16)

    # Weight: (F, C) -> (C, F), fold in 1/HW (mean), keep bf16 for the MXU.
    w_t = (jnp.transpose(weight).astype(jnp.float32) * (1.0 / HW)).astype(jnp.bfloat16)
    b2 = bias.reshape(1, F).astype(jnp.float32)

    # ---- tiling / VMEM budget ------------------------------------------------
    x_itemsize = jnp.dtype(x.dtype).itemsize
    per_sample_bytes = HW * C * x_itemsize
    w_bytes = C * F * 2
    b_bytes = F * 4

    try:
        vmem_phys = int(pltpu.get_tpu_info().vmem_capacity_bytes)
    except Exception:
        vmem_phys = 64 << 20                      # conservative (v7x-sized)
    vmem_cap = int(vmem_phys * 0.70)              # ~45 MiB on v7x, ~90 MiB on v5e/v6e

    if tile_n is None:
        # MXU M-occupancy wants 128 (v5e) / 256 (v6e, v7x) rows ...
        tile_n = 256 if N >= 512 else 128
        # ... but megacore sharding + pipelining want >= 2 grid steps.
        if N >= 16:
            tile_n = min(tile_n, max(8, (((N + 1) // 2) // 8) * 8))
        # Fit 2x (double-buffered) x + output tiles plus the resident weight/bias
        # under the VMEM cap, leaving headroom for compiler-internal scratch.
        budget = vmem_cap - 2 * (w_bytes + b_bytes) - (4 << 20)
        per_row = 2 * per_sample_bytes + 2 * F * 4
        tile_n = min(tile_n, max(8, (budget // per_row // 8) * 8))
    tile_n = max(1, min(int(tile_n), N))

    grid = (pl.cdiv(N, tile_n),)

    vmem_limit = (2 * (tile_n * per_sample_bytes + tile_n * F * 4)
                  + 2 * (w_bytes + b_bytes) + (2 << 20))
    vmem_limit = int(min(max(vmem_limit, 16 << 20), vmem_cap))

    return pl.pallas_call(
        simple_detector_kernel,
        out_shape=jax.ShapeDtypeStruct((N, F), jnp.float32),
        grid=grid,
        in_specs=[
            pl.BlockSpec((tile_n, HW, C), lambda i: (i, 0, 0)),  # x: streamed per step
            pl.BlockSpec((C, F), lambda i: (0, 0)),              # weight: fetched once
            pl.BlockSpec((1, F), lambda i: (0, 0)),              # bias: fetched once
        ],
        out_specs=pl.BlockSpec((tile_n, F), lambda i: (i, 0)),
        compiler_params=pltpu.CompilerParams(
            dimension_semantics=("parallel",),   # batch tiles -> both TCs on v7x
            vmem_limit_bytes=vmem_limit,
        ),
    )(x, w_t, b2)


if __name__ == "__main__":
    # Shapes implied by the module: Linear(2048, final_dim) => C must be 2048.
    N, C, H, W = 16, 2048, 4, 4
    final_dim = 256  # SimpleDetector(final_dim=256) -- constructor parameter

    key = jax.random.PRNGKey(0)
    k_x, k_w, k_b = jax.random.split(key, 3)

    img_feats = jax.random.normal(k_x, (N, C, H, W), dtype=jnp.float32)
    # Deterministic Linear params (PyTorch-style uniform(-1/sqrt(C), 1/sqrt(C))).
    bound = 1.0 / jnp.sqrt(jnp.float32(C))
    weight = jax.random.uniform(k_w, (final_dim, C), jnp.float32, -bound, bound)
    bias = jax.random.uniform(k_b, (final_dim,), jnp.float32, -bound, bound)

    # Default tile heuristic: N=16 -> tile_n=8 -> grid=(2,), exercising the batch
    # grid (weight/bias reused across both steps, both TCs busy on v7x).
    out = simple_detector(img_feats, weight, bias)
    out = jax.block_until_ready(out)

    # Pure-JAX f32 reference (kernel streams bf16 -> ~1e-2-level tolerance).
    pooled_ref = jnp.mean(img_feats.reshape(N, C, H * W), axis=2)
    ref = jnp.maximum(pooled_ref @ weight.T + bias, 0.0)
    assert out.shape == (N, final_dim)
    assert jnp.allclose(out, ref, atol=2e-2, rtol=2e-2)

    print("KERNEL_OK")
</pallas_src>

<mosaic_0001>
module attributes {stable_mosaic.version = 11 : i64} {
  func.func @simple_detector_kernel(%arg0: i32, %arg1: memref<8x16x2048xbf16, #tpu.memory_space<vmem>>, %arg2: memref<2048x256xbf16, #tpu.memory_space<vmem>>, %arg3: memref<1x256xf32, #tpu.memory_space<vmem>>, %arg4: memref<8x256xf32, #tpu.memory_space<vmem>>) attributes {dimension_semantics = [#tpu.dimension_semantics<parallel>], iteration_bounds = array<i64: 2>, scalar_prefetch = 0 : i64, scratch_operands = 0 : i64, tpu.core_type = #tpu.core_type<tc>, window_params = [{transform_indices = @transform_0, window_bounds = array<i64: 8, 16, 2048>}, {pipeline_mode = #tpu.pipeline_mode<synchronous>, transform_indices = @transform_1, window_bounds = array<i64: 2048, 256>}, {pipeline_mode = #tpu.pipeline_mode<synchronous>, transform_indices = @transform_2, window_bounds = array<i64: 1, 256>}, {transform_indices = @transform_3, window_bounds = array<i64: 8, 256>}]} {
    %c0 = arith.constant 0 : index
    %c0_0 = arith.constant 0 : index
    %c0_1 = arith.constant 0 : index
    %0 = vector.load %arg1[%c0, %c0_0, %c0_1] : memref<8x16x2048xbf16, #tpu.memory_space<vmem>>, vector<8x16x2048xbf16>
    %1 = arith.extf %0 : vector<8x16x2048xbf16> to vector<8x16x2048xf32>
    %cst = arith.constant dense<0.000000e+00> : vector<8x2048xf32>
    %2 = vector.multi_reduction <add>, %1, %cst [1] : vector<8x16x2048xf32> to vector<8x2048xf32>
    %3 = arith.truncf %2 : vector<8x2048xf32> to vector<8x2048xbf16>
    %c0_2 = arith.constant 0 : index
    %c0_3 = arith.constant 0 : index
    %4 = vector.load %arg2[%c0_2, %c0_3] : memref<2048x256xbf16, #tpu.memory_space<vmem>>, vector<2048x256xbf16>
    %cst_4 = arith.constant dense<0.000000e+00> : vector<8x256xf32>
    %5 = tpu.matmul %3, %4, %cst_4 {dimension_numbers = #tpu.dot_dimension_numbers<[1], [0], [0], [1], [0, 0, 1, 1], [], []>} : vector<8x2048xbf16>, vector<2048x256xbf16>, vector<8x256xf32> -> vector<8x256xf32>
    %c0_5 = arith.constant 0 : index
    %c0_6 = arith.constant 0 : index
    %6 = vector.load %arg3[%c0_5, %c0_6] : memref<1x256xf32, #tpu.memory_space<vmem>>, vector<1x256xf32>
    %7 = vector.broadcast %6 : vector<1x256xf32> to vector<8x256xf32>
    %8 = arith.addf %5, %7 : vector<8x256xf32>
    %cst_7 = arith.constant 0.000000e+00 : f32
    %9 = vector.broadcast %cst_7 : f32 to vector<8x256xf32>
    %10 = arith.maximumf %8, %9 : vector<8x256xf32>
    %c0_8 = arith.constant 0 : index
    %c0_9 = arith.constant 0 : index
    %11 = vector.load %arg4[%c0_8, %c0_9] : memref<8x256xf32, #tpu.memory_space<vmem>>, vector<8x256xf32>
    tpu.vector_store %arg4[%c0_8, %c0_9], %10 {strides = array<i32>} : memref<8x256xf32, #tpu.memory_space<vmem>>, vector<8x256xf32>,
    return
  }
  func.func @transform_0(%arg0: i32) -> (i32, i32, i32) {
    %c0_i32 = arith.constant 0 : i32
    %c0_i32_0 = arith.constant 0 : i32
    %c0_i32_1 = arith.constant 0 : i32
    return %arg0, %c0_i32, %c0_i32_0 : i32, i32, i32
  }
  func.func @transform_1(%arg0: i32) -> (i32, i32) {
    %c0_i32 = arith.constant 0 : i32
    %c0_i32_0 = arith.constant 0 : i32
    %c0_i32_1 = arith.constant 0 : i32
    return %c0_i32, %c0_i32_0 : i32, i32
  }
  func.func @transform_2(%arg0: i32) -> (i32, i32) {
    %c0_i32 = arith.constant 0 : i32
    %c0_i32_0 = arith.constant 0 : i32
    %c0_i32_1 = arith.constant 0 : i32
    return %c0_i32, %c0_i32_0 : i32, i32
  }
  func.func @transform_3(%arg0: i32) -> (i32, i32) {
    %c0_i32 = arith.constant 0 : i32
    %c0_i32_0 = arith.constant 0 : i32
    return %arg0, %c0_i32 : i32, i32
  }
}

</mosaic_0001>

<bundles_post_ra>
// kernel: tpu_custom_call.1
= control target key start
LH: loop header
LB: loop body
LE: loop exit
PB: predicated region body
PF: predicated region fallthrough
CT: control target
= control target key end

     0   :  { %8 = vsyncpa [#allocation3], 0  ;;  %s7278_s0 = inlined_call_operand.hbm [shape: bf16[16,16,2048], index: 0, kind: input, shape index: {}]   ;;  %s7279_s1 = inlined_call_operand.hbm [shape: bf16[2048,256], index: 1, kind: input, shape index: {}]   ;;  %s7280_s2 = inlined_call_operand.hbm [shape: f32[1,256], index: 2, kind: input, shape index: {}]   ;;  %s7281_s3 = inlined_call_operand.hbm [shape: f32[16,256], index: 3, kind: output, shape index: {}]  }
   0x1   :  { %10 = vsyncpa [#allocation3 + $0x1], 0 }
   0x2   :  { %11 = vsyncpa [#allocation6], 0 }
   0x3   :  { %12 = vsyncpa [#allocation4], 0 }
   0x4   :  { %14 = vsyncpa [#allocation4 + $0x1], 0  ;;  %s5668_s12 = smov 0   ;;  %s5670_s13 = smov 0  }
   0x5   :  { %s5672_s14 = smov 0   ;;  %s5674_s15 = smov 0  }
   0x6 LB: > { %s5689_s16 = sadd.s32 4294967295, %s5640_s15   ;;  %s4107_s17 = sadd.s32 4294967294, %s5640_s15   ;;  %s5640_s15 = sphi %s5674_s15, %s7453_s15   ;;  %s5636_s14 = sphi %s5672_s14, %s7452_s14   ;;  %s5632_s13 = sphi %s5670_s13, %s7451_s13   ;;  %s5628_s12 = sphi %s5668_s12, %s7450_s12  }
   0x7   : > { %p40_p0 = scmp.ne.s32.totalorder %s5632_s13, %s5628_s12  ;;  %p41_p1 = scmp.eq.s32.totalorder %s5689_s16, 0 }
   0x8   : > { %p106_p2 = scmp.eq.s32.totalorder %s5689_s16, 1  ;;  %p112_p3 = scmp.eq.s32.totalorder %s4107_s17, 1 }
   0x9   : > { %p5698_p4 = por %p41_p1, %p40_p0  ;;  %p4108_p5 = scmp.ge.s32.totalorder %s5640_s15, 1 }
   0xa   : > { %p5703_p6 = por %p112_p3, %p40_p0  ;;  %p119_p7 = scmp.lt.s32.totalorder %s5640_s15, 3 }
   0xb   : > { %s130_s22 = sshll.u32 %s7279_s1, 4  ;;  %s5642_s24 = smov [#allocation5]   ;;  %s131_s22 = int_to_ptr.hbm [resolvable:$true] %s130_s22 }
   0xc   : > { %p5711_p8 = pnand %p4108_p5, %p119_p7  ;;  %s132_s25 = sshll.u32 %s5642_s24, 4  ;;  %s133_s25 = int_to_ptr.vmem [resolvable:$true] %s132_s25 }
   0xd   : > { %s145_s28 = sshll.u32 %s7280_s2, 4  ;;  %s5643_s29 = smov 128   ;;  %s146_s28 = int_to_ptr.hbm [resolvable:$true] %s145_s28 }
   0xe   : > { %p5421_p9 = pneg %p5711_p8  ;;  %s5644_s30 = smov 8  }
   0xf   : > { %s5645_s4 = smov [#allocation7]   ;;  %s5724_s6 = sadd.s32 1, %s5640_s15  }
  0x10   : > { %p5422_p10 = pnand %p5421_p9, %p41_p1  ;;  %s147_s5 = sshll.u32 %s5645_s4, 4  ;;  %s148_s5 = int_to_ptr.vmem [resolvable:$true] %s147_s5 }
  0x11   : > { %s27_s7 = sadd.s32 1, %s5636_s14  ;;  %s24_s8 = ssub.s32 %s5640_s15, %s5724_s6 }
  0x12   : > { %5424 = dma.hbm_to_vmem [thread:$0]  (!%p5422_p10), %s131_s22, 32768, %s133_s25, [#allocation6], %s5643_s29, %s5643_s29, %s5644_s30  }
  0x13   : > { %5427 = dma.hbm_to_vmem [thread:$0]  (!%p5422_p10), %s146_s28, 32, %s148_s5, [#allocation6]  }
  0x14   : > { %p34_p12 = scmp.ne.s32.totalorder %s5636_s14, %s5632_s13  ;;  %p25_p13 = scmp.eq.s32.totalorder %s24_s8, 0 }
  0x15   : > { %p35_p0 = scmp.eq.s32.totalorder %s5640_s15, 0  ;;  %p5438_p5 = scmp.lt.s32.totalorder %s5640_s15, 2 }
  0x16   : > { %p5734_p3 = por %p106_p2, %p34_p12  ;;  %s158_s11 = sand.u32 1, %s5636_s14  }
  0x17   : > { %s5740_s10 = scalar_select %p25_p13, %s5636_s14, %s27_s7  }
  0x18   : > { %p36_p7 = por %p35_p0, %p34_p12  ;;  %s4112_s17 = sshll.u32 %s158_s11, 10 }
  0x19   : > { %s5151_s20 = sshll.u32 %s5640_s15, 10  ;;  %s162_s25 = scalar_lea.vmem [#allocation2], %s4112_s17 }
  0x1a   : > { %s168_s24 = scalar_lea.hbm %s7278_s0, %s5151_s20  ;;  %s171_s26 = sshll.u32 %s162_s25, 4  ;;  %s172_s26 = int_to_ptr.vmem [resolvable:$true] %s171_s26 }
  0x1b   : > { %s169_s27 = sshll.u32 %s168_s24, 4  ;;  %p5747_p2 = pnand %p5438_p5, %p36_p7  ;;  %s170_s27 = int_to_ptr.hbm [resolvable:$true] %s169_s27 }
  0x1c   : > { %s159_s29 = scalar_lea.sflag [#allocation3], %s158_s11  ;;  %s5540_s30 = sshra.s32 %s170_s27, 4  ;;  %s5541_s30 = int_to_ptr.hbm [resolvable:$true] %s5540_s30 }
  0x1d   : > { %s5542_s4 = scalar_lea.hbm %s5541_s30, 1024  ;;  %p5544_p10 = pneg %p5747_p2 }
  0x1e   : > { %p5543_p9 = scmp.ne.s32.totalorder %s5541_s30, %s5542_s4  ;;  %s5547_s8 = scalar_lea.hbm %s7278_s0, 2048 }
  0x1f   : > { %p5548_p0 = scmp.lt.s32.totalorder %s5541_s30, %s7278_s0  ;;  %p5549_p5 = scmp.lt.s32.totalorder %s5547_s8, %s5542_s4 }
  0x20   : > { %p5545_p12 = pnand %p5544_p10, %p5543_p9 }
  0x21   : > { %p5550_p7 = por %p5549_p5, %p5548_p0 }
  0x22   : > { %p5546_p13 = pneg %p5545_p12 }
  0x24   : > { %p5551_p11 = pnand %p5550_p7, %p5546_p13 }
  0x26   : > { %5554 = shalt.err (!%p5551_p11)
}
  0x27   : > { %s5646_s11 = smov 1024   ;;  %s5647_s21 = smov 64  }
  0x28   : > { %5431 = dma.hbm_to_vmem [thread:$0]  (!%p5747_p2), %s170_s27, 16384, %s172_s26, %s159_s29, %s5646_s11, %s5646_s11, %s5647_s21  }
  0x29   : > { %183 = sbr.rel (%p5711_p8) target bundleno = 780 (0x30c), region = 32 }
  0x2e   : > { %s5764_s22 = sand.u32 1, %s5632_s13  }
  0x2f   : > { %s4117_s24 = sshll.u32 %s5764_s22, 10  ;;  %s186_s25 = scalar_lea.sflag [#allocation3], %s5764_s22 }
  0x30   : > { %s5768_s30 = scalar_lea.vmem [#allocation2], %s4117_s24 }
  0x31   : > { %5615 = dma.done.wait (%p5698_p4), %s186_s25, 16384  }
  0x32   : > { %5617 = vsyncadd (%p5698_p4), %s186_s25, 4294950912 }
  0x33   : > { %5619 = dma.done.wait (%p41_p1), [#allocation6], 32800  }
  0x34   : > { %5621 = vsyncadd (%p41_p1), [#allocation6], 4294934496  ;;  %v4179_v0 = vld [vmem:[#allocation5 + $0x70] sm:$0xf]  ;;  %v5167_v1 = vld [vmem:[#allocation5 + $0x74] sm:$0xf0] }
  0x35   : > { %v4243_v2 = vld [vmem:[#allocation5 + $0xf0] sm:$0xf]  ;;  %v4180_v3 = vor.u32 %v5167_v1, %v4179_v0  ;;  %v5183_v4 = vld [vmem:[#allocation5 + $0xf4] sm:$0xf0]  ;;  %v4171_v11 = vld [vmem:[#allocation5 + $0x60] sm:$0xf] }
  0x36   : > { %v4307_v5 = vld [vmem:[#allocation5 + $0x170] sm:$0xf]  ;;  %v5199_v6 = vld [vmem:[#allocation5 + $0x174] sm:$0xf0]  ;;  %v4244_v7 = vor.u32 %v5183_v4, %v4243_v2  ;;  %v5165_v13 = vld [vmem:[#allocation5 + $0x64] sm:$0xf0] }
  0x37   : > { %v4308_v8 = vor.u32 %v5199_v6, %v4307_v5  ;;  %v4371_v9 = vld [vmem:[#allocation5 + $0x1f0] sm:$0xf]  ;;  %v5215_v10 = vld [vmem:[#allocation5 + $0x1f4] sm:$0xf0]  ;;  %3581 = vmatpush.bf16.msra.mxu0 %v4180_v3  ;;  %v4235_v14 = vld [vmem:[#allocation5 + $0xe0] sm:$0xf]  ;;  %v4172_v16 = vor.u32 %v5165_v13, %v4171_v11 }
  0x38   : > { %v4372_v12 = vor.u32 %v5215_v10, %v4371_v9  ;;  %v5181_v15 = vld [vmem:[#allocation5 + $0xe4] sm:$0xf0]  ;;  %3594 = vmatpush.bf16.msra.mxu1 %v4244_v7  ;;  %v4299_v18 = vld [vmem:[#allocation5 + $0x160] sm:$0xf]  ;;  %v4163_v23 = vld [vmem:[#allocation5 + $0x50] sm:$0xf] }
  0x39   : > { %3607 = vmatpush.bf16.msra.mxu2 %v4308_v8  ;;  %v4236_v17 = vor.u32 %v5181_v15, %v4235_v14  ;;  %v5197_v19 = vld [vmem:[#allocation5 + $0x164] sm:$0xf0]  ;;  %v4363_v20 = vld [vmem:[#allocation5 + $0x1e0] sm:$0xf]  ;;  %v5163_v24 = vld [vmem:[#allocation5 + $0x54] sm:$0xf0] }
  0x3a   : > { %3620 = vmatpush.bf16.msra.mxu3 %v4372_v12  ;;  %v4300_v21 = vor.u32 %v5197_v19, %v4299_v18  ;;  %v5213_v22 = vld [vmem:[#allocation5 + $0x1e4] sm:$0xf0]  ;;  %v4227_v26 = vld [vmem:[#allocation5 + $0xd0] sm:$0xf]  ;;  %v5179_v27 = vld [vmem:[#allocation5 + $0xd4] sm:$0xf0]  ;;  %v4164_v29 = vor.u32 %v5163_v24, %v4163_v23 }
  0x3b   : > { %v4364_v25 = vor.u32 %v5213_v22, %v4363_v20  ;;  %v4291_v28 = vld [vmem:[#allocation5 + $0x150] sm:$0xf]  ;;  %3582 = vmatpush.bf16.msra.mxu0 %v4172_v16  ;;  %v5195_v30 = vld [vmem:[#allocation5 + $0x154] sm:$0xf0]  ;;  %v4228_v33 = vor.u32 %v5179_v27, %v4227_v26  ;;  %v4155_v35 = vld [vmem:[#allocation5 + $0x40] sm:$0xf] }
  0x3c   : > { %v4355_v31 = vld [vmem:[#allocation5 + $0x1d0] sm:$0xf]  ;;  %v5211_v32 = vld [vmem:[#allocation5 + $0x1d4] sm:$0xf0]  ;;  %3595 = vmatpush.bf16.msra.mxu1 %v4236_v17  ;;  %v4292_v34 = vor.u32 %v5195_v30, %v4291_v28  ;;  %v5161_v36 = vld [vmem:[#allocation5 + $0x44] sm:$0xf0] }
  0x3d   : > { %3608 = vmatpush.bf16.msra.mxu2 %v4300_v21  ;;  %v4219_v37 = vld [vmem:[#allocation5 + $0xc0] sm:$0xf]  ;;  %v4356_v38 = vor.u32 %v5211_v32, %v4355_v31  ;;  %v5177_v39 = vld [vmem:[#allocation5 + $0xc4] sm:$0xf0]  ;;  %v4156_v44 = vor.u32 %v5161_v36, %v4155_v35  ;;  %v4147_v47 = vld [vmem:[#allocation5 + $0x30] sm:$0xf] }
  0x3e   : > { %3621 = vmatpush.bf16.msra.mxu3 %v4364_v25  ;;  %v4283_v40 = vld [vmem:[#allocation5 + $0x140] sm:$0xf]  ;;  %v5193_v41 = vld [vmem:[#allocation5 + $0x144] sm:$0xf0]  ;;  %v4220_v45 = vor.u32 %v5177_v39, %v4219_v37  ;;  %v5159_v48 = vld [vmem:[#allocation5 + $0x34] sm:$0xf0] }
  0x3f   : > { %v4347_v42 = vld [vmem:[#allocation5 + $0x1c0] sm:$0xf]  ;;  %v5209_v43 = vld [vmem:[#allocation5 + $0x1c4] sm:$0xf0]  ;;  %3583 = vmatpush.bf16.msra.mxu0 %v4164_v29  ;;  %v4284_v46 = vor.u32 %v5193_v41, %v4283_v40  ;;  %v4211_v49 = vld [vmem:[#allocation5 + $0xb0] sm:$0xf]  ;;  %v4148_v56 = vor.u32 %v5159_v48, %v4147_v47 }
  0x40   : > { %3596 = vmatpush.bf16.msra.mxu1 %v4228_v33  ;;  %v4348_v50 = vor.u32 %v5209_v43, %v4347_v42  ;;  %v5175_v51 = vld [vmem:[#allocation5 + $0xb4] sm:$0xf0]  ;;  %v4275_v52 = vld [vmem:[#allocation5 + $0x130] sm:$0xf]  ;;  %v4139_v59 = vld [vmem:[#allocation5 + $0x20] sm:$0xf] }
  0x41   : > { %3609 = vmatpush.bf16.msra.mxu2 %v4292_v34  ;;  %v5191_v53 = vld [vmem:[#allocation5 + $0x134] sm:$0xf0]  ;;  %v4339_v54 = vld [vmem:[#allocation5 + $0x1b0] sm:$0xf]  ;;  %v4212_v57 = vor.u32 %v5175_v51, %v4211_v49  ;;  %v5157_v60 = vld [vmem:[#allocation5 + $0x24] sm:$0xf0] }
  0x42   : > { %3622 = vmatpush.bf16.msra.mxu3 %v4356_v38  ;;  %v5207_v55 = vld [vmem:[#allocation5 + $0x1b4] sm:$0xf0]  ;;  %v4276_v58 = vor.u32 %v5191_v53, %v4275_v52  ;;  %v4203_v61 = vld [vmem:[#allocation5 + $0xa0] sm:$0xf]  ;;  %v5173_v63 = vld [vmem:[#allocation5 + $0xa4] sm:$0xf0]  ;;  %v4140_v4 = vor.u32 %v5157_v60, %v4139_v59 }
  0x43   : > { %3584 = vmatpush.bf16.msra.mxu0 %v4156_v44  ;;  %v4340_v62 = vor.u32 %v5207_v55, %v4339_v54  ;;  %v4267_v0 = vld [vmem:[#allocation5 + $0x120] sm:$0xf]  ;;  %v5189_v1 = vld [vmem:[#allocation5 + $0x124] sm:$0xf0]  ;;  %v4131_v5 = vld [vmem:[#allocation5 + $0x10] sm:$0xf]  ;;  %v4204_v6 = vor.u32 %v5173_v63, %v4203_v61 }
  0x44   : > { %3597 = vmatpush.bf16.msra.mxu1 %v4220_v45  ;;  %v4331_v2 = vld [vmem:[#allocation5 + $0x1a0] sm:$0xf]  ;;  %v5205_v3 = vld [vmem:[#allocation5 + $0x1a4] sm:$0xf0]  ;;  %v4268_v7 = vor.u32 %v5189_v1, %v4267_v0  ;;  %v5155_v8 = vld [vmem:[#allocation5 + $0x14] sm:$0xf0] }
  0x45   : > { %3610 = vmatpush.bf16.msra.mxu2 %v4284_v46  ;;  %v4195_v9 = vld [vmem:[#allocation5 + $0x90] sm:$0xf]  ;;  %v5171_v10 = vld [vmem:[#allocation5 + $0x94] sm:$0xf0]  ;;  %v4332_v11 = vor.u32 %v5205_v3, %v4331_v2  ;;  %v4123_v16 = vld [vmem:[#allocation5] sm:$0xf]  ;;  %v4132_v18 = vor.u32 %v5155_v8, %v4131_v5 }
  0x46   : > { %3623 = vmatpush.bf16.msra.mxu3 %v4348_v50  ;;  %v4259_v12 = vld [vmem:[#allocation5 + $0x110] sm:$0xf]  ;;  %v5187_v13 = vld [vmem:[#allocation5 + $0x114] sm:$0xf0]  ;;  %v5153_v17 = vld [vmem:[#allocation5 + $0x4] sm:$0xf0]  ;;  %v4196_v23 = vor.u32 %v5171_v10, %v4195_v9 }
  0x47   : > { %3585 = vmatpush.bf16.msra.mxu0 %v4148_v56  ;;  %v4323_v14 = vld [vmem:[#allocation5 + $0x190] sm:$0xf]  ;;  %v5203_v15 = vld [vmem:[#allocation5 + $0x194] sm:$0xf0]  ;;  %v4187_v19 = vld [vmem:[#allocation5 + $0x80] sm:$0xf]  ;;  %v4260_v24 = vor.u32 %v5187_v13, %v4259_v12  ;;  %v4124_v40 = vor.u32 %v5153_v17, %v4123_v16 }
  0x48   : > { %3598 = vmatpush.bf16.msra.mxu1 %v4212_v57  ;;  %v5169_v20 = vld [vmem:[#allocation5 + $0x84] sm:$0xf0]  ;;  %v4251_v21 = vld [vmem:[#allocation5 + $0x100] sm:$0xf]  ;;  %v4435_v27 = vld [vmem:[#allocation5 + $0x270] sm:$0xf]  ;;  %v4324_v29 = vor.u32 %v5203_v15, %v4323_v14 }
  0x49   : > { %3611 = vmatpush.bf16.msra.mxu2 %v4276_v58  ;;  %v5185_v22 = vld [vmem:[#allocation5 + $0x104] sm:$0xf0]  ;;  %v4315_v25 = vld [vmem:[#allocation5 + $0x180] sm:$0xf]  ;;  %v5231_v28 = vld [vmem:[#allocation5 + $0x274] sm:$0xf0]  ;;  %v4188_v47 = vor.u32 %v5169_v20, %v4187_v19 }
  0x4a   : > { %3624 = vmatpush.bf16.msra.mxu3 %v4340_v62  ;;  %v5201_v26 = vld [vmem:[#allocation5 + $0x184] sm:$0xf0]  ;;  %v4499_v30 = vld [vmem:[#allocation5 + $0x2f0] sm:$0xf]  ;;  %v5247_v31 = vld [vmem:[#allocation5 + $0x2f4] sm:$0xf0]  ;;  %v4252_v48 = vor.u32 %v5185_v22, %v4251_v21  ;;  %v4436_v55 = vor.u32 %v5231_v28, %v4435_v27 }
  0x4b   : > { %3586 = vmatpush.bf16.msra.mxu0 %v4140_v4  ;;  %v4563_v32 = vld [vmem:[#allocation5 + $0x370] sm:$0xf]  ;;  %v5263_v33 = vld [vmem:[#allocation5 + $0x374] sm:$0xf0]  ;;  %v5782_v36 = vld [vmem:[#allocation5 + $0x260] sm:$0xf]  ;;  %v4316_v54 = vor.u32 %v5201_v26, %v4315_v25  ;;  %v4500_v59 = vor.u32 %v5247_v31, %v4499_v30 }
  0x4c   : > { %3599 = vmatpush.bf16.msra.mxu1 %v4204_v6  ;;  %v5778_v34 = vld [vmem:[#allocation5 + $0x3f0] sm:$0xf]  ;;  %v5780_v35 = vld [vmem:[#allocation5 + $0x3f4] sm:$0xf0]  ;;  %v5784_v37 = vld [vmem:[#allocation5 + $0x264] sm:$0xf0]  ;;  %v4564_v60 = vor.u32 %v5263_v33, %v4563_v32 }
  0x4d   : > { %3612 = vmatpush.bf16.msra.mxu2 %v4268_v7  ;;  %v5786_v38 = vld [vmem:[#allocation5 + $0x2e0] sm:$0xf]  ;;  %v5788_v39 = vld [vmem:[#allocation5 + $0x2e4] sm:$0xf0]  ;;  %v5798_v45 = vld [vmem:[#allocation5 + $0x250] sm:$0xf]  ;;  %v4628_v0 = vor.u32 %v5780_v35, %v5778_v34  ;;  %v4428_v1 = vor.u32 %v5784_v37, %v5782_v36 }
  0x4e   : > { %3625 = vmatpush.bf16.msra.mxu3 %v4332_v11  ;;  %v5790_v41 = vld [vmem:[#allocation5 + $0x360] sm:$0xf]  ;;  %v5792_v42 = vld [vmem:[#allocation5 + $0x364] sm:$0xf0]  ;;  %v5800_v46 = vld [vmem:[#allocation5 + $0x254] sm:$0xf0]  ;;  %v4492_v2 = vor.u32 %v5788_v39, %v5786_v38 }
  0x4f   : > { %3587 = vmatpush.bf16.msra.mxu0 %v4132_v18  ;;  %v5794_v43 = vld [vmem:[#allocation5 + $0x3e0] sm:$0xf]  ;;  %v5796_v44 = vld [vmem:[#allocation5 + $0x3e4] sm:$0xf0]  ;;  %v5802_v49 = vld [vmem:[#allocation5 + $0x2d0] sm:$0xf]  ;;  %v4556_v6 = vor.u32 %v5792_v42, %v5790_v41  ;;  %v4420_v8 = vor.u32 %v5800_v46, %v5798_v45 }
  0x50   : > { %3600 = vmatpush.bf16.msra.mxu1 %v4196_v23  ;;  %v5804_v50 = vld [vmem:[#allocation5 + $0x2d4] sm:$0xf0]  ;;  %v5806_v51 = vld [vmem:[#allocation5 + $0x350] sm:$0xf]  ;;  %v5814_v57 = vld [vmem:[#allocation5 + $0x240] sm:$0xf]  ;;  %v4620_v7 = vor.u32 %v5796_v44, %v5794_v43 }
  0x51   : > { %3613 = vmatpush.bf16.msra.mxu2 %v4260_v24  ;;  %v5808_v52 = vld [vmem:[#allocation5 + $0x354] sm:$0xf0]  ;;  %v5810_v53 = vld [vmem:[#allocation5 + $0x3d0] sm:$0xf]  ;;  %v5816_v58 = vld [vmem:[#allocation5 + $0x244] sm:$0xf0]  ;;  %v4484_v12 = vor.u32 %v5804_v50, %v5802_v49 }
  0x52   : > { %3626 = vmatpush.bf16.msra.mxu3 %v4324_v29  ;;  %v5812_v56 = vld [vmem:[#allocation5 + $0x3d4] sm:$0xf0]  ;;  %v5818_v61 = vld [vmem:[#allocation5 + $0x2c0] sm:$0xf]  ;;  %v5820_v62 = vld [vmem:[#allocation5 + $0x2c4] sm:$0xf0]  ;;  %v4548_v13 = vor.u32 %v5808_v52, %v5806_v51  ;;  %v7330_v49 = vor.u32 %v5816_v58, %v5814_v57 }
  0x53   : > { %v5822_v63 = vld [vmem:[#allocation5 + $0x340] sm:$0xf]  ;;  %3588 = vmatpush.bf16.msra.mxu0 %v4124_v40  ;;  %v5830_v3 = vld [vmem:[#allocation5 + $0x344] sm:$0xf0]  ;;  %v5842_v9 = vld [vmem:[#allocation5 + $0x230] sm:$0xf]  ;;  %v4612_v14 = vor.u32 %v5812_v56, %v5810_v53  ;;  %v7331_v53 = vor.u32 %v5820_v62, %v5818_v61 }
  0x54   : > { %v5832_v4 = vld [vmem:[#allocation5 + $0x3c0] sm:$0xf]  ;;  %v5834_v5 = vld [vmem:[#allocation5 + $0x3c4] sm:$0xf0]  ;;  %3601 = vmatpush.bf16.msra.mxu1 %v4188_v47  ;;  %v5844_v10 = vld [vmem:[#allocation5 + $0x234] sm:$0xf0]  ;;  %v7332_v56 = vor.u32 %v5830_v3, %v5822_v63 }
  0x55   : > { %3614 = vmatpush.bf16.msra.mxu2 %v4252_v48  ;;  %v5846_v11 = vld [vmem:[#allocation5 + $0x2b0] sm:$0xf]  ;;  %v5854_v15 = vld [vmem:[#allocation5 + $0x2b4] sm:$0xf0]  ;;  %v5871_v23 = vld [vmem:[%s5768_s30 + $0x8] sm:$0xff]  ;;  %vm2150_vm0 = vcmask 1041409   ;;  %v7333_v57 = vor.u32 %v5834_v5, %v5832_v4  ;;  %v7334_v63 = vor.u32 %v5844_v10, %v5842_v9 }
  0x56   : > { %3627 = vmatpush.bf16.msra.mxu3 %v4316_v54  ;;  %v5856_v16 = vld [vmem:[#allocation5 + $0x330] sm:$0xf]  ;;  %v5858_v17 = vld [vmem:[#allocation5 + $0x334] sm:$0xf0]  ;;  %v5880_v27 = vld [vmem:[%s5768_s30 + $0x48] sm:$0xff]  ;;  %v354_v30 = vunpack.c.l.bf16 %v5871_v23  ;;  %vm2152_vm1 = vcmask 1042434   ;;  %v7335_v4 = vor.u32 %v5854_v15, %v5846_v11 }
  0x57   : > { %3633 = vmatpush.bf16.msrb.mxu0 %v4436_v55  ;;  %v5866_v21 = vld [vmem:[#allocation5 + $0x3b0] sm:$0xf]  ;;  %v5868_v22 = vld [vmem:[#allocation5 + $0x3b4] sm:$0xf0]  ;;  %v5883_v28 = vld [vmem:[%s5768_s30 + $0x88] sm:$0xff]  ;;  %v370_v35 = vunpack.c.l.bf16 %v5880_v27  ;;  %vm2154_vm2 = vcmask 1043459   ;;  %v7336_v5 = vor.u32 %v5858_v17, %v5856_v16 }
  0x58   : > { %3646 = vmatpush.bf16.msrb.mxu1 %v4500_v59  ;;  %v5886_v29 = vld [vmem:[%s5768_s30 + $0xc8] sm:$0xff]  ;;  %v386_v36 = vunpack.c.l.bf16 %v5883_v28  ;;  %vm2156_vm3 = vcmask 1044484   ;;  %v7337_v9 = vor.u32 %v5868_v22, %v5866_v21  ;;  %vm2158_vm4 = vcmask 1045509   ;;  %s4120_s18 = sshll.u32 %s5764_s22, 4  ;;  %s5408_s26 = sshll.u32 %s5689_s16, 4 }
  0x59   : > { %3659 = vmatpush.bf16.msrb.mxu2 %v4564_v60  ;;  %v5892_v32 = vld [vmem:[%s5768_s30 + $0x108] sm:$0xff]  ;;  %v402_v37 = vunpack.c.l.bf16 %v5886_v29  ;;  %v622_v59 = vadd.f32 %v370_v35, %v354_v30  ;;  %vm2160_vm5 = vcmask 1046534   ;;  %vm2162_vm6 = vcmask 1047559   ;;  %s7239_s23 = scalar_lea.vmem [#allocation8], %s4120_s18  ;;  %s4013_s29 = scalar_lea.hbm %s7281_s3, %s5408_s26 }
  0x5a   : > { %3672 = vmatpush.bf16.msrb.mxu3 %v4628_v0  ;;  %v5895_v33 = vld [vmem:[%s5768_s30 + $0x148] sm:$0xff]  ;;  %v418_v42 = vunpack.c.l.bf16 %v5892_v32  ;;  %s4015_s4 = sshll.u32 %s7239_s23, 4  ;;  %s4017_s5 = sshll.u32 %s4013_s29, 4  ;;  %s4016_s4 = int_to_ptr.vmem [resolvable:$true] %s4015_s4  ;;  %s4018_s5 = int_to_ptr.hbm [resolvable:$true] %s4017_s5 }
  0x5b   : > { %v5898_v34 = vld [vmem:[%s5768_s30 + $0x188] sm:$0xff]  ;;  %3634 = vmatpush.bf16.msrb.mxu0 %v4428_v1  ;;  %v434_v43 = vunpack.c.l.bf16 %v5895_v33  ;;  %v734_v31 = vadd.f32 %v402_v37, %v386_v36  ;;  %s4002_s16 = scalar_lea.sflag [#allocation4], %s5764_s22  ;;  %s5584_s7 = sshra.s32 %s4018_s5, 4  ;;  %s5585_s7 = int_to_ptr.hbm [resolvable:$true] %s5584_s7 }
  0x5c   : > { %v5906_v39 = vld [vmem:[%s5768_s30 + $0x1c8] sm:$0xff]  ;;  %v450_v44 = vunpack.c.l.bf16 %v5898_v34  ;;  %3647 = vmatpush.bf16.msrb.mxu1 %v4492_v2  ;;  %s5586_s8 = scalar_lea.hbm %s5585_s7, 16  ;;  %s5590_s11 = scalar_lea.hbm %s7281_s3, 32 }
  0x5d   : > { %v5909_v40 = vld [vmem:[%s5768_s30 + $0x208] sm:$0xff]  ;;  %3660 = vmatpush.bf16.msrb.mxu2 %v4556_v6  ;;  %v466_v52 = vunpack.c.l.bf16 %v5906_v39  ;;  %v735_v35 = vrot.slane %v734_v31, 4  ;;  %v846_v24 = vadd.f32 %v434_v43, %v418_v42  ;;  %p5587_p1 = scmp.ne.s32.totalorder %s5585_s7, %s5586_s8  ;;  %p5591_p11 = scmp.lt.s32.totalorder %s5585_s7, %s7281_s3 }
  0x5e   : > { %v5912_v41 = vld [vmem:[%s5768_s30 + $0x248] sm:$0xff]  ;;  %v482_v54 = vunpack.c.l.bf16 %v5909_v40  ;;  %3673 = vmatpush.bf16.msrb.mxu3 %v4620_v7  ;;  %v623_v7 = vrot.slane %v622_v59, 4  ;;  %p5592_p2 = scmp.lt.s32.totalorder %s5590_s11, %s5586_s8 }
  0x5f   : > { %v5918_v47 = vld [vmem:[%s5768_s30 + $0x288] sm:$0xff]  ;;  %v498_v55 = vunpack.c.l.bf16 %v5912_v41  ;;  %3635 = vmatpush.bf16.msrb.mxu0 %v4420_v8  ;;  %v958_v20 = vadd.f32 %v466_v52, %v450_v44  ;;  %p5588_p4 = pnand %p5587_p1, %p5734_p3 }
  0x60   : > { %v5921_v48 = vld [vmem:[%s5768_s30 + $0x2c8] sm:$0xff]  ;;  %v514_v2 = vunpack.c.l.bf16 %v5918_v47  ;;  %3648 = vmatpush.bf16.msrb.mxu1 %v4484_v12  ;;  %v624_v36 = vadd.f32 %v623_v7, %v622_v59  ;;  %p5593_p9 = por %p5592_p2, %p5591_p11 }
  0x61   : > { %v5924_v51 = vld [vmem:[%s5768_s30 + $0x308] sm:$0xff]  ;;  %v530_v6 = vunpack.c.l.bf16 %v5921_v48  ;;  %v1070_v19 = vadd.f32 %v498_v55, %v482_v54  ;;  %3661 = vmatpush.bf16.msrb.mxu2 %v4548_v13  ;;  %v959_v45 = vrot.slane %v958_v20, 4  ;;  %p5589_p8 = pneg %p5588_p4 }
  0x62   : > { %v5930_v60 = vld [vmem:[%s5768_s30 + $0x348] sm:$0xff]  ;;  %v546_v38 = vunpack.c.l.bf16 %v5924_v51  ;;  %3674 = vmatpush.bf16.msrb.mxu3 %v4612_v14  ;;  %v625_v8 = vrot.slane %v624_v36, 2 }
  0x63   : > { %v5933_v0 = vld [vmem:[%s5768_s30 + $0x388] sm:$0xff]  ;;  %v562_v26 = vunpack.c.l.bf16 %v5930_v60  ;;  %v1182_v37 = vadd.f32 %v530_v6, %v514_v2  ;;  %v1071_v46 = vrot.slane %v1070_v19, 4  ;;  %3636 = vmatpush.bf16.msrb.mxu0 %v7330_v49  ;;  %v960_v13 = vadd.f32 %v959_v45, %v958_v20  ;;  %v4459_v49 = vld [vmem:[#allocation5 + $0x2a0] sm:$0xf]  ;;  %p5594_p10 = pnand %p5593_p9, %p5589_p8 }
  0x64   : > { %7328 = vst [vmem:[#allocation12_spill] sm:$0xff] %v5933_v0  ;;  %v5936_v1 = vld [vmem:[%s5768_s30 + $0x3c8] sm:$0xff]  ;;  %v578_v25 = vunpack.c.l.bf16 %v5933_v0  ;;  %v847_v0 = vrot.slane %v846_v24, 4  ;;  %3649 = vmatpush.bf16.msrb.mxu1 %v7331_v53  ;;  %v626_v14 = vadd.f32 %v625_v8, %v624_v36  ;;  %v4395_v8 = vld [vmem:[#allocation5 + $0x220] sm:$0xf] }
  0x65   : > { %7329 = vst [vmem:[#allocation13_spill] sm:$0xff] %v5936_v1  ;;  %v594_v30 = vunpack.c.l.bf16 %v5936_v1  ;;  %v1294_v18 = vadd.f32 %v562_v26, %v546_v38  ;;  %v736_v1 = vadd.f32 %v735_v35, %v734_v31  ;;  %v1183_v42 = vrot.slane %v1182_v37, 4  ;;  %3662 = vmatpush.bf16.msrb.mxu2 %v7332_v56  ;;  %v5221_v22 = vld [vmem:[#allocation5 + $0x224] sm:$0xf0]  ;;  %v4523_v56 = vld [vmem:[#allocation5 + $0x320] sm:$0xf] }
  0x66   : > { %v848_v12 = vadd.f32 %v847_v0, %v846_v24  ;;  %v1072_v26 = vadd.f32 %v1071_v46, %v1070_v19  ;;  %3675 = vmatpush.bf16.msrb.mxu3 %v7333_v57  ;;  %v961_v19 = vrot.slane %v960_v13, 2  ;;  %v627_v52 = vrot.slane %v626_v14, 1  ;;  %v5237_v53 = vld [vmem:[#allocation5 + $0x2a4] sm:$0xf0]  ;;  %v4587_v57 = vld [vmem:[#allocation5 + $0x3a0] sm:$0xf] }
  0x67   : > { %v1295_v43 = vrot.slane %v1294_v18, 4  ;;  %v1406_v44 = vadd.f32 %v594_v30, %v578_v25  ;;  %v737_v50 = vrot.slane %v736_v1, 2  ;;  %v1184_v31 = vadd.f32 %v1183_v42, %v1182_v37  ;;  %3637 = vmatpush.bf16.msrb.mxu0 %v7334_v63 }
  0x68   : > { %v849_v20 = vrot.slane %v848_v12, 2  ;;  %v1073_v24 = vrot.slane %v1072_v26, 2  ;;  %v962_v55 = vadd.f32 %v961_v19, %v960_v13  ;;  %3650 = vmatpush.bf16.msrb.mxu1 %v7335_v4  ;;  %v628_v0 = vadd.f32 %v627_v52, %v626_v14  ;;  %v5253_v14 = vld [vmem:[#allocation5 + $0x324] sm:$0xf0]  ;;  %v5991_v4 = vld [vmem:[%s5768_s30 + $0x100] sm:$0xff] }
  0x69   : > { %v1296_v38 = vadd.f32 %v1295_v43, %v1294_v18  ;;  %v1407_v25 = vrot.slane %v1406_v44, 4  ;;  %v738_v58 = vadd.f32 %v737_v50, %v736_v1  ;;  %v1185_v61 = vrot.slane %v1184_v31, 2  ;;  %3663 = vmatpush.bf16.msrb.mxu2 %v7336_v5 }
  0x6a   : > { %v850_v18 = vadd.f32 %v849_v20, %v848_v12  ;;  %v1074_v59 = vadd.f32 %v1073_v24, %v1072_v26  ;;  %3676 = vmatpush.bf16.msrb.mxu3 %v7337_v9  ;;  %v963_v7 = vrot.slane %v962_v55, 1  ;;  %v1506_v37 = vpack.c.bf16 %v628_v0, %v628_v0  ;;  %v5998_v9 = vld [vmem:[%s5768_s30 + $0x180] sm:$0xff] }
  0x6b   : > { %v1297_v62 = vrot.slane %v1296_v38, 2  ;;  %v1408_v54 = vadd.f32 %v1407_v25, %v1406_v44  ;;  %v739_v3 = vrot.slane %v738_v58, 1  ;;  %v1186_v1 = vadd.f32 %v1185_v61, %v1184_v31  ;;  %v5979_v61 = vld [vmem:[%s5768_s30] sm:$0xff] }
  0x6c   : > { %v851_v30 = vrot.slane %v850_v18, 1  ;;  %v1075_v35 = vrot.slane %v1074_v59, 1  ;;  %v964_v17 = vadd.f32 %v963_v7, %v962_v55  ;;  %v2024_v21 = vunpack.c.l.b16 %v1506_v37  ;;  %v5985_v55 = vld [vmem:[%s5768_s30 + $0x80] sm:$0xff] }
  0x6d   : > { %v1298_v2 = vadd.f32 %v1297_v62, %v1296_v38  ;;  %v1409_v6 = vrot.slane %v1408_v54, 2  ;;  %v740_v10 = vadd.f32 %v739_v3, %v738_v58  ;;  %v1187_v11 = vrot.slane %v1186_v1, 1  ;;  %v5269_v58 = vld [vmem:[#allocation5 + $0x3a4] sm:$0xf0]  ;;  %v5982_v62 = vld [vmem:[%s5768_s30 + $0x40] sm:$0xff] }
  0x6e   : > { %v852_v16 = vadd.f32 %v851_v30, %v850_v18  ;;  %v1076_v45 = vadd.f32 %v1075_v35, %v1074_v59  ;;  %v1554_v12 = vpack.c.bf16 %v964_v17, %v964_v17  ;;  %v4396_v18 = vor.u32 %v5221_v22, %v4395_v8  ;;  %v5988_v59 = vld [vmem:[%s5768_s30 + $0xc0] sm:$0xff] }
  0x6f   : > { %v1299_v15 = vrot.slane %v1298_v2, 1  ;;  %v1410_v36 = vadd.f32 %v1409_v6, %v1408_v54  ;;  %v1522_v46 = vpack.c.bf16 %v740_v10, %v740_v10  ;;  %v1188_v42 = vadd.f32 %v1187_v11, %v1186_v1  ;;  %v5995_v6 = vld [vmem:[%s5768_s30 + $0x140] sm:$0xff] }
  0x70   : > { %v1538_v50 = vpack.c.bf16 %v852_v16, %v852_v16  ;;  %v1570_v13 = vpack.c.bf16 %v1076_v45, %v1076_v45  ;;  %v2072_v19 = vunpack.c.l.b16 %v1554_v12  ;;  %v4460_v0 = vor.u32 %v5237_v53, %v4459_v49  ;;  %v6001_v10 = vld [vmem:[%s5768_s30 + $0x1c0] sm:$0xff]  ;;  %3638 = vmatpush.bf16.msrb.mxu0 %v4396_v18 }
  0x71   : > { %v1300_v43 = vadd.f32 %v1299_v15, %v1298_v2  ;;  %v1411_v44 = vrot.slane %v1410_v36, 1  ;;  %v2040_v26 = vunpack.c.l.b16 %v1522_v46  ;;  %v1586_v38 = vpack.c.bf16 %v1188_v42, %v1188_v42  ;;  %v6005_v35 = vld [vmem:[%s5768_s30 + $0x200] sm:$0xff] }
  0x72   : > { %v2056_v20 = vunpack.c.l.b16 %v1538_v50  ;;  %v2088_v24 = vunpack.c.l.b16 %v1570_v13  ;;  %v4524_v1 = vor.u32 %v5253_v14, %v4523_v56  ;;  %v4588_v2 = vor.u32 %v5269_v58, %v4587_v57  ;;  %v6008_v11 = vld [vmem:[%s5768_s30 + $0x240] sm:$0xff]  ;;  %3651 = vmatpush.bf16.msrb.mxu1 %v4460_v0 }
  0x73   : > { %v1412_v31 = vadd.f32 %v1411_v44, %v1410_v36  ;;  %v1602_v25 = vpack.c.bf16 %v1300_v43, %v1300_v43  ;;  %v2171_v52 = vsel %vm2150_vm0, %v2040_v26, %v2024_v21  ;;  %v2104_v63 = vunpack.c.l.b16 %v1586_v38  ;;  %v6011_v15 = vld [vmem:[%s5768_s30 + $0x280] sm:$0xff] }
  0x74   : > { %v2172_v5 = vsel %vm2152_vm1, %v2056_v20, %v2171_v52  ;;  %v352_v36 = vunpack.c.l.bf16 %v5979_v61  ;;  %v368_v37 = vunpack.c.l.bf16 %v5982_v62  ;;  %3664 = vmatpush.bf16.msrb.mxu2 %v4524_v1  ;;  %v6017_v17 = vld [vmem:[%s5768_s30 + $0x2c0] sm:$0xff]  ;;  %v384_v8 = vunpack.c.l.bf16 %v5985_v55  ;;  %3677 = vmatpush.bf16.msrb.mxu3 %v4588_v2 }
  0x75   : > { %v1618_v54 = vpack.c.bf16 %v1412_v31, %v1412_v31  ;;  %v2120_v3 = vunpack.c.l.b16 %v1602_v25  ;;  %v2173_v7 = vsel %vm2154_vm2, %v2072_v19, %v2172_v5  ;;  %v6020_v45 = vld [vmem:[%s5768_s30 + $0x300] sm:$0xff]  ;;  %v400_v42 = vunpack.c.l.bf16 %v5988_v59 }
  0x76   : > { %v2174_v16 = vsel %vm2156_vm3, %v2088_v24, %v2173_v7  ;;  %v6023_v46 = vld [vmem:[%s5768_s30 + $0x340] sm:$0xff]  ;;  %v416_v43 = vunpack.c.l.bf16 %v5991_v4  ;;  %v432_v49 = vunpack.c.l.bf16 %v5995_v6  ;;  %v448_v50 = vunpack.c.l.bf16 %v5998_v9 }
  0x77   : > { %v2136_v30 = vunpack.c.l.b16 %v1618_v54  ;;  %v2175_v44 = vsel %vm2158_vm4, %v2104_v63, %v2174_v16  ;;  %v6030_v21 = vld [vmem:[%s5768_s30 + $0x380] sm:$0xff]  ;;  %v464_v12 = vunpack.c.l.bf16 %v6001_v10  ;;  %v480_v26 = vunpack.c.l.bf16 %v6005_v35 }
  0x78   : > { %v6033_v22 = vld [vmem:[%s5768_s30 + $0x3c0] sm:$0xff]  ;;  %v2176_v13 = vsel %vm2160_vm5, %v2120_v3, %v2175_v44  ;;  %v496_v53 = vunpack.c.l.bf16 %v6008_v11  ;;  %v512_v56 = vunpack.c.l.bf16 %v6011_v15  ;;  %v528_v31 = vunpack.c.l.bf16 %v6017_v17 }
  0x79   : > { %7338 = vst [vmem:[#allocation14_spill] sm:$0xff] %v6033_v22  ;;  %v2177_v14 = vsel %vm2162_vm6, %v2136_v30, %v2176_v13  ;;  %v544_v38 = vunpack.c.l.bf16 %v6020_v45  ;;  %v560_v25 = vunpack.c.l.bf16 %v6023_v46  ;;  %v576_v58 = vunpack.c.l.bf16 %v6030_v21 }
  0x7a   : > { %v6046_v57 = vpack.c.b16 %v2177_v14, %v2177_v14  ;;  %v592_v20 = vunpack.c.l.bf16 %v6033_v22  ;;  %v608_v19 = vadd.f32 %v368_v37, %v352_v36  ;;  %v720_v24 = vadd.f32 %v400_v42, %v384_v8 }
  0x7b   : > { %v832_v52 = vadd.f32 %v432_v49, %v416_v43  ;;  %v944_v54 = vadd.f32 %v464_v12, %v448_v50  ;;  %v1056_v63 = vadd.f32 %v496_v53, %v480_v26  ;;  %v1168_v18 = vadd.f32 %v528_v31, %v512_v56 }
  0x7c   : > { %7339 = vst [vmem:[#allocation15_spill] sm:$0xff] %v6046_v57  ;;  %3615 = vmatmul.bf16.vlgmr.msra.gmra.mxu2 %v6046_v57  ;;  %v609_v3 = vrot.slane %v608_v19, 4  ;;  %v1280_v5 = vadd.f32 %v560_v25, %v544_v38  ;;  %v1392_v0 = vadd.f32 %v592_v20, %v576_v58  ;;  %v721_v1 = vrot.slane %v720_v24, 4 }
  0x7d   : > { %v833_v2 = vrot.slane %v832_v52, 4  ;;  %v945_v30 = vrot.slane %v944_v54, 4  ;;  %v1057_v7 = vrot.slane %v1056_v63, 4  ;;  %v1169_v44 = vrot.slane %v1168_v18, 4 }
  0x7e   : > { %v610_v16 = vadd.f32 %v609_v3, %v608_v19  ;;  %v1281_v13 = vrot.slane %v1280_v5, 4  ;;  %v1393_v14 = vrot.slane %v1392_v0, 4  ;;  %v722_v22 = vadd.f32 %v721_v1, %v720_v24 }
  0x7f   : > { %v834_v36 = vadd.f32 %v833_v2, %v832_v52  ;;  %v946_v37 = vadd.f32 %v945_v30, %v944_v54  ;;  %v1058_v8 = vadd.f32 %v1057_v7, %v1056_v63  ;;  %v1170_v43 = vadd.f32 %v1169_v44, %v1168_v18 }
  0x80   : > { %v611_v42 = vrot.slane %v610_v16, 2  ;;  %v1282_v49 = vadd.f32 %v1281_v13, %v1280_v5  ;;  %v1394_v50 = vadd.f32 %v1393_v14, %v1392_v0  ;;  %v723_v12 = vrot.slane %v722_v22, 2 }
  0x81   : > { %v835_v26 = vrot.slane %v834_v36, 2  ;;  %v947_v53 = vrot.slane %v946_v37, 2  ;;  %v1059_v56 = vrot.slane %v1058_v8, 2  ;;  %v1171_v38 = vrot.slane %v1170_v43, 2 }
  0x82   : > { %v612_v31 = vadd.f32 %v611_v42, %v610_v16  ;;  %v1283_v25 = vrot.slane %v1282_v49, 2  ;;  %v1395_v58 = vrot.slane %v1394_v50, 2  ;;  %v724_v20 = vadd.f32 %v723_v12, %v722_v22 }
  0x83   : > { %v836_v19 = vadd.f32 %v835_v26, %v834_v36  ;;  %v948_v3 = vadd.f32 %v947_v53, %v946_v37  ;;  %v1060_v57 = vadd.f32 %v1059_v56, %v1058_v8  ;;  %v1172_v52 = vadd.f32 %v1171_v38, %v1170_v43 }
  0x84   : > { %v613_v24 = vrot.slane %v612_v31, 1  ;;  %v1284_v54 = vadd.f32 %v1283_v25, %v1282_v49  ;;  %v1396_v63 = vadd.f32 %v1395_v58, %v1394_v50  ;;  %v725_v1 = vrot.slane %v724_v20, 1 }
  0x85   : > { %v837_v18 = vrot.slane %v836_v19, 1  ;;  %v949_v5 = vrot.slane %v948_v3, 1  ;;  %v1061_v0 = vrot.slane %v1060_v57, 1  ;;  %v1173_v30 = vrot.slane %v1172_v52, 1 }
  0x86   : > { %v614_v2 = vadd.f32 %v613_v24, %v612_v31  ;;  %v1285_v7 = vrot.slane %v1284_v54, 1  ;;  %v1397_v44 = vrot.slane %v1396_v63, 1  ;;  %v726_v16 = vadd.f32 %v725_v1, %v724_v20 }
  0x87   : > { %v838_v13 = vadd.f32 %v837_v18, %v836_v19  ;;  %v950_v14 = vadd.f32 %v949_v5, %v948_v3  ;;  %v1062_v42 = vadd.f32 %v1061_v0, %v1060_v57  ;;  %v1174_v22 = vadd.f32 %v1173_v30, %v1172_v52 }
  0x88   : > { %v1286_v36 = vadd.f32 %v1285_v7, %v1284_v54  ;;  %v1398_v37 = vadd.f32 %v1397_v44, %v1396_v63  ;;  %v1504_v8 = vpack.c.bf16 %v614_v2, %v614_v2  ;;  %v1520_v12 = vpack.c.bf16 %v726_v16, %v726_v16  ;;  %v7340_v16 = vld [vmem:[#allocation12_spill] sm:$0xff] }
  0x89   : > { %v1536_v43 = vpack.c.bf16 %v838_v13, %v838_v13  ;;  %v1552_v49 = vpack.c.bf16 %v950_v14, %v950_v14  ;;  %v1568_v50 = vpack.c.bf16 %v1062_v42, %v1062_v42  ;;  %v1584_v26 = vpack.c.bf16 %v1174_v22, %v1174_v22  ;;  %v7341_v14 = vld [vmem:[#allocation13_spill] sm:$0xff] }
  0x8a   : > { %v1600_v53 = vpack.c.bf16 %v1286_v36, %v1286_v36  ;;  %v1616_v56 = vpack.c.bf16 %v1398_v37, %v1398_v37  ;;  %v2022_v38 = vunpack.c.l.b16 %v1504_v8  ;;  %v2038_v31 = vunpack.c.l.b16 %v1520_v12 }
  0x8b   : > { %v2054_v25 = vunpack.c.l.b16 %v1536_v43  ;;  %v2070_v58 = vunpack.c.l.b16 %v1552_v49  ;;  %v2086_v24 = vunpack.c.l.b16 %v1568_v50  ;;  %v2102_v20 = vunpack.c.l.b16 %v1584_v26 }
  0x8c   : > { %v2118_v19 = vunpack.c.l.b16 %v1600_v53  ;;  %v2134_v3 = vunpack.c.l.b16 %v1616_v56  ;;  %v355_v57 = vunpack.c.h.bf16 %v5871_v23  ;;  %v2151_v52 = vsel %vm2150_vm0, %v2038_v31, %v2022_v38 }
  0x8d   : > { %v371_v54 = vunpack.c.h.bf16 %v5880_v27  ;;  %v387_v63 = vunpack.c.h.bf16 %v5883_v28  ;;  %v403_v1 = vunpack.c.h.bf16 %v5886_v29  ;;  %v2153_v18 = vsel %vm2152_vm1, %v2054_v25, %v2151_v52 }
  0x8e   : > { %v419_v5 = vunpack.c.h.bf16 %v5892_v32  ;;  %v435_v0 = vunpack.c.h.bf16 %v5895_v33  ;;  %v451_v2 = vunpack.c.h.bf16 %v5898_v34  ;;  %v2155_v30 = vsel %vm2154_vm2, %v2070_v58, %v2153_v18 }
  0x8f   : > { %v467_v23 = vunpack.c.h.bf16 %v5906_v39  ;;  %v483_v7 = vunpack.c.h.bf16 %v5909_v40  ;;  %v499_v27 = vunpack.c.h.bf16 %v5912_v41  ;;  %v2157_v28 = vsel %vm2156_vm3, %v2086_v24, %v2155_v30 }
  0x90   : > { %v515_v29 = vunpack.c.h.bf16 %v5918_v47  ;;  %v531_v44 = vunpack.c.h.bf16 %v5921_v48  ;;  %v547_v32 = vunpack.c.h.bf16 %v5924_v51  ;;  %v2159_v33 = vsel %vm2158_vm4, %v2102_v20, %v2157_v28 }
  0x91   : > { %v563_v34 = vunpack.c.h.bf16 %v5930_v60  ;;  %v579_v13 = vunpack.c.h.bf16 %v7340_v16  ;;  %v595_v39 = vunpack.c.h.bf16 %v7341_v14  ;;  %v2161_v40 = vsel %vm2160_vm5, %v2118_v19, %v2159_v33 }
  0x92   : > { %v629_v42 = vadd.f32 %v371_v54, %v355_v57  ;;  %v741_v41 = vadd.f32 %v403_v1, %v387_v63  ;;  %v853_v22 = vadd.f32 %v435_v0, %v419_v5  ;;  %v2163_v36 = vsel %vm2162_vm6, %v2134_v3, %v2161_v40 }
  0x93   : > { %v965_v47 = vadd.f32 %v467_v23, %v451_v2  ;;  %v1077_v37 = vadd.f32 %v499_v27, %v483_v7  ;;  %v1189_v48 = vadd.f32 %v531_v44, %v515_v29  ;;  %v6074_v8 = vpack.c.b16 %v2163_v36, %v2163_v36 }
  0x94   : > { %v630_v51 = vrot.slane %v629_v42, 4  ;;  %v742_v12 = vrot.slane %v741_v41, 4  ;;  %v854_v43 = vrot.slane %v853_v22, 4  ;;  %v1301_v26 = vadd.f32 %v563_v34, %v547_v32 }
  0x95   : > { %7342 = vst [vmem:[#allocation12_spill] sm:$0xff] %v6074_v8  ;;  %v966_v60 = vrot.slane %v965_v47, 4  ;;  %v1078_v49 = vrot.slane %v1077_v37, 4  ;;  %v1190_v50 = vrot.slane %v1189_v48, 4  ;;  %3589 = vmatmul.bf16.vlgmr.msra.gmra.mxu0 %v6074_v8  ;;  %v1413_v31 = vadd.f32 %v595_v39, %v579_v13 }
  0x96   : > { %v631_v53 = vadd.f32 %v630_v51, %v629_v42  ;;  %v743_v56 = vadd.f32 %v742_v12, %v741_v41  ;;  %v855_v38 = vadd.f32 %v854_v43, %v853_v22  ;;  %v1302_v20 = vrot.slane %v1301_v26, 4 }
  0x97   : > { %v967_v25 = vadd.f32 %v966_v60, %v965_v47  ;;  %v1079_v58 = vadd.f32 %v1078_v49, %v1077_v37  ;;  %v1191_v24 = vadd.f32 %v1190_v50, %v1189_v48  ;;  %v1414_v52 = vrot.slane %v1413_v31, 4 }
  0x98   : > { %v632_v19 = vrot.slane %v631_v53, 2  ;;  %v744_v3 = vrot.slane %v743_v56, 2  ;;  %v856_v57 = vrot.slane %v855_v38, 2  ;;  %v1303_v18 = vadd.f32 %v1302_v20, %v1301_v26 }
  0x99   : > { %v968_v54 = vrot.slane %v967_v25, 2  ;;  %v1080_v63 = vrot.slane %v1079_v58, 2  ;;  %v1192_v1 = vrot.slane %v1191_v24, 2  ;;  %v1415_v30 = vadd.f32 %v1414_v52, %v1413_v31 }
  0x9a   : > { %v633_v5 = vadd.f32 %v632_v19, %v631_v53  ;;  %v745_v0 = vadd.f32 %v744_v3, %v743_v56  ;;  %v857_v2 = vadd.f32 %v856_v57, %v855_v38  ;;  %v1304_v28 = vrot.slane %v1303_v18, 2 }
  0x9b   : > { %v969_v23 = vadd.f32 %v968_v54, %v967_v25  ;;  %v1081_v7 = vadd.f32 %v1080_v63, %v1079_v58  ;;  %v1193_v27 = vadd.f32 %v1192_v1, %v1191_v24  ;;  %v1416_v33 = vrot.slane %v1415_v30, 2 }
  0x9c   : > { %v634_v29 = vrot.slane %v633_v5, 1  ;;  %v746_v44 = vrot.slane %v745_v0, 1  ;;  %v858_v32 = vrot.slane %v857_v2, 1  ;;  %v1305_v14 = vadd.f32 %v1304_v28, %v1303_v18 }
  0x9d   : > { %v970_v34 = vrot.slane %v969_v23, 1  ;;  %v1082_v16 = vrot.slane %v1081_v7, 1  ;;  %v1194_v13 = vrot.slane %v1193_v27, 1  ;;  %v1417_v41 = vadd.f32 %v1416_v33, %v1415_v30 }
  0x9e   : > { %v635_v39 = vadd.f32 %v634_v29, %v633_v5  ;;  %v747_v40 = vadd.f32 %v746_v44, %v745_v0  ;;  %v859_v42 = vadd.f32 %v858_v32, %v857_v2  ;;  %v1306_v37 = vrot.slane %v1305_v14, 1  ;;  %v7343_v44 = vld [vmem:[#allocation14_spill] sm:$0xff] }
  0x9f   : > { %v971_v22 = vadd.f32 %v970_v34, %v969_v23  ;;  %v1083_v36 = vadd.f32 %v1082_v16, %v1081_v7  ;;  %v1195_v47 = vadd.f32 %v1194_v13, %v1193_v27  ;;  %v1418_v48 = vrot.slane %v1417_v41, 1 }
  0xa0   : > { %v1507_v51 = vpack.c.bf16 %v635_v39, %v635_v39  ;;  %v1523_v12 = vpack.c.bf16 %v747_v40, %v747_v40  ;;  %v1539_v43 = vpack.c.bf16 %v859_v42, %v859_v42  ;;  %v1307_v60 = vadd.f32 %v1306_v37, %v1305_v14 }
  0xa1   : > { %v1555_v49 = vpack.c.bf16 %v971_v22, %v971_v22  ;;  %v1571_v50 = vpack.c.bf16 %v1083_v36, %v1083_v36  ;;  %v1587_v26 = vpack.c.bf16 %v1195_v47, %v1195_v47  ;;  %v1419_v53 = vadd.f32 %v1418_v48, %v1417_v41 }
  0xa2   : > { %v2025_v56 = vunpack.c.l.b16 %v1507_v51  ;;  %v2041_v38 = vunpack.c.l.b16 %v1523_v12  ;;  %v2057_v31 = vunpack.c.l.b16 %v1539_v43  ;;  %v1603_v25 = vpack.c.bf16 %v1307_v60, %v1307_v60 }
  0xa3   : > { %v2073_v58 = vunpack.c.l.b16 %v1555_v49  ;;  %v2089_v24 = vunpack.c.l.b16 %v1571_v50  ;;  %v2105_v20 = vunpack.c.l.b16 %v1587_v26  ;;  %v1619_v19 = vpack.c.bf16 %v1419_v53, %v1419_v53 }
  0xa4   : > { %v2178_v3 = vsel %vm2150_vm0, %v2041_v38, %v2025_v56  ;;  %v353_v57 = vunpack.c.h.bf16 %v5979_v61  ;;  %v369_v52 = vunpack.c.h.bf16 %v5982_v62  ;;  %v2121_v54 = vunpack.c.l.b16 %v1603_v25 }
  0xa5   : > { %v2179_v63 = vsel %vm2152_vm1, %v2057_v31, %v2178_v3  ;;  %v385_v1 = vunpack.c.h.bf16 %v5985_v55  ;;  %v401_v18 = vunpack.c.h.bf16 %v5988_v59  ;;  %v2137_v5 = vunpack.c.l.b16 %v1619_v19 }
  0xa6   : > { %v2180_v0 = vsel %vm2154_vm2, %v2073_v58, %v2179_v63  ;;  %v417_v2 = vunpack.c.h.bf16 %v5991_v4  ;;  %v433_v30 = vunpack.c.h.bf16 %v5995_v6  ;;  %v449_v61 = vunpack.c.h.bf16 %v5998_v9 }
  0xa7   : > { %v2181_v23 = vsel %vm2156_vm3, %v2089_v24, %v2180_v0  ;;  %v465_v62 = vunpack.c.h.bf16 %v6001_v10  ;;  %v481_v7 = vunpack.c.h.bf16 %v6005_v35  ;;  %v497_v55 = vunpack.c.h.bf16 %v6008_v11 }
  0xa8   : > { %v2182_v27 = vsel %vm2158_vm4, %v2105_v20, %v2181_v23  ;;  %v513_v59 = vunpack.c.h.bf16 %v6011_v15  ;;  %v529_v28 = vunpack.c.h.bf16 %v6017_v17  ;;  %v545_v6 = vunpack.c.h.bf16 %v6020_v45 }
  0xa9   : > { %v2183_v4 = vsel %vm2160_vm5, %v2121_v54, %v2182_v27  ;;  %v561_v29 = vunpack.c.h.bf16 %v6023_v46  ;;  %v577_v9 = vunpack.c.h.bf16 %v6030_v21  ;;  %v593_v35 = vunpack.c.h.bf16 %v7343_v44  ;;  %v5235_v44 = vld [vmem:[#allocation5 + $0x294] sm:$0xf0] }
  0xaa   : > { %v2184_v10 = vsel %vm2162_vm6, %v2137_v5, %v2183_v4  ;;  %v615_v32 = vadd.f32 %v369_v52, %v353_v57  ;;  %v727_v33 = vadd.f32 %v401_v18, %v385_v1  ;;  %v839_v11 = vadd.f32 %v433_v30, %v417_v2 }
  0xab   : > { %v6100_v34 = vpack.c.b16 %v2184_v10, %v2184_v10  ;;  %v951_v15 = vadd.f32 %v465_v62, %v449_v61  ;;  %v1063_v16 = vadd.f32 %v497_v55, %v481_v7  ;;  %v1175_v14 = vadd.f32 %v529_v28, %v513_v59  ;;  %v4387_v59 = vld [vmem:[#allocation5 + $0x210] sm:$0xf]  ;;  %v5219_v28 = vld [vmem:[#allocation5 + $0x214] sm:$0xf0] }
  0xac   : > { %v616_v17 = vrot.slane %v615_v32, 4  ;;  %v728_v13 = vrot.slane %v727_v33, 4  ;;  %v1287_v39 = vadd.f32 %v561_v29, %v545_v6  ;;  %v840_v45 = vrot.slane %v839_v11, 4  ;;  %v4451_v10 = vld [vmem:[#allocation5 + $0x290] sm:$0xf] }
  0xad   : > { %7344 = vst [vmem:[#allocation13_spill] sm:$0xff] %v6100_v34  ;;  %3628 = vmatmul.bf16.vlgmr.msra.gmra.mxu3 %v6100_v34  ;;  %v952_v46 = vrot.slane %v951_v15, 4  ;;  %v1064_v21 = vrot.slane %v1063_v16, 4  ;;  %v1399_v40 = vadd.f32 %v593_v35, %v577_v9  ;;  %v1176_v22 = vrot.slane %v1175_v14, 4  ;;  %v4515_v35 = vld [vmem:[#allocation5 + $0x310] sm:$0xf] }
  0xae   : > { %v617_v42 = vadd.f32 %v616_v17, %v615_v32  ;;  %v729_v41 = vadd.f32 %v728_v13, %v727_v33  ;;  %v1288_v36 = vrot.slane %v1287_v39, 4  ;;  %v841_v47 = vadd.f32 %v840_v45, %v839_v11  ;;  %v5251_v32 = vld [vmem:[#allocation5 + $0x314] sm:$0xf0]  ;;  %v4579_v17 = vld [vmem:[#allocation5 + $0x390] sm:$0xf] }
  0xaf   : > { %v953_v37 = vadd.f32 %v952_v46, %v951_v15  ;;  %v1065_v48 = vadd.f32 %v1064_v21, %v1063_v16  ;;  %v1400_v51 = vrot.slane %v1399_v40, 4  ;;  %v1177_v60 = vadd.f32 %v1176_v22, %v1175_v14  ;;  %v5267_v13 = vld [vmem:[#allocation5 + $0x394] sm:$0xf0]  ;;  %v6103_v14 = vld [vmem:[#allocation5 + $0x200] sm:$0xf] }
  0xb0   : > { %v618_v12 = vrot.slane %v617_v42, 2  ;;  %v730_v43 = vrot.slane %v729_v41, 2  ;;  %v1289_v49 = vadd.f32 %v1288_v36, %v1287_v39  ;;  %v842_v50 = vrot.slane %v841_v47, 2  ;;  %v6105_v39 = vld [vmem:[#allocation5 + $0x204] sm:$0xf0] }
  0xb1   : > { %v954_v26 = vrot.slane %v953_v37, 2  ;;  %v1066_v53 = vrot.slane %v1065_v48, 2  ;;  %v1401_v56 = vadd.f32 %v1400_v51, %v1399_v40  ;;  %v1178_v25 = vrot.slane %v1177_v60, 2  ;;  %v6107_v45 = vld [vmem:[#allocation5 + $0x280] sm:$0xf] }
  0xb2   : > { %v619_v38 = vadd.f32 %v618_v12, %v617_v42  ;;  %v731_v31 = vadd.f32 %v730_v43, %v729_v41  ;;  %v1290_v58 = vrot.slane %v1289_v49, 2  ;;  %v843_v24 = vadd.f32 %v842_v50, %v841_v47  ;;  %v6109_v46 = vld [vmem:[#allocation5 + $0x284] sm:$0xf0]  ;;  %v6111_v22 = vld [vmem:[#allocation5 + $0x300] sm:$0xf] }
  0xb3   : > { %v955_v20 = vadd.f32 %v954_v26, %v953_v37  ;;  %v1067_v19 = vadd.f32 %v1066_v53, %v1065_v48  ;;  %v1402_v3 = vrot.slane %v1401_v56, 2  ;;  %v1179_v54 = vadd.f32 %v1178_v25, %v1177_v60  ;;  %v6113_v36 = vld [vmem:[#allocation5 + $0x304] sm:$0xf0]  ;;  %v6115_v47 = vld [vmem:[#allocation5 + $0x380] sm:$0xf]  ;;  %v6120_v48 = vld [vmem:[%s5768_s30 + $0x18] sm:$0xff] }
  0xb4   : > { %v620_v57 = vrot.slane %v619_v38, 1  ;;  %v732_v52 = vrot.slane %v731_v31, 1  ;;  %v1291_v63 = vadd.f32 %v1290_v58, %v1289_v49  ;;  %v844_v1 = vrot.slane %v843_v24, 1  ;;  %v6117_v37 = vld [vmem:[#allocation5 + $0x384] sm:$0xf0] }
  0xb5   : > { %v956_v18 = vrot.slane %v955_v20, 1  ;;  %v1068_v5 = vrot.slane %v1067_v19, 1  ;;  %v1403_v0 = vadd.f32 %v1402_v3, %v1401_v56  ;;  %v1180_v23 = vrot.slane %v1179_v54, 1  ;;  %v6122_v49 = vld [vmem:[#allocation5 + $0x470] sm:$0xf] }
  0xb6   : > { %v621_v2 = vadd.f32 %v620_v57, %v619_v38  ;;  %v733_v30 = vadd.f32 %v732_v52, %v731_v31  ;;  %v1292_v61 = vrot.slane %v1291_v63, 1  ;;  %v845_v62 = vadd.f32 %v844_v1, %v843_v24  ;;  %v6124_v50 = vld [vmem:[#allocation5 + $0x474] sm:$0xf0]  ;;  %v6126_v26 = vld [vmem:[#allocation5 + $0x4f0] sm:$0xf] }
  0xb7   : > { %v957_v7 = vadd.f32 %v956_v18, %v955_v20  ;;  %v1069_v27 = vadd.f32 %v1068_v5, %v1067_v19  ;;  %v1404_v55 = vrot.slane %v1403_v0, 1  ;;  %v1181_v4 = vadd.f32 %v1180_v23, %v1179_v54  ;;  %v6128_v53 = vld [vmem:[#allocation5 + $0x4f4] sm:$0xf0]  ;;  %v6131_v58 = vld [vmem:[#allocation5 + $0x570] sm:$0xf] }
  0xb8   : > { %v1293_v6 = vadd.f32 %v1292_v61, %v1291_v63  ;;  %v1505_v29 = vpack.c.bf16 %v621_v2, %v621_v2  ;;  %v1521_v9 = vpack.c.bf16 %v733_v30, %v733_v30  ;;  %v1537_v11 = vpack.c.bf16 %v845_v62, %v845_v62  ;;  %v6133_v24 = vld [vmem:[#allocation5 + $0x574] sm:$0xf0]  ;;  %v6135_v20 = vld [vmem:[#allocation5 + $0x5f0] sm:$0xf]  ;;  %v6140_v63 = vld [vmem:[#allocation5 + $0x460] sm:$0xf] }
  0xb9   : > { %v1405_v33 = vadd.f32 %v1404_v55, %v1403_v0  ;;  %v1553_v15 = vpack.c.bf16 %v957_v7, %v957_v7  ;;  %v1569_v16 = vpack.c.bf16 %v1069_v27, %v1069_v27  ;;  %v1585_v21 = vpack.c.bf16 %v1181_v4, %v1181_v4  ;;  %v6138_v54 = vld [vmem:[#allocation5 + $0x5f4] sm:$0xf0]  ;;  %v6142_v1 = vld [vmem:[#allocation5 + $0x464] sm:$0xf0]  ;;  %v6152_v23 = vld [vmem:[#allocation5 + $0x4e0] sm:$0xf] }
  0xba   : > { %v1601_v40 = vpack.c.bf16 %v1293_v6, %v1293_v6  ;;  %v2023_v42 = vunpack.c.l.b16 %v1505_v29  ;;  %v2039_v41 = vunpack.c.l.b16 %v1521_v9  ;;  %v2055_v12 = vunpack.c.l.b16 %v1537_v11  ;;  %v6145_v18 = vld [vmem:[%s5768_s30 + $0x58] sm:$0xff]  ;;  %v6154_v61 = vld [vmem:[#allocation5 + $0x4e4] sm:$0xf0]  ;;  %v6156_v62 = vld [vmem:[#allocation5 + $0x560] sm:$0xf] }
  0xbb   : > { %v1617_v51 = vpack.c.bf16 %v1405_v33, %v1405_v33  ;;  %v2071_v43 = vunpack.c.l.b16 %v1553_v15  ;;  %v2087_v60 = vunpack.c.l.b16 %v1569_v16  ;;  %v2103_v56 = vunpack.c.l.b16 %v1585_v21  ;;  %v6159_v7 = vld [vmem:[%s5768_s30 + $0x98] sm:$0xff]  ;;  %v6169_v4 = vld [vmem:[#allocation5 + $0x564] sm:$0xf0]  ;;  %v6171_v6 = vld [vmem:[#allocation5 + $0x5e0] sm:$0xf] }
  0xbc   : > { %v2119_v38 = vunpack.c.l.b16 %v1601_v40  ;;  %v2164_v31 = vsel %vm2150_vm0, %v2039_v41, %v2023_v42  ;;  %v4388_v25 = vor.u32 %v5219_v28, %v4387_v59  ;;  %v4452_v57 = vor.u32 %v5235_v44, %v4451_v10  ;;  %v6162_v27 = vld [vmem:[%s5768_s30 + $0xd8] sm:$0xff]  ;;  %v6173_v29 = vld [vmem:[#allocation5 + $0x5e4] sm:$0xf0] }
  0xbd   : > { %v2135_v19 = vunpack.c.l.b16 %v1617_v51  ;;  %v2165_v3 = vsel %vm2152_vm1, %v2055_v12, %v2164_v31  ;;  %v4516_v52 = vor.u32 %v5251_v32, %v4515_v35  ;;  %v4580_v0 = vor.u32 %v5267_v13, %v4579_v17  ;;  %v6184_v33 = vld [vmem:[%s5768_s30 + $0x118] sm:$0xff] }
  0xbe   : > { %v2166_v5 = vsel %vm2154_vm2, %v2071_v43, %v2165_v3  ;;  %3639 = vmatpush.bf16.msrb.mxu0 %v4388_v25  ;;  %v4380_v2 = vor.u32 %v6105_v39, %v6103_v14  ;;  %v4444_v30 = vor.u32 %v6109_v46, %v6107_v45  ;;  %3652 = vmatpush.bf16.msrb.mxu1 %v4452_v57  ;;  %v358_v9 = vunpack.c.l.bf16 %v6120_v48  ;;  %v6187_v11 = vld [vmem:[%s5768_s30 + $0x158] sm:$0xff] }
  0xbf   : > { %v2167_v55 = vsel %vm2156_vm3, %v2087_v60, %v2166_v5  ;;  %3665 = vmatpush.bf16.msrb.mxu2 %v4516_v52  ;;  %v4508_v59 = vor.u32 %v6113_v36, %v6111_v22  ;;  %v4572_v28 = vor.u32 %v6117_v37, %v6115_v47  ;;  %3678 = vmatpush.bf16.msrb.mxu3 %v4580_v0  ;;  %v6190_v15 = vld [vmem:[%s5768_s30 + $0x198] sm:$0xff]  ;;  %v374_v47 = vunpack.c.l.bf16 %v6145_v18 }
  0xc0   : > { %v2168_v10 = vsel %vm2158_vm4, %v2103_v56, %v2167_v55  ;;  %v4692_v44 = vor.u32 %v6124_v50, %v6122_v49  ;;  %v4756_v35 = vor.u32 %v6128_v53, %v6126_v26  ;;  %v4820_v32 = vor.u32 %v6133_v24, %v6131_v58  ;;  %v6200_v39 = vld [vmem:[%s5768_s30 + $0x1d8] sm:$0xff] }
  0xc1   : > { %v2169_v16 = vsel %vm2160_vm5, %v2119_v38, %v2168_v10  ;;  %v4884_v17 = vor.u32 %v6138_v54, %v6135_v20  ;;  %v4684_v13 = vor.u32 %v6142_v1, %v6140_v63  ;;  %v4748_v14 = vor.u32 %v6154_v61, %v6152_v23  ;;  %v6203_v45 = vld [vmem:[%s5768_s30 + $0x218] sm:$0xff] }
  0xc2   : > { %v6206_v46 = vld [vmem:[%s5768_s30 + $0x258] sm:$0xff]  ;;  %v2170_v21 = vsel %vm2162_vm6, %v2135_v19, %v2169_v16  ;;  %3640 = vmatpush.bf16.msrb.mxu0 %v4380_v2  ;;  %v4812_v40 = vor.u32 %v6169_v4, %v6156_v62  ;;  %v4876_v42 = vor.u32 %v6173_v29, %v6171_v6  ;;  %3653 = vmatpush.bf16.msrb.mxu1 %v4444_v30  ;;  %v390_v60 = vunpack.c.l.bf16 %v6159_v7 }
  0xc3   : > { %v6214_v41 = vld [vmem:[%s5768_s30 + $0x298] sm:$0xff]  ;;  %v6223_v37 = vpack.c.b16 %v2170_v21, %v2170_v21  ;;  %3666 = vmatpush.bf16.msrb.mxu2 %v4508_v59  ;;  %v406_v49 = vunpack.c.l.bf16 %v6162_v27  ;;  %v422_v50 = vunpack.c.l.bf16 %v6184_v33  ;;  %3679 = vmatpush.bf16.msrb.mxu3 %v4572_v28  ;;  %v438_v26 = vunpack.c.l.bf16 %v6187_v11 }
  0xc4   : > { %v6217_v22 = vld [vmem:[%s5768_s30 + $0x2d8] sm:$0xff]  ;;  %v454_v53 = vunpack.c.l.bf16 %v6190_v15  ;;  %v470_v56 = vunpack.c.l.bf16 %v6200_v39  ;;  %v486_v38 = vunpack.c.l.bf16 %v6203_v45  ;;  %v502_v31 = vunpack.c.l.bf16 %v6206_v46 }
  0xc5   : > { %v6220_v36 = vld [vmem:[%s5768_s30 + $0x318] sm:$0xff]  ;;  %7345 = vst [vmem:[#allocation14_spill] sm:$0xff] %v6223_v37  ;;  %3602 = vmatmul.bf16.vlgmr.msra.gmra.mxu1 %v6223_v37  ;;  %v518_v25 = vunpack.c.l.bf16 %v6214_v41  ;;  %v534_v58 = vunpack.c.l.bf16 %v6217_v22  ;;  %v650_v57 = vadd.f32 %v374_v47, %v358_v9  ;;  %v762_v52 = vadd.f32 %v406_v49, %v390_v60 }
  0xc6   : > { %v6226_v51 = vld [vmem:[%s5768_s30 + $0x358] sm:$0xff]  ;;  %3685 = vmatpush.bf16.msra.mxu0 %v4692_v44  ;;  %v550_v24 = vunpack.c.l.bf16 %v6220_v36  ;;  %3698 = vmatpush.bf16.msra.mxu1 %v4756_v35  ;;  %v874_v54 = vadd.f32 %v438_v26, %v422_v50  ;;  %v986_v63 = vadd.f32 %v470_v56, %v454_v53  ;;  %v1098_v1 = vadd.f32 %v502_v31, %v486_v38 }
  0xc7   : > { %v6229_v12 = vld [vmem:[%s5768_s30 + $0x398] sm:$0xff]  ;;  %3711 = vmatpush.bf16.msra.mxu2 %v4820_v32  ;;  %3724 = vmatpush.bf16.msra.mxu3 %v4884_v17  ;;  %v566_v20 = vunpack.c.l.bf16 %v6226_v51  ;;  %v651_v5 = vrot.slane %v650_v57, 4  ;;  %v1210_v0 = vadd.f32 %v534_v58, %v518_v25  ;;  %v763_v23 = vrot.slane %v762_v52, 4 }
  0xc8   : > { %v6232_v43 = vld [vmem:[%s5768_s30 + $0x3d8] sm:$0xff]  ;;  %v582_v19 = vunpack.c.l.bf16 %v6229_v12  ;;  %v875_v61 = vrot.slane %v874_v54, 4  ;;  %v987_v62 = vrot.slane %v986_v63, 4  ;;  %v1099_v55 = vrot.slane %v1098_v1, 4 }
  0xc9   : > { %v598_v3 = vunpack.c.l.bf16 %v6232_v43  ;;  %v1322_v2 = vadd.f32 %v566_v20, %v550_v24  ;;  %v652_v59 = vadd.f32 %v651_v5, %v650_v57  ;;  %v1211_v28 = vrot.slane %v1210_v0, 4 }
  0xca   : > { %3686 = vmatpush.bf16.msra.mxu0 %v4684_v13  ;;  %3699 = vmatpush.bf16.msra.mxu1 %v4748_v14  ;;  %v764_v29 = vadd.f32 %v763_v23, %v762_v52  ;;  %v876_v9 = vadd.f32 %v875_v61, %v874_v54  ;;  %v988_v10 = vadd.f32 %v987_v62, %v986_v63 }
  0xcb   : > { %v1434_v30 = vadd.f32 %v598_v3, %v582_v19  ;;  %3712 = vmatpush.bf16.msra.mxu2 %v4812_v40  ;;  %3725 = vmatpush.bf16.msra.mxu3 %v4876_v42  ;;  %v1323_v4 = vrot.slane %v1322_v2, 4  ;;  %v1100_v44 = vadd.f32 %v1099_v55, %v1098_v1  ;;  %v653_v35 = vrot.slane %v652_v59, 2 }
  0xcc   : > { %v1212_v32 = vadd.f32 %v1211_v28, %v1210_v0  ;;  %v765_v13 = vrot.slane %v764_v29, 2  ;;  %v877_v21 = vrot.slane %v876_v9, 2  ;;  %v989_v40 = vrot.slane %v988_v10, 2 }
  0xcd   : > { %v1435_v6 = vrot.slane %v1434_v30, 4  ;;  %v1324_v16 = vadd.f32 %v1323_v4, %v1322_v2  ;;  %v1101_v47 = vrot.slane %v1100_v44, 2  ;;  %v654_v60 = vadd.f32 %v653_v35, %v652_v59  ;;  %v6253_v35 = vld [vmem:[%s5768_s30 + $0x50] sm:$0xff] }
  0xce   : > { %v1213_v49 = vrot.slane %v1212_v32, 2  ;;  %v766_v50 = vadd.f32 %v765_v13, %v764_v29  ;;  %v878_v26 = vadd.f32 %v877_v21, %v876_v9  ;;  %v990_v53 = vadd.f32 %v989_v40, %v988_v10 }
  0xcf   : > { %v1436_v17 = vadd.f32 %v1435_v6, %v1434_v30  ;;  %v1325_v14 = vrot.slane %v1324_v16, 2  ;;  %v1102_v56 = vadd.f32 %v1101_v47, %v1100_v44  ;;  %v655_v38 = vrot.slane %v654_v60, 1  ;;  %v6250_v6 = vld [vmem:[%s5768_s30 + $0x10] sm:$0xff] }
  0xd0   : > { %v1214_v31 = vadd.f32 %v1213_v49, %v1212_v32  ;;  %v767_v24 = vrot.slane %v766_v50, 1  ;;  %v879_v20 = vrot.slane %v878_v26, 1  ;;  %v991_v19 = vrot.slane %v990_v53, 1  ;;  %v6256_v32 = vld [vmem:[%s5768_s30 + $0x90] sm:$0xff] }
  0xd1   : > { %v1437_v42 = vrot.slane %v1436_v17, 2  ;;  %v1326_v25 = vadd.f32 %v1325_v14, %v1324_v16  ;;  %v1103_v3 = vrot.slane %v1102_v56, 1  ;;  %v656_v57 = vadd.f32 %v655_v38, %v654_v60  ;;  %v6259_v16 = vld [vmem:[%s5768_s30 + $0xd0] sm:$0xff] }
  0xd2   : > { %v1215_v52 = vrot.slane %v1214_v31, 1  ;;  %v768_v1 = vadd.f32 %v767_v24, %v766_v50  ;;  %v880_v5 = vadd.f32 %v879_v20, %v878_v26  ;;  %v992_v0 = vadd.f32 %v991_v19, %v990_v53  ;;  %v6262_v47 = vld [vmem:[%s5768_s30 + $0x110] sm:$0xff] }
  0xd3   : > { %v1438_v58 = vadd.f32 %v1437_v42, %v1436_v17  ;;  %v1327_v54 = vrot.slane %v1326_v25, 1  ;;  %v1104_v2 = vadd.f32 %v1103_v3, %v1102_v56  ;;  %v1510_v62 = vpack.c.bf16 %v656_v57, %v656_v57  ;;  %v6265_v60 = vld [vmem:[%s5768_s30 + $0x150] sm:$0xff] }
  0xd4   : > { %v1216_v30 = vadd.f32 %v1215_v52, %v1214_v31  ;;  %v1526_v55 = vpack.c.bf16 %v768_v1, %v768_v1  ;;  %v1542_v59 = vpack.c.bf16 %v880_v5, %v880_v5  ;;  %v1558_v28 = vpack.c.bf16 %v992_v0, %v992_v0  ;;  %v6268_v49 = vld [vmem:[%s5768_s30 + $0x190] sm:$0xff] }
  0xd5   : > { %v1439_v63 = vrot.slane %v1438_v58, 1  ;;  %v1328_v23 = vadd.f32 %v1327_v54, %v1326_v25  ;;  %v1574_v4 = vpack.c.bf16 %v1104_v2, %v1104_v2  ;;  %v2028_v44 = vunpack.c.l.b16 %v1510_v62  ;;  %v6271_v26 = vld [vmem:[%s5768_s30 + $0x1d0] sm:$0xff] }
  0xd6   : > { %v1590_v29 = vpack.c.bf16 %v1216_v30, %v1216_v30  ;;  %v2044_v17 = vunpack.c.l.b16 %v1526_v55  ;;  %v2060_v13 = vunpack.c.l.b16 %v1542_v59  ;;  %v2076_v21 = vunpack.c.l.b16 %v1558_v28  ;;  %v6274_v53 = vld [vmem:[%s5768_s30 + $0x210] sm:$0xff] }
  0xd7   : > { %v1440_v61 = vadd.f32 %v1439_v63, %v1438_v58  ;;  %v1606_v9 = vpack.c.bf16 %v1328_v23, %v1328_v23  ;;  %v2092_v40 = vunpack.c.l.b16 %v1574_v4  ;;  %v6277_v56 = vld [vmem:[%s5768_s30 + $0x250] sm:$0xff]  ;;  %v356_v38 = vunpack.c.l.bf16 %v6250_v6 }
  0xd8   : > { %v2108_v14 = vunpack.c.l.b16 %v1590_v29  ;;  %v2199_v31 = vsel %vm2150_vm0, %v2044_v17, %v2028_v44  ;;  %v6282_v25 = vld [vmem:[%s5768_s30 + $0x290] sm:$0xff]  ;;  %v372_v20 = vunpack.c.l.bf16 %v6253_v35  ;;  %v388_v19 = vunpack.c.l.bf16 %v6256_v32 }
  0xd9   : > { %v1622_v10 = vpack.c.bf16 %v1440_v61, %v1440_v61  ;;  %v2124_v42 = vunpack.c.l.b16 %v1606_v9  ;;  %v6285_v58 = vld [vmem:[%s5768_s30 + $0x2d0] sm:$0xff]  ;;  %v404_v3 = vunpack.c.l.bf16 %v6259_v16  ;;  %v2200_v57 = vsel %vm2152_vm1, %v2060_v13, %v2199_v31 }
  0xda   : > { %v6288_v24 = vld [vmem:[%s5768_s30 + $0x310] sm:$0xff]  ;;  %v420_v1 = vunpack.c.l.bf16 %v6262_v47  ;;  %v436_v5 = vunpack.c.l.bf16 %v6265_v60  ;;  %v452_v0 = vunpack.c.l.bf16 %v6268_v49  ;;  %v2201_v2 = vsel %vm2154_vm2, %v2076_v21, %v2200_v57 }
  0xdb   : > { %v2140_v50 = vunpack.c.l.b16 %v1622_v10  ;;  %7346 = vst [vmem:[#allocation16_spill] sm:$0xff] %v6288_v24  ;;  %v6295_v52 = vld [vmem:[%s5768_s30 + $0x350] sm:$0xff]  ;;  %v468_v30 = vunpack.c.l.bf16 %v6271_v26  ;;  %v484_v23 = vunpack.c.l.bf16 %v6274_v53  ;;  %v500_v61 = vunpack.c.l.bf16 %v6277_v56 }
  0xdc   : > { %7347 = vst [vmem:[#allocation17_spill] sm:$0xff] %v6295_v52  ;;  %v6298_v54 = vld [vmem:[%s5768_s30 + $0x390] sm:$0xff]  ;;  %v2202_v62 = vsel %vm2156_vm3, %v2092_v40, %v2201_v2  ;;  %v516_v55 = vunpack.c.l.bf16 %v6282_v25  ;;  %v532_v59 = vunpack.c.l.bf16 %v6285_v58  ;;  %v548_v28 = vunpack.c.l.bf16 %v6288_v24 }
  0xdd   : > { %7348 = vst [vmem:[#allocation18_spill] sm:$0xff] %v6298_v54  ;;  %v6301_v63 = vld [vmem:[%s5768_s30 + $0x3d0] sm:$0xff]  ;;  %v2203_v4 = vsel %vm2158_vm4, %v2108_v14, %v2202_v62  ;;  %v564_v29 = vunpack.c.l.bf16 %v6295_v52  ;;  %v580_v9 = vunpack.c.l.bf16 %v6298_v54  ;;  %v636_v17 = vadd.f32 %v372_v20, %v356_v38 }
  0xde   : > { %7349 = vst [vmem:[#allocation19_spill] sm:$0xff] %v6301_v63  ;;  %v596_v10 = vunpack.c.l.bf16 %v6301_v63  ;;  %v2204_v44 = vsel %vm2160_vm5, %v2124_v42, %v2203_v4  ;;  %v748_v13 = vadd.f32 %v404_v3, %v388_v19  ;;  %v860_v21 = vadd.f32 %v436_v5, %v420_v1 }
  0xdf   : > { %v2205_v40 = vsel %vm2162_vm6, %v2140_v50, %v2204_v44  ;;  %v972_v31 = vadd.f32 %v468_v30, %v452_v0  ;;  %v1084_v57 = vadd.f32 %v500_v61, %v484_v23  ;;  %v1196_v2 = vadd.f32 %v532_v59, %v516_v55 }
  0xe0   : > { %v6320_v37 = vpack.c.b16 %v2205_v40, %v2205_v40  ;;  %v637_v34 = vrot.slane %v636_v17, 4  ;;  %v749_v14 = vrot.slane %v748_v13, 4  ;;  %v861_v62 = vrot.slane %v860_v21, 4 }
  0xe1   : > { %v973_v8 = vrot.slane %v972_v31, 4  ;;  %v1085_v52 = vrot.slane %v1084_v57, 4  ;;  %v1197_v54 = vrot.slane %v1196_v2, 4  ;;  %v1308_v24 = vadd.f32 %v564_v29, %v548_v28 }
  0xe2   : > { %7350 = vst [vmem:[#allocation20_spill] sm:$0xff] %v6320_v37  ;;  %3667 = vmatmul.bf16.vlgmr.msrb.gmra.mxu2 %v6320_v37  ;;  %v638_v42 = vadd.f32 %v637_v34, %v636_v17  ;;  %v750_v38 = vadd.f32 %v749_v14, %v748_v13  ;;  %v862_v20 = vadd.f32 %v861_v62, %v860_v21 }
  0xe3   : > { %v1420_v19 = vadd.f32 %v596_v10, %v580_v9  ;;  %v974_v3 = vadd.f32 %v973_v8, %v972_v31  ;;  %v1086_v50 = vadd.f32 %v1085_v52, %v1084_v57  ;;  %v1198_v1 = vadd.f32 %v1197_v54, %v1196_v2 }
  0xe4   : > { %v1309_v5 = vrot.slane %v1308_v24, 4  ;;  %v639_v0 = vrot.slane %v638_v42, 2  ;;  %v751_v30 = vrot.slane %v750_v38, 2  ;;  %v863_v23 = vrot.slane %v862_v20, 2 }
  0xe5   : > { %v1421_v61 = vrot.slane %v1420_v19, 4  ;;  %v975_v55 = vrot.slane %v974_v3, 2  ;;  %v1087_v59 = vrot.slane %v1086_v50, 2  ;;  %v1199_v4 = vrot.slane %v1198_v1, 2 }
  0xe6   : > { %v1310_v44 = vadd.f32 %v1309_v5, %v1308_v24  ;;  %v640_v40 = vadd.f32 %v639_v0, %v638_v42  ;;  %v752_v28 = vadd.f32 %v751_v30, %v750_v38  ;;  %v864_v29 = vadd.f32 %v863_v23, %v862_v20 }
  0xe7   : > { %v1422_v37 = vadd.f32 %v1421_v61, %v1420_v19  ;;  %v976_v34 = vadd.f32 %v975_v55, %v974_v3  ;;  %v1088_v17 = vadd.f32 %v1087_v59, %v1086_v50  ;;  %v1200_v13 = vadd.f32 %v1199_v4, %v1198_v1 }
  0xe8   : > { %v1311_v9 = vrot.slane %v1310_v44, 2  ;;  %v641_v8 = vrot.slane %v640_v40, 1  ;;  %v753_v52 = vrot.slane %v752_v28, 1  ;;  %v865_v54 = vrot.slane %v864_v29, 1 }
  0xe9   : > { %v1423_v10 = vrot.slane %v1422_v37, 2  ;;  %v977_v21 = vrot.slane %v976_v34, 1  ;;  %v1089_v31 = vrot.slane %v1088_v17, 1  ;;  %v1201_v57 = vrot.slane %v1200_v13, 1 }
  0xea   : > { %v1312_v2 = vadd.f32 %v1311_v9, %v1310_v44  ;;  %v642_v14 = vadd.f32 %v641_v8, %v640_v40  ;;  %v754_v62 = vadd.f32 %v753_v52, %v752_v28  ;;  %v866_v63 = vadd.f32 %v865_v54, %v864_v29 }
  0xeb   : > { %v1424_v24 = vadd.f32 %v1423_v10, %v1422_v37  ;;  %v978_v42 = vadd.f32 %v977_v21, %v976_v34  ;;  %v1090_v38 = vadd.f32 %v1089_v31, %v1088_v17  ;;  %v1202_v20 = vadd.f32 %v1201_v57, %v1200_v13 }
  0xec   : > { %v1313_v19 = vrot.slane %v1312_v2, 1  ;;  %v1508_v50 = vpack.c.bf16 %v642_v14, %v642_v14  ;;  %v1524_v1 = vpack.c.bf16 %v754_v62, %v754_v62  ;;  %v1540_v5 = vpack.c.bf16 %v866_v63, %v866_v63 }
  0xed   : > { %v1425_v3 = vrot.slane %v1424_v24, 1  ;;  %v1556_v30 = vpack.c.bf16 %v978_v42, %v978_v42  ;;  %v1572_v23 = vpack.c.bf16 %v1090_v38, %v1090_v38  ;;  %v1588_v61 = vpack.c.bf16 %v1202_v20, %v1202_v20 }
  0xee   : > { %v1314_v0 = vadd.f32 %v1313_v19, %v1312_v2  ;;  %v2026_v59 = vunpack.c.l.b16 %v1508_v50  ;;  %v2042_v4 = vunpack.c.l.b16 %v1524_v1  ;;  %v2058_v44 = vunpack.c.l.b16 %v1540_v5 }
  0xef   : > { %v1426_v55 = vadd.f32 %v1425_v3, %v1424_v24  ;;  %v2074_v28 = vunpack.c.l.b16 %v1556_v30  ;;  %v2090_v29 = vunpack.c.l.b16 %v1572_v23  ;;  %v2106_v37 = vunpack.c.l.b16 %v1588_v61 }
  0xf0   : > { %v1604_v40 = vpack.c.bf16 %v1314_v0, %v1314_v0  ;;  %v2185_v17 = vsel %vm2150_vm0, %v2042_v4, %v2026_v59  ;;  %v359_v13 = vunpack.c.h.bf16 %v6120_v48  ;;  %v375_v9 = vunpack.c.h.bf16 %v6145_v18 }
  0xf1   : > { %v1620_v34 = vpack.c.bf16 %v1426_v55, %v1426_v55  ;;  %v2186_v8 = vsel %vm2152_vm1, %v2058_v44, %v2185_v17  ;;  %v391_v52 = vunpack.c.h.bf16 %v6159_v7  ;;  %v407_v54 = vunpack.c.h.bf16 %v6162_v27 }
  0xf2   : > { %v2122_v63 = vunpack.c.l.b16 %v1604_v40  ;;  %v2187_v21 = vsel %vm2154_vm2, %v2074_v28, %v2186_v8  ;;  %v423_v31 = vunpack.c.h.bf16 %v6184_v33  ;;  %v439_v57 = vunpack.c.h.bf16 %v6187_v11 }
  0xf3   : > { %v2138_v10 = vunpack.c.l.b16 %v1620_v34  ;;  %v2188_v2 = vsel %vm2156_vm3, %v2090_v29, %v2187_v21  ;;  %v455_v48 = vunpack.c.h.bf16 %v6190_v15  ;;  %v471_v18 = vunpack.c.h.bf16 %v6200_v39 }
  0xf4   : > { %v487_v14 = vunpack.c.h.bf16 %v6203_v45  ;;  %v2189_v62 = vsel %vm2158_vm4, %v2106_v37, %v2188_v2  ;;  %v503_v7 = vunpack.c.h.bf16 %v6206_v46  ;;  %v519_v27 = vunpack.c.h.bf16 %v6214_v41 }
  0xf5   : > { %v535_v24 = vunpack.c.h.bf16 %v6217_v22  ;;  %v2190_v33 = vsel %vm2160_vm5, %v2122_v63, %v2189_v62  ;;  %v551_v11 = vunpack.c.h.bf16 %v6220_v36  ;;  %v567_v42 = vunpack.c.h.bf16 %v6226_v51 }
  0xf6   : > { %v583_v15 = vunpack.c.h.bf16 %v6229_v12  ;;  %v2191_v39 = vsel %vm2162_vm6, %v2138_v10, %v2190_v33  ;;  %v599_v45 = vunpack.c.h.bf16 %v6232_v43  ;;  %v657_v38 = vadd.f32 %v375_v9, %v359_v13 }
  0xf7   : > { %v769_v20 = vadd.f32 %v407_v54, %v391_v52  ;;  %v6346_v19 = vpack.c.b16 %v2191_v39, %v2191_v39  ;;  %v881_v46 = vadd.f32 %v439_v57, %v423_v31  ;;  %v993_v41 = vadd.f32 %v471_v18, %v455_v48 }
  0xf8   : > { %v1105_v3 = vadd.f32 %v503_v7, %v487_v14  ;;  %v658_v22 = vrot.slane %v657_v38, 4  ;;  %v1217_v1 = vadd.f32 %v535_v24, %v519_v27  ;;  %v1329_v5 = vadd.f32 %v567_v42, %v551_v11 }
  0xf9   : > { %7351 = vst [vmem:[#allocation21_spill] sm:$0xff] %v6346_v19  ;;  %v770_v50 = vrot.slane %v769_v20, 4  ;;  %3641 = vmatmul.bf16.vlgmr.msrb.gmra.mxu0 %v6346_v19  ;;  %v882_v36 = vrot.slane %v881_v46, 4  ;;  %v994_v51 = vrot.slane %v993_v41, 4  ;;  %v1441_v0 = vadd.f32 %v599_v45, %v583_v15 }
  0xfa   : > { %v1106_v12 = vrot.slane %v1105_v3, 4  ;;  %v659_v30 = vadd.f32 %v658_v22, %v657_v38  ;;  %v1218_v43 = vrot.slane %v1217_v1, 4  ;;  %v1330_v61 = vrot.slane %v1329_v5, 4 }
  0xfb   : > { %v771_v23 = vadd.f32 %v770_v50, %v769_v20  ;;  %v883_v55 = vadd.f32 %v882_v36, %v881_v46  ;;  %v995_v59 = vadd.f32 %v994_v51, %v993_v41  ;;  %v1442_v44 = vrot.slane %v1441_v0, 4  ;;  %v4675_v51 = vld [vmem:[#allocation5 + $0x450] sm:$0xf] }
  0xfc   : > { %v1107_v4 = vadd.f32 %v1106_v12, %v1105_v3  ;;  %v660_v40 = vrot.slane %v659_v30, 2  ;;  %v1219_v29 = vadd.f32 %v1218_v43, %v1217_v1  ;;  %v1331_v37 = vadd.f32 %v1330_v61, %v1329_v5  ;;  %v5291_v12 = vld [vmem:[#allocation5 + $0x454] sm:$0xf0] }
  0xfd   : > { %v772_v28 = vrot.slane %v771_v23, 2  ;;  %v884_v34 = vrot.slane %v883_v55, 2  ;;  %v996_v17 = vrot.slane %v995_v59, 2  ;;  %v1443_v9 = vadd.f32 %v1442_v44, %v1441_v0  ;;  %v4739_v0 = vld [vmem:[#allocation5 + $0x4d0] sm:$0xf] }
  0xfe   : > { %v1108_v13 = vrot.slane %v1107_v4, 2  ;;  %v661_v63 = vadd.f32 %v660_v40, %v659_v30  ;;  %v1220_v52 = vrot.slane %v1219_v29, 2  ;;  %v1332_v54 = vrot.slane %v1331_v37, 2 }
  0xff   : > { %v773_v8 = vadd.f32 %v772_v28, %v771_v23  ;;  %v885_v10 = vadd.f32 %v884_v34, %v883_v55  ;;  %v997_v21 = vadd.f32 %v996_v17, %v995_v59  ;;  %v1444_v57 = vrot.slane %v1443_v9, 2  ;;  %v5307_v55 = vld [vmem:[#allocation5 + $0x4d4] sm:$0xf0]  ;;  %v4803_v59 = vld [vmem:[#allocation5 + $0x550] sm:$0xf] }
 0x100   : > { %v1109_v31 = vadd.f32 %v1108_v13, %v1107_v4  ;;  %v662_v2 = vrot.slane %v661_v63, 1  ;;  %v1221_v18 = vadd.f32 %v1220_v52, %v1219_v29  ;;  %v1333_v14 = vadd.f32 %v1332_v54, %v1331_v37  ;;  %v5323_v4 = vld [vmem:[#allocation5 + $0x554] sm:$0xf0]  ;;  %v4867_v37 = vld [vmem:[#allocation5 + $0x5d0] sm:$0xf] }
 0x101   : > { %v774_v48 = vrot.slane %v773_v8, 1  ;;  %v886_v62 = vrot.slane %v885_v10, 1  ;;  %v998_v7 = vrot.slane %v997_v21, 1  ;;  %v1445_v24 = vadd.f32 %v1444_v57, %v1443_v9  ;;  %v5339_v34 = vld [vmem:[#allocation5 + $0x5d4] sm:$0xf0] }
 0x102   : > { %v1110_v27 = vrot.slane %v1109_v31, 1  ;;  %v663_v33 = vadd.f32 %v662_v2, %v661_v63  ;;  %v1222_v42 = vrot.slane %v1221_v18, 1  ;;  %v1334_v15 = vrot.slane %v1333_v14, 1 }
 0x103   : > { %v775_v11 = vadd.f32 %v774_v48, %v773_v8  ;;  %v887_v39 = vadd.f32 %v886_v62, %v885_v10  ;;  %v999_v45 = vadd.f32 %v998_v7, %v997_v21  ;;  %v1446_v20 = vrot.slane %v1445_v24, 1 }
 0x104   : > { %v1111_v38 = vadd.f32 %v1110_v27, %v1109_v31  ;;  %v1223_v46 = vadd.f32 %v1222_v42, %v1221_v18  ;;  %v1335_v41 = vadd.f32 %v1334_v15, %v1333_v14  ;;  %v1511_v3 = vpack.c.bf16 %v663_v33, %v663_v33  ;;  %v7352_v42 = vld [vmem:[#allocation16_spill] sm:$0xff] }
 0x105   : > { %v1527_v22 = vpack.c.bf16 %v775_v11, %v775_v11  ;;  %v1447_v50 = vadd.f32 %v1446_v20, %v1445_v24  ;;  %v1543_v1 = vpack.c.bf16 %v887_v39, %v887_v39  ;;  %v1559_v5 = vpack.c.bf16 %v999_v45, %v999_v45  ;;  %v7353_v39 = vld [vmem:[#allocation17_spill] sm:$0xff] }
 0x106   : > { %v1575_v36 = vpack.c.bf16 %v1111_v38, %v1111_v38  ;;  %v1591_v30 = vpack.c.bf16 %v1223_v46, %v1223_v46  ;;  %v1607_v23 = vpack.c.bf16 %v1335_v41, %v1335_v41  ;;  %v2029_v43 = vunpack.c.l.b16 %v1511_v3  ;;  %v7356_v38 = vld [vmem:[#allocation19_spill] sm:$0xff] }
 0x107   : > { %v2045_v61 = vunpack.c.l.b16 %v1527_v22  ;;  %v1623_v44 = vpack.c.bf16 %v1447_v50, %v1447_v50  ;;  %v2061_v40 = vunpack.c.l.b16 %v1543_v1  ;;  %v2077_v28 = vunpack.c.l.b16 %v1559_v5 }
 0x108   : > { %v2093_v29 = vunpack.c.l.b16 %v1575_v36  ;;  %v2109_v17 = vunpack.c.l.b16 %v1591_v30  ;;  %v2125_v13 = vunpack.c.l.b16 %v1607_v23  ;;  %v4676_v63 = vor.u32 %v5291_v12, %v4675_v51 }
 0x109   : > { %v2206_v9 = vsel %vm2150_vm0, %v2045_v61, %v2029_v43  ;;  %v2141_v8 = vunpack.c.l.b16 %v1623_v44  ;;  %v4740_v54 = vor.u32 %v5307_v55, %v4739_v0  ;;  %v4804_v10 = vor.u32 %v5323_v4, %v4803_v59 }
 0x10a   : > { %v2207_v52 = vsel %vm2152_vm1, %v2061_v40, %v2206_v9  ;;  %3687 = vmatpush.bf16.msra.mxu0 %v4676_v63  ;;  %v4868_v31 = vor.u32 %v5339_v34, %v4867_v37  ;;  %v357_v57 = vunpack.c.h.bf16 %v6250_v6  ;;  %v373_v2 = vunpack.c.h.bf16 %v6253_v35 }
 0x10b   : > { %v2208_v21 = vsel %vm2154_vm2, %v2077_v28, %v2207_v52  ;;  %3700 = vmatpush.bf16.msra.mxu1 %v4740_v54  ;;  %3713 = vmatpush.bf16.msra.mxu2 %v4804_v10  ;;  %v389_v18 = vunpack.c.h.bf16 %v6256_v32  ;;  %v405_v14 = vunpack.c.h.bf16 %v6259_v16  ;;  %v421_v62 = vunpack.c.h.bf16 %v6262_v47 }
 0x10c   : > { %v2209_v48 = vsel %vm2156_vm3, %v2093_v29, %v2208_v21  ;;  %3726 = vmatpush.bf16.msra.mxu3 %v4868_v31  ;;  %v437_v27 = vunpack.c.h.bf16 %v6265_v60  ;;  %v453_v24 = vunpack.c.h.bf16 %v6268_v49  ;;  %v469_v6 = vunpack.c.h.bf16 %v6271_v26  ;;  %v7355_v49 = vld [vmem:[#allocation18_spill] sm:$0xff] }
 0x10d   : > { %v2210_v7 = vsel %vm2158_vm4, %v2109_v17, %v2209_v48  ;;  %v485_v33 = vunpack.c.h.bf16 %v6274_v53  ;;  %v501_v11 = vunpack.c.h.bf16 %v6277_v56  ;;  %v517_v32 = vunpack.c.h.bf16 %v6282_v25 }
 0x10e   : > { %v2211_v35 = vsel %vm2160_vm5, %v2125_v13, %v2210_v7  ;;  %v533_v47 = vunpack.c.h.bf16 %v6285_v58  ;;  %v549_v15 = vunpack.c.h.bf16 %v7352_v42  ;;  %v565_v60 = vunpack.c.h.bf16 %v7353_v39  ;;  %v5289_v42 = vld [vmem:[#allocation5 + $0x444] sm:$0xf0] }
 0x10f   : > { %v2212_v16 = vsel %vm2162_vm6, %v2141_v8, %v2211_v35  ;;  %v581_v26 = vunpack.c.h.bf16 %v7355_v49  ;;  %v597_v20 = vunpack.c.h.bf16 %v7356_v38  ;;  %v643_v46 = vadd.f32 %v373_v2, %v357_v57  ;;  %v6377_v38 = vld [vmem:[#allocation5 + $0x4c4] sm:$0xf0] }
 0x110   : > { %v6370_v45 = vpack.c.b16 %v2212_v16, %v2212_v16  ;;  %v755_v53 = vadd.f32 %v405_v14, %v389_v18  ;;  %v867_v41 = vadd.f32 %v437_v27, %v421_v62  ;;  %v979_v56 = vadd.f32 %v469_v6, %v453_v24 }
 0x111   : > { %v1091_v3 = vadd.f32 %v501_v11, %v485_v33  ;;  %v644_v25 = vrot.slane %v643_v46, 4  ;;  %v1203_v22 = vadd.f32 %v533_v47, %v517_v32  ;;  %v1315_v58 = vadd.f32 %v565_v60, %v549_v15  ;;  %v4667_v47 = vld [vmem:[#allocation5 + $0x440] sm:$0xf] }
 0x112   : > { %7354 = vst [vmem:[#allocation16_spill] sm:$0xff] %v6370_v45  ;;  %3680 = vmatmul.bf16.vlgmr.msrb.gmra.mxu3 %v6370_v45  ;;  %v1427_v50 = vadd.f32 %v597_v20, %v581_v26  ;;  %v756_v1 = vrot.slane %v755_v53, 4  ;;  %v868_v5 = vrot.slane %v867_v41, 4  ;;  %v980_v36 = vrot.slane %v979_v56, 4  ;;  %v6375_v26 = vld [vmem:[#allocation5 + $0x4c0] sm:$0xf] }
 0x113   : > { %v1092_v51 = vrot.slane %v1091_v3, 4  ;;  %v645_v12 = vadd.f32 %v644_v25, %v643_v46  ;;  %v1204_v0 = vrot.slane %v1203_v22, 4  ;;  %v1316_v30 = vrot.slane %v1315_v58, 4  ;;  %v4795_v20 = vld [vmem:[#allocation5 + $0x540] sm:$0xf] }
 0x114   : > { %v1428_v23 = vrot.slane %v1427_v50, 4  ;;  %v757_v43 = vadd.f32 %v756_v1, %v755_v53  ;;  %v869_v61 = vadd.f32 %v868_v5, %v867_v41  ;;  %v981_v55 = vadd.f32 %v980_v36, %v979_v56  ;;  %v5321_v46 = vld [vmem:[#allocation5 + $0x544] sm:$0xf0]  ;;  %v6379_v53 = vld [vmem:[#allocation5 + $0x5c0] sm:$0xf] }
 0x115   : > { %v1093_v59 = vadd.f32 %v1092_v51, %v1091_v3  ;;  %v646_v4 = vrot.slane %v645_v12, 2  ;;  %v1205_v44 = vadd.f32 %v1204_v0, %v1203_v22  ;;  %v1317_v40 = vadd.f32 %v1316_v30, %v1315_v58  ;;  %v6381_v41 = vld [vmem:[#allocation5 + $0x5c4] sm:$0xf0]  ;;  %v6383_v58 = vld [vmem:[#allocation5 + $0x430] sm:$0xf] }
 0x116   : > { %v1429_v28 = vadd.f32 %v1428_v23, %v1427_v50  ;;  %v758_v29 = vrot.slane %v757_v43, 2  ;;  %v870_v37 = vrot.slane %v869_v61, 2  ;;  %v982_v34 = vrot.slane %v981_v55, 2  ;;  %v6385_v50 = vld [vmem:[#allocation5 + $0x434] sm:$0xf0] }
 0x117   : > { %v1094_v17 = vrot.slane %v1093_v59, 2  ;;  %v647_v13 = vadd.f32 %v646_v4, %v645_v12  ;;  %v1206_v9 = vrot.slane %v1205_v44, 2  ;;  %v1318_v63 = vrot.slane %v1317_v40, 2  ;;  %v6387_v1 = vld [vmem:[#allocation5 + $0x4b0] sm:$0xf]  ;;  %v6404_v4 = vld [vmem:[%s5768_s30 + $0x20] sm:$0xff] }
 0x118   : > { %v1430_v8 = vrot.slane %v1429_v28, 2  ;;  %v759_v52 = vadd.f32 %v758_v29, %v757_v43  ;;  %v871_v54 = vadd.f32 %v870_v37, %v869_v61  ;;  %v983_v10 = vadd.f32 %v982_v34, %v981_v55  ;;  %v6389_v5 = vld [vmem:[#allocation5 + $0x4b4] sm:$0xf0]  ;;  %v6391_v36 = vld [vmem:[#allocation5 + $0x530] sm:$0xf] }
 0x119   : > { %v1095_v21 = vadd.f32 %v1094_v17, %v1093_v59  ;;  %v648_v31 = vrot.slane %v647_v13, 1  ;;  %v1207_v57 = vadd.f32 %v1206_v9, %v1205_v44  ;;  %v1319_v2 = vadd.f32 %v1318_v63, %v1317_v40  ;;  %v6393_v51 = vld [vmem:[#allocation5 + $0x534] sm:$0xf0]  ;;  %v6395_v43 = vld [vmem:[#allocation5 + $0x5b0] sm:$0xf] }
 0x11a   : > { %v1431_v48 = vadd.f32 %v1430_v8, %v1429_v28  ;;  %v760_v18 = vrot.slane %v759_v52, 1  ;;  %v872_v14 = vrot.slane %v871_v54, 1  ;;  %v984_v62 = vrot.slane %v983_v10, 1  ;;  %v6397_v61 = vld [vmem:[#allocation5 + $0x5b4] sm:$0xf0] }
 0x11b   : > { %v1096_v7 = vrot.slane %v1095_v21, 1  ;;  %v649_v27 = vadd.f32 %v648_v31, %v647_v13  ;;  %v1208_v24 = vrot.slane %v1207_v57, 1  ;;  %v1320_v6 = vrot.slane %v1319_v2, 1  ;;  %v6399_v55 = vld [vmem:[#allocation5 + $0x420] sm:$0xf] }
 0x11c   : > { %v1432_v35 = vrot.slane %v1431_v48, 1  ;;  %v761_v33 = vadd.f32 %v760_v18, %v759_v52  ;;  %v873_v11 = vadd.f32 %v872_v14, %v871_v54  ;;  %v985_v32 = vadd.f32 %v984_v62, %v983_v10  ;;  %v6401_v59 = vld [vmem:[#allocation5 + $0x424] sm:$0xf0]  ;;  %v6406_v37 = vld [vmem:[#allocation5 + $0x4a0] sm:$0xf] }
 0x11d   : > { %v1097_v16 = vadd.f32 %v1096_v7, %v1095_v21  ;;  %v1209_v15 = vadd.f32 %v1208_v24, %v1207_v57  ;;  %v1321_v39 = vadd.f32 %v1320_v6, %v1319_v2  ;;  %v1509_v49 = vpack.c.bf16 %v649_v27, %v649_v27  ;;  %v6408_v34 = vld [vmem:[#allocation5 + $0x4a4] sm:$0xf0]  ;;  %v6410_v17 = vld [vmem:[#allocation5 + $0x520] sm:$0xf]  ;;  %v6418_v21 = vld [vmem:[#allocation5 + $0x410] sm:$0xf] }
 0x11e   : > { %v1433_v60 = vadd.f32 %v1432_v35, %v1431_v48  ;;  %v1525_v56 = vpack.c.bf16 %v761_v33, %v761_v33  ;;  %v1541_v3 = vpack.c.bf16 %v873_v11, %v873_v11  ;;  %v1557_v25 = vpack.c.bf16 %v985_v32, %v985_v32  ;;  %v6412_v13 = vld [vmem:[#allocation5 + $0x524] sm:$0xf0]  ;;  %v6414_v9 = vld [vmem:[#allocation5 + $0x5a0] sm:$0xf]  ;;  %v6420_v31 = vld [vmem:[#allocation5 + $0x414] sm:$0xf0] }
 0x11f   : > { %v1573_v22 = vpack.c.bf16 %v1097_v16, %v1097_v16  ;;  %v1589_v12 = vpack.c.bf16 %v1209_v15, %v1209_v15  ;;  %v1605_v0 = vpack.c.bf16 %v1321_v39, %v1321_v39  ;;  %v2027_v23 = vunpack.c.l.b16 %v1509_v49  ;;  %v6416_v63 = vld [vmem:[#allocation5 + $0x5a4] sm:$0xf0]  ;;  %v6422_v57 = vld [vmem:[#allocation5 + $0x490] sm:$0xf]  ;;  %v6424_v2 = vld [vmem:[#allocation5 + $0x494] sm:$0xf0] }
 0x120   : > { %v1621_v30 = vpack.c.bf16 %v1433_v60, %v1433_v60  ;;  %v2043_v44 = vunpack.c.l.b16 %v1525_v56  ;;  %v2059_v40 = vunpack.c.l.b16 %v1541_v3  ;;  %v2075_v28 = vunpack.c.l.b16 %v1557_v25  ;;  %v6426_v48 = vld [vmem:[#allocation5 + $0x510] sm:$0xf]  ;;  %v6428_v18 = vld [vmem:[#allocation5 + $0x514] sm:$0xf0]  ;;  %v6439_v35 = vld [vmem:[#allocation5 + $0x400] sm:$0xf] }
 0x121   : > { %v2091_v29 = vunpack.c.l.b16 %v1573_v22  ;;  %v2107_v8 = vunpack.c.l.b16 %v1589_v12  ;;  %v2123_v52 = vunpack.c.l.b16 %v1605_v0  ;;  %v4668_v10 = vor.u32 %v5289_v42, %v4667_v47  ;;  %v6435_v24 = vld [vmem:[#allocation5 + $0x590] sm:$0xf]  ;;  %v6437_v6 = vld [vmem:[#allocation5 + $0x594] sm:$0xf0]  ;;  %v6441_v33 = vld [vmem:[#allocation5 + $0x404] sm:$0xf0] }
 0x122   : > { %v2139_v54 = vunpack.c.l.b16 %v1621_v30  ;;  %v2192_v14 = vsel %vm2150_vm0, %v2043_v44, %v2027_v23  ;;  %v4732_v62 = vor.u32 %v6377_v38, %v6375_v26  ;;  %v4796_v7 = vor.u32 %v5321_v46, %v4795_v20  ;;  %v6450_v42 = vld [vmem:[#allocation5 + $0x480] sm:$0xf]  ;;  %v6452_v15 = vld [vmem:[#allocation5 + $0x484] sm:$0xf0] }
 0x123   : > { %v4860_v27 = vor.u32 %v6381_v41, %v6379_v53  ;;  %v2193_v11 = vsel %vm2152_vm1, %v2059_v40, %v2192_v14  ;;  %3688 = vmatpush.bf16.msra.mxu0 %v4668_v10  ;;  %v4660_v32 = vor.u32 %v6385_v50, %v6383_v58  ;;  %v4724_v16 = vor.u32 %v6389_v5, %v6387_v1  ;;  %v6454_v39 = vld [vmem:[#allocation5 + $0x500] sm:$0xf]  ;;  %v6464_v20 = vld [vmem:[#allocation5 + $0x504] sm:$0xf0]  ;;  %v6478_v58 = vld [vmem:[#allocation5 + $0x670] sm:$0xf] }
 0x124   : > { %v4788_v47 = vor.u32 %v6393_v51, %v6391_v36  ;;  %v6457_v60 = vld [vmem:[%s5768_s30 + $0x60] sm:$0xff]  ;;  %v2194_v49 = vsel %vm2154_vm2, %v2075_v28, %v2193_v11  ;;  %3701 = vmatpush.bf16.msra.mxu1 %v4732_v62  ;;  %3714 = vmatpush.bf16.msra.mxu2 %v4796_v7  ;;  %v4852_v26 = vor.u32 %v6397_v61, %v6395_v43  ;;  %v6468_v53 = vld [vmem:[#allocation5 + $0x584] sm:$0xf0]  ;;  %v360_v41 = vunpack.c.l.bf16 %v6404_v4  ;;  %v6480_v50 = vld [vmem:[#allocation5 + $0x674] sm:$0xf0] }
 0x125   : > { %v4652_v38 = vor.u32 %v6401_v59, %v6399_v55  ;;  %v6466_v46 = vld [vmem:[#allocation5 + $0x580] sm:$0xf]  ;;  %v2195_v56 = vsel %vm2156_vm3, %v2091_v29, %v2194_v49  ;;  %3727 = vmatpush.bf16.msra.mxu3 %v4860_v27  ;;  %v4716_v3 = vor.u32 %v6408_v34, %v6406_v37  ;;  %v4780_v25 = vor.u32 %v6412_v13, %v6410_v17  ;;  %v6482_v1 = vld [vmem:[#allocation5 + $0x6f0] sm:$0xf]  ;;  %v6500_v43 = vld [vmem:[#allocation5 + $0x6f4] sm:$0xf0] }
 0x126   : > { %v4844_v22 = vor.u32 %v6416_v63, %v6414_v9  ;;  %v6485_v5 = vld [vmem:[%s5768_s30 + $0xa0] sm:$0xff]  ;;  %v2196_v12 = vsel %vm2158_vm4, %v2107_v8, %v2195_v56  ;;  %v4644_v0 = vor.u32 %v6420_v31, %v6418_v21  ;;  %v6502_v61 = vld [vmem:[#allocation5 + $0x770] sm:$0xf]  ;;  %v6504_v55 = vld [vmem:[#allocation5 + $0x774] sm:$0xf0]  ;;  %v4836_v40 = vor.u32 %v6437_v6, %v6435_v24 }
 0x127   : > { %v6488_v36 = vld [vmem:[%s5768_s30 + $0xe0] sm:$0xff]  ;;  %v2197_v44 = vsel %vm2160_vm5, %v2123_v52, %v2196_v12  ;;  %3689 = vmatpush.bf16.msra.mxu0 %v4660_v32  ;;  %v6516_v37 = vld [vmem:[#allocation5 + $0x7f0] sm:$0xf]  ;;  %v6518_v34 = vld [vmem:[#allocation5 + $0x7f4] sm:$0xf0] }
 0x128   : > { %v6491_v51 = vld [vmem:[%s5768_s30 + $0x120] sm:$0xff]  ;;  %v2198_v13 = vsel %vm2162_vm6, %v2139_v54, %v2197_v44  ;;  %3702 = vmatpush.bf16.msra.mxu1 %v4724_v16  ;;  %3715 = vmatpush.bf16.msra.mxu2 %v4788_v47  ;;  %v376_v54 = vunpack.c.l.bf16 %v6457_v60  ;;  %v392_v47 = vunpack.c.l.bf16 %v6485_v5  ;;  %v408_v49 = vunpack.c.l.bf16 %v6488_v36 }
 0x129   : > { %v6507_v59 = vld [vmem:[%s5768_s30 + $0x160] sm:$0xff]  ;;  %v6538_v21 = vpack.c.b16 %v2198_v13, %v2198_v13  ;;  %3728 = vmatpush.bf16.msra.mxu3 %v4852_v26  ;;  %v424_v26 = vunpack.c.l.bf16 %v6491_v51 }
 0x12a   : > { %v6521_v17 = vld [vmem:[%s5768_s30 + $0x1a0] sm:$0xff]  ;;  %v440_v56 = vunpack.c.l.bf16 %v6507_v59  ;;  %v664_v29 = vadd.f32 %v376_v54, %v360_v41 }
 0x12b   : > { %v6529_v8 = vld [vmem:[%s5768_s30 + $0x1e0] sm:$0xff]  ;;  %7357 = vst [vmem:[#allocation17_spill] sm:$0xff] %v6538_v21  ;;  %3654 = vmatmul.bf16.vlgmr.msrb.gmra.mxu1 %v6538_v21  ;;  %3690 = vmatpush.bf16.msra.mxu0 %v4652_v38  ;;  %v456_v12 = vunpack.c.l.bf16 %v6521_v17 }
 0x12c   : > { %v6532_v52 = vld [vmem:[%s5768_s30 + $0x220] sm:$0xff]  ;;  %v472_v44 = vunpack.c.l.bf16 %v6529_v8  ;;  %3703 = vmatpush.bf16.msra.mxu1 %v4716_v3  ;;  %3716 = vmatpush.bf16.msra.mxu2 %v4780_v25  ;;  %v776_v3 = vadd.f32 %v408_v49, %v392_v47  ;;  %v888_v25 = vadd.f32 %v440_v56, %v424_v26  ;;  %v665_v30 = vrot.slane %v664_v29, 4  ;;  %v6593_v49 = vld [vmem:[%s5768_s30 + $0x28] sm:$0xff] }
 0x12d   : > { %v6535_v10 = vld [vmem:[%s5768_s30 + $0x260] sm:$0xff]  ;;  %v488_v13 = vunpack.c.l.bf16 %v6532_v52  ;;  %3729 = vmatpush.bf16.msra.mxu3 %v4844_v22  ;;  %v7361_v22 = vor.u32 %v6424_v2, %v6422_v57  ;;  %v7363_v57 = vor.u32 %v6441_v33, %v6439_v35  ;;  %v7366_v35 = vor.u32 %v6468_v53, %v6466_v46 }
 0x12e   : > { %v6547_v7 = vld [vmem:[%s5768_s30 + $0x2a0] sm:$0xff]  ;;  %v504_v6 = vunpack.c.l.bf16 %v6535_v10  ;;  %v1000_v28 = vadd.f32 %v472_v44, %v456_v12  ;;  %v362_v53 = vunpack.c.l.bf16 %v6593_v49 }
 0x12f   : > { %v6550_v27 = vld [vmem:[%s5768_s30 + $0x2e0] sm:$0xff]  ;;  %v520_v62 = vunpack.c.l.bf16 %v6547_v7  ;;  %3691 = vmatpush.bf16.msra.mxu0 %v4644_v0 }
 0x130   : > { %v6553_v24 = vld [vmem:[%s5768_s30 + $0x320] sm:$0xff]  ;;  %v536_v14 = vunpack.c.l.bf16 %v6550_v27  ;;  %v1112_v23 = vadd.f32 %v504_v6, %v488_v13  ;;  %3704 = vmatpush.bf16.msra.mxu1 %v7361_v22  ;;  %v1001_v41 = vrot.slane %v1000_v28, 4  ;;  %v666_v6 = vadd.f32 %v665_v30, %v664_v29 }
 0x131   : > { %v6558_v11 = vld [vmem:[%s5768_s30 + $0x360] sm:$0xff]  ;;  %v552_v31 = vunpack.c.l.bf16 %v6553_v24  ;;  %3730 = vmatpush.bf16.msra.mxu3 %v4836_v40  ;;  %v7364_v30 = vor.u32 %v6452_v15, %v6450_v42  ;;  %v7365_v40 = vor.u32 %v6464_v20, %v6454_v39  ;;  %v7368_v39 = vor.u32 %v6500_v43, %v6482_v1 }
 0x132   : > { %7358 = vst [vmem:[#allocation18_spill] sm:$0xff] %v6558_v11  ;;  %v6561_v32 = vld [vmem:[%s5768_s30 + $0x3a0] sm:$0xff]  ;;  %v568_v38 = vunpack.c.l.bf16 %v6558_v11  ;;  %v1224_v21 = vadd.f32 %v536_v14, %v520_v62  ;;  %v889_v11 = vrot.slane %v888_v25, 4  ;;  %v1113_v54 = vrot.slane %v1112_v23, 4 }
 0x133   : > { %7359 = vst [vmem:[#allocation19_spill] sm:$0xff] %v6561_v32  ;;  %v6564_v16 = vld [vmem:[%s5768_s30 + $0x3e0] sm:$0xff]  ;;  %v584_v63 = vunpack.c.l.bf16 %v6561_v32  ;;  %v7362_v32 = vor.u32 %v6428_v18, %v6426_v48  ;;  %3692 = vmatpush.bf16.msra.mxu0 %v7363_v57  ;;  %v667_v2 = vrot.slane %v666_v6, 2  ;;  %v7369_v20 = vor.u32 %v6504_v55, %v6502_v61 }
 0x134   : > { %7360 = vst [vmem:[#allocation22_spill] sm:$0xff] %v6564_v16  ;;  %v600_v9 = vunpack.c.l.bf16 %v6564_v16  ;;  %v1336_v45 = vadd.f32 %v568_v38, %v552_v31  ;;  %v777_v16 = vrot.slane %v776_v3, 4  ;;  %v1225_v0 = vrot.slane %v1224_v21, 4  ;;  %3705 = vmatpush.bf16.msra.mxu1 %v7364_v30 }
 0x135   : > { %3717 = vmatpush.bf16.msra.mxu2 %v7362_v32  ;;  %v1114_v62 = vadd.f32 %v1113_v54, %v1112_v23  ;;  %3731 = vmatpush.bf16.msra.mxu3 %v7366_v35  ;;  %v6633_v35 = vld [vmem:[%s5768_s30 + $0x1a8] sm:$0xff] }
 0x136   : > { %v1448_v19 = vadd.f32 %v600_v9, %v584_v63  ;;  %v1337_v47 = vrot.slane %v1336_v45, 4  ;;  %v778_v31 = vadd.f32 %v777_v16, %v776_v3  ;;  %v890_v9 = vadd.f32 %v889_v11, %v888_v25 }
 0x137   : > { %v1002_v63 = vadd.f32 %v1001_v41, %v1000_v28  ;;  %v1226_v48 = vadd.f32 %v1225_v0, %v1224_v21  ;;  %v1115_v11 = vrot.slane %v1114_v62, 2 }
 0x138   : > { %v1449_v14 = vrot.slane %v1448_v19, 4  ;;  %v1338_v18 = vadd.f32 %v1337_v47, %v1336_v45  ;;  %v779_v28 = vrot.slane %v778_v31, 2  ;;  %v891_v23 = vrot.slane %v890_v9, 2  ;;  %3750 = vmatpush.bf16.msrb.mxu1 %v7368_v39  ;;  %v6642_v39 = vld [vmem:[%s5768_s30 + $0x268] sm:$0xff] }
 0x139   : > { %3718 = vmatpush.bf16.msra.mxu2 %v7365_v40  ;;  %v1003_v29 = vrot.slane %v1002_v63, 2  ;;  %v668_v45 = vadd.f32 %v667_v2, %v666_v6  ;;  %v1227_v33 = vrot.slane %v1226_v48, 2  ;;  %v1116_v26 = vadd.f32 %v1115_v11, %v1114_v62  ;;  %v6630_v11 = vld [vmem:[%s5768_s30 + $0x168] sm:$0xff] }
 0x13a   : > { %v1450_v32 = vadd.f32 %v1449_v14, %v1448_v19  ;;  %v7367_v19 = vor.u32 %v6480_v50, %v6478_v58  ;;  %v1339_v42 = vrot.slane %v1338_v18, 2  ;;  %v780_v21 = vadd.f32 %v779_v28, %v778_v31 }
 0x13b   : > { %v892_v16 = vadd.f32 %v891_v23, %v890_v9  ;;  %v1004_v46 = vadd.f32 %v1003_v29, %v1002_v63  ;;  %v7370_v58 = vor.u32 %v6518_v34, %v6516_v37  ;;  %v669_v50 = vrot.slane %v668_v45, 1  ;;  %v6618_v63 = vld [vmem:[%s5768_s30 + $0x68] sm:$0xff] }
 0x13c   : > { %3737 = vmatpush.bf16.msrb.mxu0 %v7367_v19  ;;  %v1451_v15 = vrot.slane %v1450_v32, 2  ;;  %v1228_v56 = vadd.f32 %v1227_v33, %v1226_v48  ;;  %v1340_v12 = vadd.f32 %v1339_v42, %v1338_v18  ;;  %v781_v44 = vrot.slane %v780_v21, 1  ;;  %v6621_v18 = vld [vmem:[%s5768_s30 + $0xa8] sm:$0xff] }
 0x13d   : > { %3763 = vmatpush.bf16.msrb.mxu2 %v7369_v20  ;;  %3776 = vmatpush.bf16.msrb.mxu3 %v7370_v58  ;;  %v893_v1 = vrot.slane %v892_v16, 1  ;;  %v1005_v43 = vrot.slane %v1004_v46, 1  ;;  %v670_v38 = vadd.f32 %v669_v50, %v668_v45  ;;  %v1117_v61 = vrot.slane %v1116_v26, 1  ;;  %v6627_v29 = vld [vmem:[%s5768_s30 + $0x128] sm:$0xff] }
 0x13e   : > { %v1452_v13 = vadd.f32 %v1451_v15, %v1450_v32  ;;  %v1229_v55 = vrot.slane %v1228_v56, 1  ;;  %v1341_v3 = vrot.slane %v1340_v12, 1  ;;  %v782_v25 = vadd.f32 %v781_v44, %v780_v21  ;;  %v6624_v32 = vld [vmem:[%s5768_s30 + $0xe8] sm:$0xff] }
 0x13f   : > { %v894_v22 = vadd.f32 %v893_v1, %v892_v16  ;;  %v1006_v41 = vadd.f32 %v1005_v43, %v1004_v46  ;;  %v1118_v34 = vadd.f32 %v1117_v61, %v1116_v26  ;;  %v1512_v0 = vpack.c.bf16 %v670_v38, %v670_v38  ;;  %v6636_v42 = vld [vmem:[%s5768_s30 + $0x1e8] sm:$0xff] }
 0x140   : > { %v1453_v37 = vrot.slane %v1452_v13, 1  ;;  %v1230_v54 = vadd.f32 %v1229_v55, %v1228_v56  ;;  %v1342_v6 = vadd.f32 %v1341_v3, %v1340_v12  ;;  %v1528_v14 = vpack.c.bf16 %v782_v25, %v782_v25  ;;  %v6639_v15 = vld [vmem:[%s5768_s30 + $0x228] sm:$0xff] }
 0x141   : > { %v1544_v31 = vpack.c.bf16 %v894_v22, %v894_v22  ;;  %v1560_v9 = vpack.c.bf16 %v1006_v41, %v1006_v41  ;;  %v1576_v62 = vpack.c.bf16 %v1118_v34, %v1118_v34  ;;  %v2030_v48 = vunpack.c.l.b16 %v1512_v0  ;;  %v6647_v46 = vld [vmem:[%s5768_s30 + $0x2a8] sm:$0xff] }
 0x142   : > { %v1454_v47 = vadd.f32 %v1453_v37, %v1452_v13  ;;  %v1592_v57 = vpack.c.bf16 %v1230_v54, %v1230_v54  ;;  %v1608_v2 = vpack.c.bf16 %v1342_v6, %v1342_v6  ;;  %v2046_v40 = vunpack.c.l.b16 %v1528_v14  ;;  %v6650_v58 = vld [vmem:[%s5768_s30 + $0x2e8] sm:$0xff] }
 0x143   : > { %v2062_v28 = vunpack.c.l.b16 %v1544_v31  ;;  %v2078_v23 = vunpack.c.l.b16 %v1560_v9  ;;  %v2094_v19 = vunpack.c.l.b16 %v1576_v62  ;;  %v378_v20 = vunpack.c.l.bf16 %v6618_v63  ;;  %v6653_v50 = vld [vmem:[%s5768_s30 + $0x328] sm:$0xff] }
 0x144   : > { %v1624_v30 = vpack.c.bf16 %v1454_v47, %v1454_v47  ;;  %v2110_v45 = vunpack.c.l.b16 %v1592_v57  ;;  %v2126_v33 = vunpack.c.l.b16 %v1608_v2  ;;  %v2213_v16 = vsel %vm2150_vm0, %v2046_v40, %v2030_v48  ;;  %v6659_v44 = vld [vmem:[%s5768_s30 + $0x368] sm:$0xff] }
 0x145   : > { %v394_v26 = vunpack.c.l.bf16 %v6621_v18  ;;  %v410_v56 = vunpack.c.l.bf16 %v6624_v32  ;;  %v2214_v12 = vsel %vm2152_vm1, %v2062_v28, %v2213_v16  ;;  %v6662_v1 = vld [vmem:[%s5768_s30 + $0x3a8] sm:$0xff]  ;;  %v426_v13 = vunpack.c.l.bf16 %v6627_v29 }
 0x146   : > { %v2142_v21 = vunpack.c.l.b16 %v1624_v30  ;;  %v6665_v43 = vld [vmem:[%s5768_s30 + $0x3e8] sm:$0xff]  ;;  %v442_v38 = vunpack.c.l.bf16 %v6630_v11  ;;  %v458_v61 = vunpack.c.l.bf16 %v6633_v35  ;;  %v2215_v55 = vsel %vm2154_vm2, %v2078_v23, %v2214_v12 }
 0x147   : > { %7371 = vst [vmem:[#allocation23_spill] sm:$0xff] %v6665_v43  ;;  %v474_v3 = vunpack.c.l.bf16 %v6636_v42  ;;  %v490_v25 = vunpack.c.l.bf16 %v6639_v15  ;;  %v506_v22 = vunpack.c.l.bf16 %v6642_v39  ;;  %v2216_v41 = vsel %vm2156_vm3, %v2094_v19, %v2215_v55 }
 0x148   : > { %v522_v37 = vunpack.c.l.bf16 %v6647_v46  ;;  %v538_v34 = vunpack.c.l.bf16 %v6650_v58  ;;  %v554_v54 = vunpack.c.l.bf16 %v6653_v50  ;;  %v2217_v6 = vsel %vm2158_vm4, %v2110_v45, %v2216_v41 }
 0x149   : > { %v570_v0 = vunpack.c.l.bf16 %v6659_v44  ;;  %v586_v47 = vunpack.c.l.bf16 %v6662_v1  ;;  %v602_v14 = vunpack.c.l.bf16 %v6665_v43  ;;  %v2218_v31 = vsel %vm2160_vm5, %v2126_v33, %v2217_v6 }
 0x14a   : > { %v678_v9 = vadd.f32 %v378_v20, %v362_v53  ;;  %v790_v62 = vadd.f32 %v410_v56, %v394_v26  ;;  %v902_v57 = vadd.f32 %v442_v38, %v426_v13  ;;  %v2219_v2 = vsel %vm2162_vm6, %v2142_v21, %v2218_v31 }
 0x14b   : > { %v1014_v48 = vadd.f32 %v474_v3, %v458_v61  ;;  %v1126_v30 = vadd.f32 %v506_v22, %v490_v25  ;;  %v1238_v40 = vadd.f32 %v538_v34, %v522_v37  ;;  %v6686_v28 = vpack.c.b16 %v2219_v2, %v2219_v2 }
 0x14c   : > { %v679_v23 = vrot.slane %v678_v9, 4  ;;  %v791_v19 = vrot.slane %v790_v62, 4  ;;  %v903_v45 = vrot.slane %v902_v57, 4  ;;  %v1350_v41 = vadd.f32 %v570_v0, %v554_v54 }
 0x14d   : > { %7372 = vst [vmem:[#allocation24_spill] sm:$0xff] %v6686_v28  ;;  %v1015_v16 = vrot.slane %v1014_v48, 4  ;;  %v1127_v12 = vrot.slane %v1126_v30, 4  ;;  %v1239_v55 = vrot.slane %v1238_v40, 4  ;;  %3693 = vmatmul.bf16.vlgmr.msra.gmra.mxu0 %v6686_v28  ;;  %v1462_v26 = vadd.f32 %v602_v14, %v586_v47 }
 0x14e   : > { %v680_v33 = vadd.f32 %v679_v23, %v678_v9  ;;  %v792_v53 = vadd.f32 %v791_v19, %v790_v62  ;;  %v904_v20 = vadd.f32 %v903_v45, %v902_v57  ;;  %v1351_v38 = vrot.slane %v1350_v41, 4 }
 0x14f   : > { %v1016_v56 = vadd.f32 %v1015_v16, %v1014_v48  ;;  %v1128_v21 = vadd.f32 %v1127_v12, %v1126_v30  ;;  %v1240_v13 = vadd.f32 %v1239_v55, %v1238_v40  ;;  %v1463_v22 = vrot.slane %v1462_v26, 4 }
 0x150   : > { %v681_v61 = vrot.slane %v680_v33, 2  ;;  %v793_v3 = vrot.slane %v792_v53, 2  ;;  %v905_v25 = vrot.slane %v904_v20, 2  ;;  %v1352_v31 = vadd.f32 %v1351_v38, %v1350_v41 }
 0x151   : > { %v1017_v37 = vrot.slane %v1016_v56, 2  ;;  %v1129_v34 = vrot.slane %v1128_v21, 2  ;;  %v1241_v6 = vrot.slane %v1240_v13, 2  ;;  %v1464_v28 = vadd.f32 %v1463_v22, %v1462_v26 }
 0x152   : > { %v682_v2 = vadd.f32 %v681_v61, %v680_v33  ;;  %v794_v54 = vadd.f32 %v793_v3, %v792_v53  ;;  %v906_v0 = vadd.f32 %v905_v25, %v904_v20  ;;  %v1353_v47 = vrot.slane %v1352_v31, 2 }
 0x153   : > { %v1018_v9 = vadd.f32 %v1017_v37, %v1016_v56  ;;  %v1130_v62 = vadd.f32 %v1129_v34, %v1128_v21  ;;  %v1242_v57 = vadd.f32 %v1241_v6, %v1240_v13  ;;  %v1465_v40 = vrot.slane %v1464_v28, 2 }
 0x154   : > { %v683_v14 = vrot.slane %v682_v2, 1  ;;  %v795_v48 = vrot.slane %v794_v54, 1  ;;  %v907_v30 = vrot.slane %v906_v0, 1  ;;  %v1354_v16 = vadd.f32 %v1353_v47, %v1352_v31 }
 0x155   : > { %v1019_v23 = vrot.slane %v1018_v9, 1  ;;  %v1131_v19 = vrot.slane %v1130_v62, 1  ;;  %v1243_v45 = vrot.slane %v1242_v57, 1  ;;  %v1466_v41 = vadd.f32 %v1465_v40, %v1464_v28 }
 0x156   : > { %v684_v12 = vadd.f32 %v683_v14, %v682_v2  ;;  %v796_v55 = vadd.f32 %v795_v48, %v794_v54  ;;  %v908_v43 = vadd.f32 %v907_v30, %v906_v0  ;;  %v1355_v26 = vrot.slane %v1354_v16, 1 }
 0x157   : > { %v1020_v33 = vadd.f32 %v1019_v23, %v1018_v9  ;;  %v1132_v53 = vadd.f32 %v1131_v19, %v1130_v62  ;;  %v1244_v20 = vadd.f32 %v1243_v45, %v1242_v57  ;;  %v1467_v56 = vrot.slane %v1466_v41, 1 }
 0x158   : > { %v1514_v21 = vpack.c.bf16 %v684_v12, %v684_v12  ;;  %v1530_v13 = vpack.c.bf16 %v796_v55, %v796_v55  ;;  %v1546_v38 = vpack.c.bf16 %v908_v43, %v908_v43  ;;  %v1356_v61 = vadd.f32 %v1355_v26, %v1354_v16  ;;  %v7375_v26 = vld [vmem:[#allocation22_spill] sm:$0xff] }
 0x159   : > { %v1562_v3 = vpack.c.bf16 %v1020_v33, %v1020_v33  ;;  %v1578_v25 = vpack.c.bf16 %v1132_v53, %v1132_v53  ;;  %v1594_v22 = vpack.c.bf16 %v1244_v20, %v1244_v20  ;;  %v1468_v37 = vadd.f32 %v1467_v56, %v1466_v41  ;;  %v7373_v33 = vld [vmem:[#allocation18_spill] sm:$0xff]  ;;  %v7374_v20 = vld [vmem:[#allocation19_spill] sm:$0xff] }
 0x15a   : > { %v2032_v34 = vunpack.c.l.b16 %v1514_v21  ;;  %v2048_v6 = vunpack.c.l.b16 %v1530_v13  ;;  %v2064_v31 = vunpack.c.l.b16 %v1546_v38  ;;  %v1610_v2 = vpack.c.bf16 %v1356_v61, %v1356_v61 }
 0x15b   : > { %v2080_v54 = vunpack.c.l.b16 %v1562_v3  ;;  %v2096_v0 = vunpack.c.l.b16 %v1578_v25  ;;  %v2112_v28 = vunpack.c.l.b16 %v1594_v22  ;;  %v1626_v9 = vpack.c.bf16 %v1468_v37, %v1468_v37 }
 0x15c   : > { %v2227_v62 = vsel %vm2150_vm0, %v2048_v6, %v2032_v34  ;;  %v361_v57 = vunpack.c.h.bf16 %v6404_v4  ;;  %v377_v47 = vunpack.c.h.bf16 %v6457_v60  ;;  %v2128_v43 = vunpack.c.l.b16 %v1610_v2 }
 0x15d   : > { %v2228_v14 = vsel %vm2152_vm1, %v2064_v31, %v2227_v62  ;;  %v393_v48 = vunpack.c.h.bf16 %v6485_v5  ;;  %v409_v30 = vunpack.c.h.bf16 %v6488_v36  ;;  %v2144_v40 = vunpack.c.l.b16 %v1626_v9 }
 0x15e   : > { %v2229_v23 = vsel %vm2154_vm2, %v2080_v54, %v2228_v14  ;;  %v425_v19 = vunpack.c.h.bf16 %v6491_v51  ;;  %v441_v45 = vunpack.c.h.bf16 %v6507_v59  ;;  %v457_v4 = vunpack.c.h.bf16 %v6521_v17 }
 0x15f   : > { %v2230_v16 = vsel %vm2156_vm3, %v2096_v0, %v2229_v23  ;;  %v473_v60 = vunpack.c.h.bf16 %v6529_v8  ;;  %v489_v12 = vunpack.c.h.bf16 %v6532_v52  ;;  %v505_v5 = vunpack.c.h.bf16 %v6535_v10 }
 0x160   : > { %v2231_v55 = vsel %vm2158_vm4, %v2112_v28, %v2230_v16  ;;  %v521_v36 = vunpack.c.h.bf16 %v6547_v7  ;;  %v537_v41 = vunpack.c.h.bf16 %v6550_v27  ;;  %v553_v59 = vunpack.c.h.bf16 %v6553_v24 }
 0x161   : > { %v2232_v51 = vsel %vm2160_vm5, %v2128_v43, %v2231_v55  ;;  %v569_v53 = vunpack.c.h.bf16 %v7373_v33  ;;  %v585_v17 = vunpack.c.h.bf16 %v7374_v20  ;;  %v601_v52 = vunpack.c.h.bf16 %v7375_v26 }
 0x162   : > { %v2233_v8 = vsel %vm2162_vm6, %v2144_v40, %v2232_v51  ;;  %v671_v56 = vadd.f32 %v377_v47, %v361_v57  ;;  %v783_v21 = vadd.f32 %v409_v30, %v393_v48  ;;  %v895_v10 = vadd.f32 %v441_v45, %v425_v19 }
 0x163   : > { %v6712_v13 = vpack.c.b16 %v2233_v8, %v2233_v8  ;;  %v1007_v7 = vadd.f32 %v473_v60, %v457_v4  ;;  %v1119_v38 = vadd.f32 %v505_v5, %v489_v12  ;;  %v1231_v3 = vadd.f32 %v537_v41, %v521_v36 }
 0x164   : > { %v672_v27 = vrot.slane %v671_v56, 4  ;;  %v784_v61 = vrot.slane %v783_v21, 4  ;;  %v1343_v25 = vadd.f32 %v569_v53, %v553_v59  ;;  %v896_v24 = vrot.slane %v895_v10, 4 }
 0x165   : > { %7376 = vst [vmem:[#allocation18_spill] sm:$0xff] %v6712_v13  ;;  %3719 = vmatmul.bf16.vlgmr.msra.gmra.mxu2 %v6712_v13  ;;  %v1008_v22 = vrot.slane %v1007_v7, 4  ;;  %v1120_v37 = vrot.slane %v1119_v38, 4  ;;  %v1455_v34 = vadd.f32 %v601_v52, %v585_v17  ;;  %v1232_v2 = vrot.slane %v1231_v3, 4 }
 0x166   : > { %v673_v6 = vadd.f32 %v672_v27, %v671_v56  ;;  %v785_v31 = vadd.f32 %v784_v61, %v783_v21  ;;  %v1344_v54 = vrot.slane %v1343_v25, 4  ;;  %v897_v0 = vadd.f32 %v896_v24, %v895_v10 }
 0x167   : > { %v1009_v28 = vadd.f32 %v1008_v22, %v1007_v7  ;;  %v1121_v9 = vadd.f32 %v1120_v37, %v1119_v38  ;;  %v1456_v62 = vrot.slane %v1455_v34, 4  ;;  %v1233_v43 = vadd.f32 %v1232_v2, %v1231_v3 }
 0x168   : > { %v674_v57 = vrot.slane %v673_v6, 2  ;;  %v786_v47 = vrot.slane %v785_v31, 2  ;;  %v1345_v14 = vadd.f32 %v1344_v54, %v1343_v25  ;;  %v898_v48 = vrot.slane %v897_v0, 2 }
 0x169   : > { %v1010_v30 = vrot.slane %v1009_v28, 2  ;;  %v1122_v40 = vrot.slane %v1121_v9, 2  ;;  %v1457_v23 = vadd.f32 %v1456_v62, %v1455_v34  ;;  %v1234_v16 = vrot.slane %v1233_v43, 2 }
 0x16a   : > { %v675_v19 = vadd.f32 %v674_v57, %v673_v6  ;;  %v787_v45 = vadd.f32 %v786_v47, %v785_v31  ;;  %v1346_v4 = vrot.slane %v1345_v14, 2  ;;  %v899_v60 = vadd.f32 %v898_v48, %v897_v0 }
 0x16b   : > { %v1011_v12 = vadd.f32 %v1010_v30, %v1009_v28  ;;  %v1123_v55 = vadd.f32 %v1122_v40, %v1121_v9  ;;  %v1458_v5 = vrot.slane %v1457_v23, 2  ;;  %v1235_v51 = vadd.f32 %v1234_v16, %v1233_v43 }
 0x16c   : > { %v676_v36 = vrot.slane %v675_v19, 1  ;;  %v788_v41 = vrot.slane %v787_v45, 1  ;;  %v1347_v59 = vadd.f32 %v1346_v4, %v1345_v14  ;;  %v900_v33 = vrot.slane %v899_v60, 1 }
 0x16d   : > { %v1012_v53 = vrot.slane %v1011_v12, 1  ;;  %v1124_v20 = vrot.slane %v1123_v55, 1  ;;  %v1459_v17 = vadd.f32 %v1458_v5, %v1457_v23  ;;  %v1236_v52 = vrot.slane %v1235_v51, 1 }
 0x16e   : > { %v677_v8 = vadd.f32 %v676_v36, %v675_v19  ;;  %v789_v26 = vadd.f32 %v788_v41, %v787_v45  ;;  %v1348_v56 = vrot.slane %v1347_v59, 1  ;;  %v901_v21 = vadd.f32 %v900_v33, %v899_v60  ;;  %v7377_v41 = vld [vmem:[#allocation23_spill] sm:$0xff] }
 0x16f   : > { %v1013_v10 = vadd.f32 %v1012_v53, %v1011_v12  ;;  %v1125_v7 = vadd.f32 %v1124_v20, %v1123_v55  ;;  %v1460_v38 = vrot.slane %v1459_v17, 1  ;;  %v1237_v27 = vadd.f32 %v1236_v52, %v1235_v51 }
 0x170   : > { %v1349_v61 = vadd.f32 %v1348_v56, %v1347_v59  ;;  %v1513_v3 = vpack.c.bf16 %v677_v8, %v677_v8  ;;  %v1529_v25 = vpack.c.bf16 %v789_v26, %v789_v26  ;;  %v1545_v22 = vpack.c.bf16 %v901_v21, %v901_v21 }
 0x171   : > { %v1461_v24 = vadd.f32 %v1460_v38, %v1459_v17  ;;  %v1561_v37 = vpack.c.bf16 %v1013_v10, %v1013_v10  ;;  %v1577_v34 = vpack.c.bf16 %v1125_v7, %v1125_v7  ;;  %v1593_v6 = vpack.c.bf16 %v1237_v27, %v1237_v27 }
 0x172   : > { %v1609_v31 = vpack.c.bf16 %v1349_v61, %v1349_v61  ;;  %v2031_v2 = vunpack.c.l.b16 %v1513_v3  ;;  %v2047_v54 = vunpack.c.l.b16 %v1529_v25  ;;  %v2063_v28 = vunpack.c.l.b16 %v1545_v22 }
 0x173   : > { %v1625_v0 = vpack.c.bf16 %v1461_v24, %v1461_v24  ;;  %v2079_v9 = vunpack.c.l.b16 %v1561_v37  ;;  %v2095_v62 = vunpack.c.l.b16 %v1577_v34  ;;  %v2111_v57 = vunpack.c.l.b16 %v1593_v6 }
 0x174   : > { %v2127_v47 = vunpack.c.l.b16 %v1609_v31  ;;  %v2220_v43 = vsel %vm2150_vm0, %v2047_v54, %v2031_v2  ;;  %v363_v14 = vunpack.c.h.bf16 %v6593_v49  ;;  %v379_v40 = vunpack.c.h.bf16 %v6618_v63 }
 0x175   : > { %v2143_v48 = vunpack.c.l.b16 %v1625_v0  ;;  %v2221_v30 = vsel %vm2152_vm1, %v2063_v28, %v2220_v43  ;;  %v395_v23 = vunpack.c.h.bf16 %v6621_v18  ;;  %v411_v45 = vunpack.c.h.bf16 %v6624_v32 }
 0x176   : > { %v2222_v19 = vsel %vm2154_vm2, %v2079_v9, %v2221_v30  ;;  %v427_v16 = vunpack.c.h.bf16 %v6627_v29  ;;  %v443_v4 = vunpack.c.h.bf16 %v6630_v11  ;;  %v459_v12 = vunpack.c.h.bf16 %v6633_v35 }
 0x177   : > { %v2223_v60 = vsel %vm2156_vm3, %v2095_v62, %v2222_v19  ;;  %v475_v49 = vunpack.c.h.bf16 %v6636_v42  ;;  %v491_v55 = vunpack.c.h.bf16 %v6639_v15  ;;  %v507_v18 = vunpack.c.h.bf16 %v6642_v39 }
 0x178   : > { %v2224_v63 = vsel %vm2158_vm4, %v2111_v57, %v2223_v60  ;;  %v523_v5 = vunpack.c.h.bf16 %v6647_v46  ;;  %v539_v32 = vunpack.c.h.bf16 %v6650_v58  ;;  %v555_v11 = vunpack.c.h.bf16 %v6653_v50 }
 0x179   : > { %v2225_v29 = vsel %vm2160_vm5, %v2127_v47, %v2224_v63  ;;  %v571_v36 = vunpack.c.h.bf16 %v6659_v44  ;;  %v587_v35 = vunpack.c.h.bf16 %v6662_v1  ;;  %v603_v15 = vunpack.c.h.bf16 %v7377_v41  ;;  %v6743_v41 = vld [vmem:[#allocation5 + $0x6e4] sm:$0xf0] }
 0x17a   : > { %v2226_v42 = vsel %vm2162_vm6, %v2143_v48, %v2225_v29  ;;  %v685_v51 = vadd.f32 %v379_v40, %v363_v14  ;;  %v797_v59 = vadd.f32 %v411_v45, %v395_v23  ;;  %v909_v39 = vadd.f32 %v443_v4, %v427_v16 }
 0x17b   : > { %v6738_v33 = vpack.c.b16 %v2226_v42, %v2226_v42  ;;  %v1021_v46 = vadd.f32 %v475_v49, %v459_v12  ;;  %v1133_v53 = vadd.f32 %v507_v18, %v491_v55  ;;  %v1245_v17 = vadd.f32 %v539_v32, %v523_v5  ;;  %v4939_v5 = vld [vmem:[#allocation5 + $0x660] sm:$0xf]  ;;  %v5357_v32 = vld [vmem:[#allocation5 + $0x664] sm:$0xf0] }
 0x17c   : > { %v686_v58 = vrot.slane %v685_v51, 4  ;;  %v798_v20 = vrot.slane %v797_v59, 4  ;;  %v1357_v8 = vadd.f32 %v571_v36, %v555_v11  ;;  %v910_v50 = vrot.slane %v909_v39, 4  ;;  %v6741_v42 = vld [vmem:[#allocation5 + $0x6e0] sm:$0xf] }
 0x17d   : > { %7378 = vst [vmem:[#allocation19_spill] sm:$0xff] %v6738_v33  ;;  %3706 = vmatmul.bf16.vlgmr.msra.gmra.mxu1 %v6738_v33  ;;  %v1022_v44 = vrot.slane %v1021_v46, 4  ;;  %v1134_v1 = vrot.slane %v1133_v53, 4  ;;  %v1469_v26 = vadd.f32 %v603_v15, %v587_v35  ;;  %v1246_v21 = vrot.slane %v1245_v17, 4  ;;  %v6745_v15 = vld [vmem:[#allocation5 + $0x760] sm:$0xf] }
 0x17e   : > { %v687_v52 = vadd.f32 %v686_v58, %v685_v51  ;;  %v799_v56 = vadd.f32 %v798_v20, %v797_v59  ;;  %v1358_v10 = vrot.slane %v1357_v8, 4  ;;  %v911_v7 = vadd.f32 %v910_v50, %v909_v39  ;;  %v5389_v51 = vld [vmem:[#allocation5 + $0x764] sm:$0xf0]  ;;  %v6747_v58 = vld [vmem:[#allocation5 + $0x7e0] sm:$0xf] }
 0x17f   : > { %v1023_v38 = vadd.f32 %v1022_v44, %v1021_v46  ;;  %v1135_v27 = vadd.f32 %v1134_v1, %v1133_v53  ;;  %v1470_v61 = vrot.slane %v1469_v26, 4  ;;  %v1247_v24 = vadd.f32 %v1246_v21, %v1245_v17  ;;  %v6749_v20 = vld [vmem:[#allocation5 + $0x7e4] sm:$0xf0]  ;;  %v6751_v17 = vld [vmem:[#allocation5 + $0x650] sm:$0xf] }
 0x180   : > { %v688_v3 = vrot.slane %v687_v52, 2  ;;  %v800_v25 = vrot.slane %v799_v56, 2  ;;  %v1359_v22 = vadd.f32 %v1358_v10, %v1357_v8  ;;  %v912_v37 = vrot.slane %v911_v7, 2  ;;  %v6753_v8 = vld [vmem:[#allocation5 + $0x654] sm:$0xf0] }
 0x181   : > { %v1024_v34 = vrot.slane %v1023_v38, 2  ;;  %v1136_v6 = vrot.slane %v1135_v27, 2  ;;  %v1471_v31 = vadd.f32 %v1470_v61, %v1469_v26  ;;  %v1248_v0 = vrot.slane %v1247_v24, 2  ;;  %v6755_v50 = vld [vmem:[#allocation5 + $0x6d0] sm:$0xf] }
 0x182   : > { %v689_v2 = vadd.f32 %v688_v3, %v687_v52  ;;  %v801_v54 = vadd.f32 %v800_v25, %v799_v56  ;;  %v1360_v28 = vrot.slane %v1359_v22, 2  ;;  %v913_v9 = vadd.f32 %v912_v37, %v911_v7  ;;  %v6757_v44 = vld [vmem:[#allocation5 + $0x6d4] sm:$0xf0]  ;;  %v6759_v21 = vld [vmem:[#allocation5 + $0x750] sm:$0xf] }
 0x183   : > { %v1025_v62 = vadd.f32 %v1024_v34, %v1023_v38  ;;  %v1137_v57 = vadd.f32 %v1136_v6, %v1135_v27  ;;  %v1472_v47 = vrot.slane %v1471_v31, 2  ;;  %v1249_v48 = vadd.f32 %v1248_v0, %v1247_v24  ;;  %v6761_v10 = vld [vmem:[#allocation5 + $0x754] sm:$0xf0]  ;;  %v6763_v7 = vld [vmem:[#allocation5 + $0x7d0] sm:$0xf] }
 0x184   : > { %v690_v43 = vrot.slane %v689_v2, 1  ;;  %v802_v14 = vrot.slane %v801_v54, 1  ;;  %v1361_v30 = vadd.f32 %v1360_v28, %v1359_v22  ;;  %v914_v40 = vrot.slane %v913_v9, 1  ;;  %v6765_v38 = vld [vmem:[#allocation5 + $0x7d4] sm:$0xf0]  ;;  %v6768_v27 = vld [vmem:[%s5768_s30 + $0x30] sm:$0xff] }
 0x185   : > { %v1026_v23 = vrot.slane %v1025_v62, 1  ;;  %v1138_v19 = vrot.slane %v1137_v57, 1  ;;  %v1473_v45 = vadd.f32 %v1472_v47, %v1471_v31  ;;  %v1250_v60 = vrot.slane %v1249_v48, 1  ;;  %v6770_v22 = vld [vmem:[#allocation5 + $0x640] sm:$0xf] }
 0x186   : > { %v691_v16 = vadd.f32 %v690_v43, %v689_v2  ;;  %v803_v4 = vadd.f32 %v802_v14, %v801_v54  ;;  %v1362_v12 = vrot.slane %v1361_v30, 1  ;;  %v915_v49 = vadd.f32 %v914_v40, %v913_v9  ;;  %v6772_v37 = vld [vmem:[#allocation5 + $0x644] sm:$0xf0]  ;;  %v6774_v34 = vld [vmem:[#allocation5 + $0x6c0] sm:$0xf] }
 0x187   : > { %v1027_v55 = vadd.f32 %v1026_v23, %v1025_v62  ;;  %v1139_v63 = vadd.f32 %v1138_v19, %v1137_v57  ;;  %v1474_v18 = vrot.slane %v1473_v45, 1  ;;  %v1251_v29 = vadd.f32 %v1250_v60, %v1249_v48  ;;  %v6776_v6 = vld [vmem:[#allocation5 + $0x6c4] sm:$0xf0]  ;;  %v6778_v31 = vld [vmem:[#allocation5 + $0x740] sm:$0xf] }
 0x188   : > { %v1363_v11 = vadd.f32 %v1362_v12, %v1361_v30  ;;  %v1515_v36 = vpack.c.bf16 %v691_v16, %v691_v16  ;;  %v1531_v35 = vpack.c.bf16 %v803_v4, %v803_v4  ;;  %v1547_v39 = vpack.c.bf16 %v915_v49, %v915_v49  ;;  %v6780_v2 = vld [vmem:[#allocation5 + $0x744] sm:$0xf0]  ;;  %v6783_v62 = vld [vmem:[#allocation5 + $0x7c0] sm:$0xf]  ;;  %v6787_v47 = vld [vmem:[#allocation5 + $0x630] sm:$0xf] }
 0x189   : > { %v1475_v59 = vadd.f32 %v1474_v18, %v1473_v45  ;;  %v1563_v46 = vpack.c.bf16 %v1027_v55, %v1027_v55  ;;  %v1579_v53 = vpack.c.bf16 %v1139_v63, %v1139_v63  ;;  %v1595_v1 = vpack.c.bf16 %v1251_v29, %v1251_v29  ;;  %v6785_v57 = vld [vmem:[#allocation5 + $0x7c4] sm:$0xf0]  ;;  %v6789_v43 = vld [vmem:[#allocation5 + $0x634] sm:$0xf0]  ;;  %v6791_v14 = vld [vmem:[#allocation5 + $0x6b0] sm:$0xf] }
 0x18a   : > { %v1611_v26 = vpack.c.bf16 %v1363_v11, %v1363_v11  ;;  %v2033_v52 = vunpack.c.l.b16 %v1515_v36  ;;  %v2049_v56 = vunpack.c.l.b16 %v1531_v35  ;;  %v2065_v3 = vunpack.c.l.b16 %v1547_v39  ;;  %v6793_v48 = vld [vmem:[#allocation5 + $0x6b4] sm:$0xf0]  ;;  %v6799_v45 = vld [vmem:[#allocation5 + $0x730] sm:$0xf]  ;;  %v6807_v12 = vld [vmem:[#allocation5 + $0x620] sm:$0xf] }
 0x18b   : > { %v1627_v61 = vpack.c.bf16 %v1475_v59, %v1475_v59  ;;  %v2081_v25 = vunpack.c.l.b16 %v1563_v46  ;;  %v2097_v24 = vunpack.c.l.b16 %v1579_v53  ;;  %v2113_v54 = vunpack.c.l.b16 %v1595_v1  ;;  %v6801_v16 = vld [vmem:[#allocation5 + $0x734] sm:$0xf0]  ;;  %v6803_v4 = vld [vmem:[#allocation5 + $0x7b0] sm:$0xf]  ;;  %v6809_v49 = vld [vmem:[#allocation5 + $0x624] sm:$0xf0] }
 0x18c   : > { %v2129_v0 = vunpack.c.l.b16 %v1611_v26  ;;  %v2234_v28 = vsel %vm2150_vm0, %v2049_v56, %v2033_v52  ;;  %v4940_v9 = vor.u32 %v5357_v32, %v4939_v5  ;;  %v5004_v23 = vor.u32 %v6743_v41, %v6741_v42  ;;  %v6805_v60 = vld [vmem:[#allocation5 + $0x7b4] sm:$0xf0]  ;;  %v6818_v32 = vld [vmem:[#allocation5 + $0x6a0] sm:$0xf]  ;;  %v6820_v29 = vld [vmem:[#allocation5 + $0x6a4] sm:$0xf0] }
 0x18d   : > { %v2145_v30 = vunpack.c.l.b16 %v1627_v61  ;;  %v2235_v40 = vsel %vm2152_vm1, %v2065_v3, %v2234_v28  ;;  %v5068_v19 = vor.u32 %v5389_v51, %v6745_v15  ;;  %v5132_v63 = vor.u32 %v6749_v20, %v6747_v58  ;;  %v6822_v11 = vld [vmem:[#allocation5 + $0x720] sm:$0xf]  ;;  %v6824_v36 = vld [vmem:[#allocation5 + $0x724] sm:$0xf0]  ;;  %v6827_v35 = vld [vmem:[%s5768_s30 + $0x70] sm:$0xff] }
 0x18e   : > { %v2236_v55 = vsel %vm2154_vm2, %v2081_v25, %v2235_v40  ;;  %3738 = vmatpush.bf16.msrb.mxu0 %v4940_v9  ;;  %v4932_v18 = vor.u32 %v6753_v8, %v6751_v17  ;;  %v4996_v5 = vor.u32 %v6757_v44, %v6755_v50  ;;  %7379 = vst [vmem:[#allocation22_spill] sm:$0xff] %v6827_v35  ;;  %v6834_v51 = vld [vmem:[#allocation5 + $0x7a0] sm:$0xf]  ;;  %v6836_v59 = vld [vmem:[#allocation5 + $0x7a4] sm:$0xf0]  ;;  %v6905_v40 = vld [vmem:[%s5768_s30 + $0x130] sm:$0xff] }
 0x18f   : > { %v2237_v42 = vsel %vm2156_vm3, %v2097_v24, %v2236_v55  ;;  %3751 = vmatpush.bf16.msrb.mxu1 %v5004_v23  ;;  %3764 = vmatpush.bf16.msrb.mxu2 %v5068_v19  ;;  %v5060_v41 = vor.u32 %v6761_v10, %v6759_v21  ;;  %v5124_v15 = vor.u32 %v6765_v38, %v6763_v7  ;;  %v6838_v39 = vld [vmem:[#allocation5 + $0x610] sm:$0xf]  ;;  %v6840_v46 = vld [vmem:[#allocation5 + $0x614] sm:$0xf0]  ;;  %v6862_v21 = vld [vmem:[#allocation5 + $0x600] sm:$0xf]  ;;  %v428_v13 = vunpack.c.l.bf16 %v6905_v40 }
 0x190   : > { %v6842_v53 = vld [vmem:[#allocation5 + $0x690] sm:$0xf]  ;;  %v6844_v58 = vld [vmem:[#allocation5 + $0x694] sm:$0xf0]  ;;  %v2238_v50 = vsel %vm2158_vm4, %v2113_v54, %v2237_v42  ;;  %3777 = vmatpush.bf16.msrb.mxu3 %v5132_v63  ;;  %v4924_v44 = vor.u32 %v6772_v37, %v6770_v22  ;;  %v4988_v1 = vor.u32 %v6776_v6, %v6774_v34  ;;  %v5052_v26 = vor.u32 %v6780_v2, %v6778_v31  ;;  %v6864_v10 = vld [vmem:[#allocation5 + $0x604] sm:$0xf0] }
 0x191   : > { %v6846_v20 = vld [vmem:[#allocation5 + $0x710] sm:$0xf]  ;;  %v6848_v17 = vld [vmem:[#allocation5 + $0x714] sm:$0xf0]  ;;  %v6866_v7 = vld [vmem:[#allocation5 + $0x680] sm:$0xf]  ;;  %v2239_v3 = vsel %vm2160_vm5, %v2129_v0, %v2238_v50  ;;  %v5116_v25 = vor.u32 %v6785_v57, %v6783_v62 }
 0x192   : > { %v6858_v52 = vld [vmem:[#allocation5 + $0x790] sm:$0xf]  ;;  %v6860_v56 = vld [vmem:[#allocation5 + $0x794] sm:$0xf0]  ;;  %v6868_v38 = vld [vmem:[#allocation5 + $0x684] sm:$0xf0]  ;;  %v2240_v31 = vsel %vm2162_vm6, %v2145_v30, %v2239_v3  ;;  %3739 = vmatpush.bf16.msrb.mxu0 %v4932_v18 }
 0x193   : > { %v6870_v61 = vld [vmem:[#allocation5 + $0x700] sm:$0xf]  ;;  %v6879_v37 = vld [vmem:[#allocation5 + $0x704] sm:$0xf0]  ;;  %v6892_v28 = vld [vmem:[#allocation5 + $0x74] sm:$0xf]  ;;  %v6907_v23 = vpack.c.b16 %v2240_v31, %v2240_v31  ;;  %3752 = vmatpush.bf16.msrb.mxu1 %v4996_v5  ;;  %3765 = vmatpush.bf16.msrb.mxu2 %v5060_v41  ;;  %v380_v5 = vunpack.c.l.bf16 %v6827_v35 }
 0x194   : > { %v6881_v34 = vld [vmem:[#allocation5 + $0x780] sm:$0xf]  ;;  %v6883_v6 = vld [vmem:[#allocation5 + $0x784] sm:$0xf0]  ;;  %v6894_v9 = vld [vmem:[#allocation5 + $0x78] sm:$0xf0]  ;;  %3778 = vmatpush.bf16.msrb.mxu3 %v5124_v15 }
 0x195   : > { %v6896_v62 = vld [vmem:[#allocation5 + $0xf4] sm:$0xf]  ;;  %7382 = vst [vmem:[#allocation26_spill] sm:$0xff] %v6905_v40  ;;  %v6913_v63 = vld [vmem:[#allocation5 + $0xf8] sm:$0xf0]  ;;  %3732 = vmatmul.bf16.vlgmr.msra.gmra.mxu3 %v6907_v23 }
 0x196   : > { %v6899_v57 = vld [vmem:[%s5768_s30 + $0xb0] sm:$0xff]  ;;  %7383 = vst [vmem:[#allocation27_spill] sm:$0xff] %v6907_v23  ;;  %v6917_v42 = vld [vmem:[#allocation5 + $0x178] sm:$0xf0]  ;;  %3740 = vmatpush.bf16.msrb.mxu0 %v4924_v44 }
 0x197   : > { %7380 = vst [vmem:[#allocation23_spill] sm:$0xff] %v6899_v57  ;;  %v6902_v30 = vld [vmem:[%s5768_s30 + $0xf0] sm:$0xff]  ;;  %v6933_v0 = vld [vmem:[#allocation5 + $0x1f8] sm:$0xf0]  ;;  %3753 = vmatpush.bf16.msrb.mxu1 %v4988_v1  ;;  %3766 = vmatpush.bf16.msrb.mxu2 %v5052_v26  ;;  %v396_v3 = vunpack.c.l.bf16 %v6899_v57 }
 0x198   : > { %7381 = vst [vmem:[#allocation25_spill] sm:$0xff] %v6902_v30  ;;  %v6915_v18 = vld [vmem:[#allocation5 + $0x174] sm:$0xf]  ;;  %v412_v33 = vunpack.c.l.bf16 %v6902_v30  ;;  %3779 = vmatpush.bf16.msrb.mxu3 %v5116_v25  ;;  %v7398_v25 = vor.u32 %v6789_v43, %v6787_v47 }
 0x199   : > { %7384 = vst [vmem:[#allocation28_spill] sm:$0xff] %v6917_v42  ;;  %v6920_v50 = vld [vmem:[%s5768_s30 + $0x170] sm:$0xff] }
 0x19a   : > { %7385 = vst [vmem:[#allocation29_spill] sm:$0xff] %v6920_v50  ;;  %v6931_v19 = vld [vmem:[#allocation5 + $0x1f4] sm:$0xf]  ;;  %v444_v35 = vunpack.c.l.bf16 %v6920_v50  ;;  %3741 = vmatpush.bf16.msrb.mxu0 %v7398_v25  ;;  %v7399_v50 = vunpack.c.l.bf16 %v6768_v27 }
 0x19b   : > { %7386 = vst [vmem:[#allocation30_spill] sm:$0xff] %v6931_v19  ;;  %v6936_v54 = vld [vmem:[%s5768_s30 + $0x1b0] sm:$0xff] }
 0x19c   : > { %7387 = vst [vmem:[#allocation31_spill] sm:$0xff] %v6933_v0  ;;  %v6948_v41 = vld [vmem:[%s5768_s30 + $0x1f0] sm:$0xff]  ;;  %v460_v1 = vunpack.c.l.bf16 %v6936_v54  ;;  %v6992_v0 = vld [vmem:[%s5768_s30 + $0x38] sm:$0xff]  ;;  %v692_v40 = vadd.f32 %v380_v5, %v7399_v50  ;;  %v916_v47 = vadd.f32 %v444_v35, %v428_v13 }
 0x19d   : > { %7388 = vst [vmem:[#allocation32_spill] sm:$0xff] %v6936_v54  ;;  %v6951_v2 = vld [vmem:[%s5768_s30 + $0x230] sm:$0xff]  ;;  %v476_v26 = vunpack.c.l.bf16 %v6948_v41  ;;  %v366_v25 = vunpack.c.l.bf16 %v6992_v0 }
 0x19e   : > { %7389 = vst [vmem:[#allocation33_spill] sm:$0xff] %v6948_v41  ;;  %v6954_v22 = vld [vmem:[%s5768_s30 + $0x270] sm:$0xff]  ;;  %v492_v44 = vunpack.c.l.bf16 %v6951_v2 }
 0x19f   : > { %7390 = vst [vmem:[#allocation34_spill] sm:$0xff] %v6951_v2  ;;  %v6965_v8 = vld [vmem:[%s5768_s30 + $0x2b0] sm:$0xff]  ;;  %v508_v19 = vunpack.c.l.bf16 %v6954_v22  ;;  %v1028_v43 = vadd.f32 %v476_v26, %v460_v1 }
 0x1a0   : > { %7391 = vst [vmem:[#allocation35_spill] sm:$0xff] %v6954_v22  ;;  %v6968_v24 = vld [vmem:[%s5768_s30 + $0x2f0] sm:$0xff]  ;;  %v524_v42 = vunpack.c.l.bf16 %v6965_v8 }
 0x1a1   : > { %7392 = vst [vmem:[#allocation36_spill] sm:$0xff] %v6965_v8  ;;  %v6971_v23 = vld [vmem:[%s5768_s30 + $0x330] sm:$0xff]  ;;  %v540_v57 = vunpack.c.l.bf16 %v6968_v24  ;;  %v7400_v8 = vor.u32 %v6793_v48, %v6791_v14  ;;  %v917_v14 = vrot.slane %v916_v47, 4  ;;  %v1029_v48 = vrot.slane %v1028_v43, 4 }
 0x1a2   : > { %7393 = vst [vmem:[#allocation37_spill] sm:$0xff] %v6968_v24  ;;  %v6976_v15 = vld [vmem:[%s5768_s30 + $0x370] sm:$0xff]  ;;  %v556_v30 = vunpack.c.l.bf16 %v6971_v23  ;;  %v804_v24 = vadd.f32 %v412_v33, %v396_v3 }
 0x1a3   : > { %7394 = vst [vmem:[#allocation38_spill] sm:$0xff] %v6971_v23  ;;  %v6979_v31 = vld [vmem:[%s5768_s30 + $0x3b0] sm:$0xff]  ;;  %v572_v54 = vunpack.c.l.bf16 %v6976_v15  ;;  %3754 = vmatpush.bf16.msrb.mxu1 %v7400_v8  ;;  %v7401_v23 = vor.u32 %v6801_v16, %v6799_v45  ;;  %v1252_v50 = vadd.f32 %v540_v57, %v524_v42  ;;  %v7403_v45 = vor.u32 %v6809_v49, %v6807_v12 }
 0x1a4   : > { %7395 = vst [vmem:[#allocation39_spill] sm:$0xff] %v6976_v15  ;;  %v6982_v55 = vld [vmem:[%s5768_s30 + $0x3f0] sm:$0xff]  ;;  %v588_v41 = vunpack.c.l.bf16 %v6979_v31  ;;  %v1140_v15 = vadd.f32 %v508_v19, %v492_v44  ;;  %v805_v22 = vrot.slane %v804_v24, 4  ;;  %v918_v57 = vadd.f32 %v917_v14, %v916_v47 }
 0x1a5   : > { %7396 = vst [vmem:[#allocation40_spill] sm:$0xff] %v6979_v31  ;;  %v604_v2 = vunpack.c.l.bf16 %v6982_v55  ;;  %3767 = vmatpush.bf16.msrb.mxu2 %v7401_v23  ;;  %v7402_v31 = vor.u32 %v6805_v60, %v6803_v4  ;;  %v1364_v5 = vadd.f32 %v572_v54, %v556_v30  ;;  %3742 = vmatpush.bf16.msrb.mxu0 %v7403_v45  ;;  %v1253_v16 = vrot.slane %v1252_v50, 4 }
 0x1a6   : > { %7397 = vst [vmem:[#allocation41_spill] sm:$0xff] %v6982_v55  ;;  %v693_v55 = vrot.slane %v692_v40, 4  ;;  %v1141_v33 = vrot.slane %v1140_v15, 4  ;;  %v7404_v4 = vor.u32 %v6820_v29, %v6818_v32  ;;  %v7405_v60 = vor.u32 %v6824_v36, %v6822_v11 }
 0x1a7   : > { %3780 = vmatpush.bf16.msrb.mxu3 %v7402_v31  ;;  %v1476_v8 = vadd.f32 %v604_v2, %v588_v41  ;;  %v1365_v35 = vrot.slane %v1364_v5, 4  ;;  %v806_v54 = vadd.f32 %v805_v22, %v804_v24  ;;  %v1030_v30 = vadd.f32 %v1029_v48, %v1028_v43 }
 0x1a8   : > { %v694_v13 = vadd.f32 %v693_v55, %v692_v40  ;;  %3755 = vmatpush.bf16.msrb.mxu1 %v7404_v4  ;;  %v7406_v12 = vor.u32 %v6836_v59, %v6834_v51  ;;  %v1142_v40 = vadd.f32 %v1141_v33, %v1140_v15  ;;  %v1254_v23 = vadd.f32 %v1253_v16, %v1252_v50 }
 0x1a9   : > { %3768 = vmatpush.bf16.msrb.mxu2 %v7405_v60  ;;  %v1477_v2 = vrot.slane %v1476_v8, 4  ;;  %v1366_v19 = vadd.f32 %v1365_v35, %v1364_v5  ;;  %v807_v55 = vrot.slane %v806_v54, 2  ;;  %v919_v42 = vrot.slane %v918_v57, 2  ;;  %v7041_v5 = vld [vmem:[%s5768_s30 + $0x78] sm:$0xff] }
 0x1aa   : > { %v695_v49 = vrot.slane %v694_v13, 2  ;;  %v1031_v32 = vrot.slane %v1030_v30, 2  ;;  %v7407_v11 = vor.u32 %v6840_v46, %v6838_v39  ;;  %v1143_v24 = vrot.slane %v1142_v40, 2 }
 0x1ab   : > { %3781 = vmatpush.bf16.msrb.mxu3 %v7406_v12  ;;  %v1478_v29 = vadd.f32 %v1477_v2, %v1476_v8  ;;  %v1255_v22 = vrot.slane %v1254_v23, 2  ;;  %v1367_v41 = vrot.slane %v1366_v19, 2  ;;  %v7408_v51 = vor.u32 %v6844_v58, %v6842_v53 }
 0x1ac   : > { %3743 = vmatpush.bf16.msrb.mxu0 %v7407_v11  ;;  %v696_v36 = vadd.f32 %v695_v49, %v694_v13  ;;  %v7409_v59 = vor.u32 %v6848_v17, %v6846_v20  ;;  %v808_v3 = vadd.f32 %v807_v55, %v806_v54  ;;  %v920_v31 = vadd.f32 %v919_v42, %v918_v57  ;;  %v7419_v57 = vld [vmem:[#allocation30_spill] sm:$0xff] }
 0x1ad   : > { %3756 = vmatpush.bf16.msrb.mxu1 %v7408_v51  ;;  %v1032_v15 = vadd.f32 %v1031_v32, %v1030_v30  ;;  %v1479_v44 = vrot.slane %v1478_v29, 2  ;;  %v7410_v39 = vor.u32 %v6860_v56, %v6858_v52  ;;  %v1144_v1 = vadd.f32 %v1143_v24, %v1142_v40  ;;  %v7047_v56 = vld [vmem:[%s5768_s30 + $0xb8] sm:$0xff] }
 0x1ae   : > { %3769 = vmatpush.bf16.msrb.mxu2 %v7409_v59  ;;  %v697_v46 = vrot.slane %v696_v36, 1  ;;  %v1256_v26 = vadd.f32 %v1255_v22, %v1254_v23  ;;  %v1368_v47 = vadd.f32 %v1367_v41, %v1366_v19  ;;  %v809_v53 = vrot.slane %v808_v3, 1  ;;  %v7420_v30 = vld [vmem:[#allocation31_spill] sm:$0xff] }
 0x1af   : > { %3782 = vmatpush.bf16.msrb.mxu3 %v7410_v39  ;;  %v921_v58 = vrot.slane %v920_v31, 1  ;;  %v1033_v43 = vrot.slane %v1032_v15, 1  ;;  %v1480_v50 = vadd.f32 %v1479_v44, %v1478_v29  ;;  %v7411_v20 = vor.u32 %v6864_v10, %v6862_v21  ;;  %v7073_v49 = vld [vmem:[%s5768_s30 + $0xf8] sm:$0xff] }
 0x1b0   : > { %v698_v17 = vadd.f32 %v697_v46, %v696_v36  ;;  %v1145_v14 = vrot.slane %v1144_v1, 1  ;;  %v1257_v48 = vrot.slane %v1256_v26, 1  ;;  %v1369_v52 = vrot.slane %v1368_v47, 1  ;;  %v7076_v42 = vld [vmem:[%s5768_s30 + $0x138] sm:$0xff] }
 0x1b1   : > { %3744 = vmatpush.bf16.msrb.mxu0 %v7411_v20  ;;  %v7412_v8 = vor.u32 %v6868_v38, %v6866_v7  ;;  %v7413_v45 = vor.u32 %v6879_v37, %v6870_v61  ;;  %v810_v13 = vadd.f32 %v809_v53, %v808_v3  ;;  %v922_v33 = vadd.f32 %v921_v58, %v920_v31  ;;  %v7417_v37 = vld [vmem:[#allocation28_spill] sm:$0xff]  ;;  %v7079_v32 = vld [vmem:[%s5768_s30 + $0x178] sm:$0xff] }
 0x1b2   : > { %v1034_v16 = vadd.f32 %v1033_v43, %v1032_v15  ;;  %v1481_v35 = vrot.slane %v1480_v50, 1  ;;  %v7414_v21 = vor.u32 %v6883_v6, %v6881_v34  ;;  %v7415_v10 = vor.u32 %v6892_v28, %v6894_v9  ;;  %v7082_v29 = vld [vmem:[%s5768_s30 + $0x1b8] sm:$0xff] }
 0x1b3   : > { %3757 = vmatpush.bf16.msrb.mxu1 %v7412_v8  ;;  %3770 = vmatpush.bf16.msrb.mxu2 %v7413_v45  ;;  %v1146_v4 = vadd.f32 %v1145_v14, %v1144_v1  ;;  %v1258_v7 = vadd.f32 %v1257_v48, %v1256_v26  ;;  %v1370_v38 = vadd.f32 %v1369_v52, %v1368_v47  ;;  %v382_v60 = vunpack.c.l.bf16 %v7041_v5  ;;  %v7085_v41 = vld [vmem:[%s5768_s30 + $0x1f8] sm:$0xff] }
 0x1b4   : > { %3783 = vmatpush.bf16.msrb.mxu3 %v7414_v21  ;;  %v7416_v61 = vor.u32 %v6896_v62, %v6913_v63  ;;  %v7418_v54 = vor.u32 %v6915_v18, %v7417_v37  ;;  %v1482_v34 = vadd.f32 %v1481_v35, %v1480_v50  ;;  %v1516_v6 = vpack.c.bf16 %v698_v17, %v698_v17  ;;  %v7088_v51 = vld [vmem:[%s5768_s30 + $0x238] sm:$0xff] }
 0x1b5   : > { %3789 = vmatpush.bf16.msra.mxu0 %v7415_v10  ;;  %v1532_v28 = vpack.c.bf16 %v810_v13, %v810_v13  ;;  %v398_v9 = vunpack.c.l.bf16 %v7047_v56  ;;  %v7421_v2 = vor.u32 %v7419_v57, %v7420_v30  ;;  %v1548_v12 = vpack.c.bf16 %v922_v33, %v922_v33  ;;  %v7091_v59 = vld [vmem:[%s5768_s30 + $0x278] sm:$0xff] }
 0x1b6   : > { %v1564_v62 = vpack.c.bf16 %v1034_v16, %v1034_v16  ;;  %v1580_v63 = vpack.c.bf16 %v1146_v4, %v1146_v4  ;;  %v1596_v18 = vpack.c.bf16 %v1258_v7, %v1258_v7  ;;  %v1612_v40 = vpack.c.bf16 %v1370_v38, %v1370_v38  ;;  %v7095_v44 = vld [vmem:[%s5768_s30 + $0x2b8] sm:$0xff] }
 0x1b7   : > { %3802 = vmatpush.bf16.msra.mxu1 %v7416_v61  ;;  %3815 = vmatpush.bf16.msra.mxu2 %v7418_v54  ;;  %v1628_v23 = vpack.c.bf16 %v1482_v34, %v1482_v34  ;;  %v2034_v19 = vunpack.c.l.b16 %v1516_v6  ;;  %v2050_v55 = vunpack.c.l.b16 %v1532_v28  ;;  %v2066_v11 = vunpack.c.l.b16 %v1548_v12  ;;  %v7098_v39 = vld [vmem:[%s5768_s30 + $0x2f8] sm:$0xff] }
 0x1b8   : > { %3828 = vmatpush.bf16.msra.mxu3 %v7421_v2  ;;  %v2082_v36 = vunpack.c.l.b16 %v1564_v62  ;;  %v2098_v24 = vunpack.c.l.b16 %v1580_v63  ;;  %v2114_v22 = vunpack.c.l.b16 %v1596_v18  ;;  %v2130_v3 = vunpack.c.l.b16 %v1612_v40  ;;  %v7101_v46 = vld [vmem:[%s5768_s30 + $0x338] sm:$0xff] }
 0x1b9   : > { %v2146_v31 = vunpack.c.l.b16 %v1628_v23  ;;  %v2241_v15 = vsel %vm2150_vm0, %v2050_v55, %v2034_v19  ;;  %v414_v1 = vunpack.c.l.bf16 %v7073_v49  ;;  %v7106_v47 = vld [vmem:[%s5768_s30 + $0x378] sm:$0xff]  ;;  %v430_v43 = vunpack.c.l.bf16 %v7076_v42 }
 0x1ba   : > { %v2242_v26 = vsel %vm2152_vm1, %v2066_v11, %v2241_v15  ;;  %v7109_v53 = vld [vmem:[%s5768_s30 + $0x3b8] sm:$0xff]  ;;  %v446_v50 = vunpack.c.l.bf16 %v7079_v32  ;;  %v462_v20 = vunpack.c.l.bf16 %v7082_v29  ;;  %v478_v14 = vunpack.c.l.bf16 %v7085_v41 }
 0x1bb   : > { %v7112_v58 = vld [vmem:[%s5768_s30 + $0x3f8] sm:$0xff]  ;;  %v2243_v17 = vsel %vm2154_vm2, %v2082_v36, %v2242_v26  ;;  %v494_v48 = vunpack.c.l.bf16 %v7088_v51  ;;  %v510_v52 = vunpack.c.l.bf16 %v7091_v59  ;;  %v526_v45 = vunpack.c.l.bf16 %v7095_v44 }
 0x1bc   : > { %v2244_v8 = vsel %vm2156_vm3, %v2098_v24, %v2243_v17  ;;  %v542_v13 = vunpack.c.l.bf16 %v7098_v39  ;;  %v558_v33 = vunpack.c.l.bf16 %v7101_v46  ;;  %v574_v35 = vunpack.c.l.bf16 %v7106_v47 }
 0x1bd   : > { %v2245_v16 = vsel %vm2158_vm4, %v2114_v22, %v2244_v8  ;;  %v590_v21 = vunpack.c.l.bf16 %v7109_v53  ;;  %v606_v10 = vunpack.c.l.bf16 %v7112_v58  ;;  %v706_v7 = vadd.f32 %v382_v60, %v366_v25 }
 0x1be   : > { %v2246_v4 = vsel %vm2160_vm5, %v2130_v3, %v2245_v16  ;;  %v818_v38 = vadd.f32 %v414_v1, %v398_v9  ;;  %v930_v61 = vadd.f32 %v446_v50, %v430_v43  ;;  %v1042_v54 = vadd.f32 %v478_v14, %v462_v20 }
 0x1bf   : > { %v2247_v37 = vsel %vm2162_vm6, %v2146_v31, %v2246_v4  ;;  %v1154_v34 = vadd.f32 %v510_v52, %v494_v48  ;;  %v1266_v6 = vadd.f32 %v542_v13, %v526_v45  ;;  %v707_v57 = vrot.slane %v706_v7, 4 }
 0x1c0   : > { %v7133_v28 = vpack.c.b16 %v2247_v37, %v2247_v37  ;;  %v819_v30 = vrot.slane %v818_v38, 4  ;;  %v931_v2 = vrot.slane %v930_v61, 4  ;;  %v1043_v12 = vrot.slane %v1042_v54, 4 }
 0x1c1   : > { %v1155_v62 = vrot.slane %v1154_v34, 4  ;;  %v1267_v63 = vrot.slane %v1266_v6, 4  ;;  %v1378_v18 = vadd.f32 %v574_v35, %v558_v33  ;;  %v708_v40 = vadd.f32 %v707_v57, %v706_v7 }
 0x1c2   : > { %3745 = vmatmul.bf16.vlgmr.msrb.gmra.mxu0 %v7133_v28  ;;  %v820_v25 = vadd.f32 %v819_v30, %v818_v38  ;;  %v932_v60 = vadd.f32 %v931_v2, %v930_v61  ;;  %v1490_v9 = vadd.f32 %v606_v10, %v590_v21  ;;  %v1044_v23 = vadd.f32 %v1043_v12, %v1042_v54 }
 0x1c3   : > { %v1156_v19 = vadd.f32 %v1155_v62, %v1154_v34  ;;  %v1268_v55 = vadd.f32 %v1267_v63, %v1266_v6  ;;  %v1379_v11 = vrot.slane %v1378_v18, 4  ;;  %v709_v36 = vrot.slane %v708_v40, 2 }
 0x1c4   : > { %v821_v24 = vrot.slane %v820_v25, 2  ;;  %v933_v22 = vrot.slane %v932_v60, 2  ;;  %v1491_v3 = vrot.slane %v1490_v9, 4  ;;  %v1045_v31 = vrot.slane %v1044_v23, 2 }
 0x1c5   : > { %v1157_v15 = vrot.slane %v1156_v19, 2  ;;  %v1269_v1 = vrot.slane %v1268_v55, 2  ;;  %v1380_v26 = vadd.f32 %v1379_v11, %v1378_v18  ;;  %v710_v43 = vadd.f32 %v709_v36, %v708_v40 }
 0x1c6   : > { %v822_v50 = vadd.f32 %v821_v24, %v820_v25  ;;  %v934_v20 = vadd.f32 %v933_v22, %v932_v60  ;;  %v1492_v17 = vadd.f32 %v1491_v3, %v1490_v9  ;;  %v1046_v14 = vadd.f32 %v1045_v31, %v1044_v23 }
 0x1c7   : > { %v1158_v48 = vadd.f32 %v1157_v15, %v1156_v19  ;;  %v1270_v52 = vadd.f32 %v1269_v1, %v1268_v55  ;;  %v1381_v8 = vrot.slane %v1380_v26, 2  ;;  %v711_v45 = vrot.slane %v710_v43, 1  ;;  %v7422_v15 = vld [vmem:[#allocation22_spill] sm:$0xff] }
 0x1c8   : > { %v823_v13 = vrot.slane %v822_v50, 1  ;;  %v935_v33 = vrot.slane %v934_v20, 1  ;;  %v1493_v16 = vrot.slane %v1492_v17, 2  ;;  %v1047_v35 = vrot.slane %v1046_v14, 1 }
 0x1c9   : > { %v1159_v21 = vrot.slane %v1158_v48, 1  ;;  %v1271_v10 = vrot.slane %v1270_v52, 1  ;;  %v1382_v4 = vadd.f32 %v1381_v8, %v1380_v26  ;;  %v712_v7 = vadd.f32 %v711_v45, %v710_v43  ;;  %v7425_v8 = vld [vmem:[#allocation26_spill] sm:$0xff] }
 0x1ca   : > { %v824_v38 = vadd.f32 %v823_v13, %v822_v50  ;;  %v936_v61 = vadd.f32 %v935_v33, %v934_v20  ;;  %v1494_v37 = vadd.f32 %v1493_v16, %v1492_v17  ;;  %v1048_v54 = vadd.f32 %v1047_v35, %v1046_v14  ;;  %v7423_v50 = vld [vmem:[#allocation23_spill] sm:$0xff]  ;;  %v7424_v17 = vld [vmem:[#allocation25_spill] sm:$0xff]  ;;  %v7427_v35 = vld [vmem:[#allocation32_spill] sm:$0xff] }
 0x1cb   : > { %v1160_v34 = vadd.f32 %v1159_v21, %v1158_v48  ;;  %v1272_v6 = vadd.f32 %v1271_v10, %v1270_v52  ;;  %v1383_v57 = vrot.slane %v1382_v4, 1  ;;  %v1518_v2 = vpack.c.bf16 %v712_v7, %v712_v7  ;;  %v7426_v13 = vld [vmem:[#allocation29_spill] sm:$0xff] }
 0x1cc   : > { %v1495_v30 = vrot.slane %v1494_v37, 1  ;;  %v1534_v12 = vpack.c.bf16 %v824_v38, %v824_v38  ;;  %v1550_v62 = vpack.c.bf16 %v936_v61, %v936_v61  ;;  %v1566_v18 = vpack.c.bf16 %v1048_v54, %v1048_v54  ;;  %v7428_v21 = vld [vmem:[#allocation33_spill] sm:$0xff]  ;;  %v7430_v61 = vld [vmem:[#allocation35_spill] sm:$0xff]  ;;  %v7431_v54 = vld [vmem:[#allocation36_spill] sm:$0xff] }
 0x1cd   : > { %v1384_v63 = vadd.f32 %v1383_v57, %v1382_v4  ;;  %v1582_v40 = vpack.c.bf16 %v1160_v34, %v1160_v34  ;;  %v1598_v25 = vpack.c.bf16 %v1272_v6, %v1272_v6  ;;  %v2036_v9 = vunpack.c.l.b16 %v1518_v2  ;;  %v7429_v4 = vld [vmem:[#allocation34_spill] sm:$0xff]  ;;  %v7432_v6 = vld [vmem:[#allocation37_spill] sm:$0xff] }
 0x1ce   : > { %v1496_v60 = vadd.f32 %v1495_v30, %v1494_v37  ;;  %v2052_v23 = vunpack.c.l.b16 %v1534_v12  ;;  %v2068_v19 = vunpack.c.l.b16 %v1550_v62  ;;  %v2084_v11 = vunpack.c.l.b16 %v1566_v18  ;;  %v7433_v2 = vld [vmem:[#allocation38_spill] sm:$0xff]  ;;  %v7434_v62 = vld [vmem:[#allocation39_spill] sm:$0xff]  ;;  %v7435_v18 = vld [vmem:[#allocation40_spill] sm:$0xff] }
 0x1cf   : > { %v1614_v55 = vpack.c.bf16 %v1384_v63, %v1384_v63  ;;  %v2100_v36 = vunpack.c.l.b16 %v1582_v40  ;;  %v2116_v24 = vunpack.c.l.b16 %v1598_v25  ;;  %v365_v31 = vunpack.c.h.bf16 %v6768_v27 }
 0x1d0   : > { %v1630_v22 = vpack.c.bf16 %v1496_v60, %v1496_v60  ;;  %v2255_v3 = vsel %vm2150_vm0, %v2052_v23, %v2036_v9  ;;  %v381_v1 = vunpack.c.h.bf16 %v7422_v15  ;;  %v397_v20 = vunpack.c.h.bf16 %v7423_v50  ;;  %v7436_v60 = vld [vmem:[#allocation41_spill] sm:$0xff] }
 0x1d1   : > { %v2132_v26 = vunpack.c.l.b16 %v1614_v55  ;;  %v2256_v43 = vsel %vm2152_vm1, %v2068_v19, %v2255_v3  ;;  %v413_v14 = vunpack.c.h.bf16 %v7424_v17  ;;  %v429_v45 = vunpack.c.h.bf16 %v7425_v8 }
 0x1d2   : > { %v2148_v48 = vunpack.c.l.b16 %v1630_v22  ;;  %v2257_v52 = vsel %vm2154_vm2, %v2084_v11, %v2256_v43  ;;  %v445_v33 = vunpack.c.h.bf16 %v7426_v13  ;;  %v461_v27 = vunpack.c.h.bf16 %v7427_v35 }
 0x1d3   : > { %v2258_v16 = vsel %vm2156_vm3, %v2100_v36, %v2257_v52  ;;  %v477_v10 = vunpack.c.h.bf16 %v7428_v21  ;;  %v493_v7 = vunpack.c.h.bf16 %v7429_v4  ;;  %v509_v37 = vunpack.c.h.bf16 %v7430_v61 }
 0x1d4   : > { %v2259_v38 = vsel %vm2158_vm4, %v2116_v24, %v2258_v16  ;;  %v525_v34 = vunpack.c.h.bf16 %v7431_v54  ;;  %v541_v57 = vunpack.c.h.bf16 %v7432_v6  ;;  %v557_v12 = vunpack.c.h.bf16 %v7433_v2 }
 0x1d5   : > { %v2260_v30 = vsel %vm2160_vm5, %v2132_v26, %v2259_v38  ;;  %v573_v63 = vunpack.c.h.bf16 %v7434_v62  ;;  %v589_v40 = vunpack.c.h.bf16 %v7435_v18  ;;  %v605_v9 = vunpack.c.h.bf16 %v7436_v60 }
 0x1d6   : > { %v2261_v25 = vsel %vm2162_vm6, %v2148_v48, %v2260_v30  ;;  %v699_v23 = vadd.f32 %v381_v1, %v365_v31  ;;  %v811_v19 = vadd.f32 %v413_v14, %v397_v20  ;;  %v923_v11 = vadd.f32 %v445_v33, %v429_v45 }
 0x1d7   : > { %v7159_v55 = vpack.c.b16 %v2261_v25, %v2261_v25  ;;  %v1035_v36 = vadd.f32 %v477_v10, %v461_v27  ;;  %v1147_v24 = vadd.f32 %v509_v37, %v493_v7  ;;  %v1259_v15 = vadd.f32 %v541_v57, %v525_v34 }
 0x1d8   : > { %v700_v22 = vrot.slane %v699_v23, 4  ;;  %v812_v3 = vrot.slane %v811_v19, 4  ;;  %v1371_v26 = vadd.f32 %v573_v63, %v557_v12  ;;  %v924_v43 = vrot.slane %v923_v11, 4 }
 0x1d9   : > { %3771 = vmatmul.bf16.vlgmr.msrb.gmra.mxu2 %v7159_v55  ;;  %v1036_v50 = vrot.slane %v1035_v36, 4  ;;  %v1148_v17 = vrot.slane %v1147_v24, 4  ;;  %v1483_v52 = vadd.f32 %v605_v9, %v589_v40  ;;  %v1260_v13 = vrot.slane %v1259_v15, 4 }
 0x1da   : > { %v701_v48 = vadd.f32 %v700_v22, %v699_v23  ;;  %v813_v8 = vadd.f32 %v812_v3, %v811_v19  ;;  %v1372_v31 = vrot.slane %v1371_v26, 4  ;;  %v925_v1 = vadd.f32 %v924_v43, %v923_v11 }
 0x1db   : > { %v1037_v20 = vadd.f32 %v1036_v50, %v1035_v36  ;;  %v1149_v14 = vadd.f32 %v1148_v17, %v1147_v24  ;;  %v1484_v45 = vrot.slane %v1483_v52, 4  ;;  %v1261_v35 = vadd.f32 %v1260_v13, %v1259_v15 }
 0x1dc   : > { %v702_v33 = vrot.slane %v701_v48, 2  ;;  %v814_v16 = vrot.slane %v813_v8, 2  ;;  %v1373_v27 = vadd.f32 %v1372_v31, %v1371_v26  ;;  %v926_v21 = vrot.slane %v925_v1, 2 }
 0x1dd   : > { %v1038_v10 = vrot.slane %v1037_v20, 2  ;;  %v1150_v4 = vrot.slane %v1149_v14, 2  ;;  %v1485_v7 = vadd.f32 %v1484_v45, %v1483_v52  ;;  %v1262_v37 = vrot.slane %v1261_v35, 2 }
 0x1de   : > { %v703_v38 = vadd.f32 %v702_v33, %v701_v48  ;;  %v815_v61 = vadd.f32 %v814_v16, %v813_v8  ;;  %v1374_v54 = vrot.slane %v1373_v27, 2  ;;  %v927_v34 = vadd.f32 %v926_v21, %v925_v1 }
 0x1df   : > { %v1039_v6 = vadd.f32 %v1038_v10, %v1037_v20  ;;  %v1151_v57 = vadd.f32 %v1150_v4, %v1149_v14  ;;  %v1486_v30 = vrot.slane %v1485_v7, 2  ;;  %v1263_v62 = vadd.f32 %v1262_v37, %v1261_v35 }
 0x1e0   : > { %v704_v2 = vrot.slane %v703_v38, 1  ;;  %v816_v12 = vrot.slane %v815_v61, 1  ;;  %v1375_v63 = vadd.f32 %v1374_v54, %v1373_v27  ;;  %v928_v18 = vrot.slane %v927_v34, 1 }
 0x1e1   : > { %v1040_v40 = vrot.slane %v1039_v6, 1  ;;  %v1152_v25 = vrot.slane %v1151_v57, 1  ;;  %v1487_v60 = vadd.f32 %v1486_v30, %v1485_v7  ;;  %v1264_v19 = vrot.slane %v1263_v62, 1 }
 0x1e2   : > { %v705_v9 = vadd.f32 %v704_v2, %v703_v38  ;;  %v817_v23 = vadd.f32 %v816_v12, %v815_v61  ;;  %v1376_v11 = vrot.slane %v1375_v63, 1  ;;  %v929_v36 = vadd.f32 %v928_v18, %v927_v34 }
 0x1e3   : > { %v1041_v24 = vadd.f32 %v1040_v40, %v1039_v6  ;;  %v1153_v22 = vadd.f32 %v1152_v25, %v1151_v57  ;;  %v1488_v3 = vrot.slane %v1487_v60, 1  ;;  %v1265_v15 = vadd.f32 %v1264_v19, %v1263_v62 }
 0x1e4   : > { %v1377_v26 = vadd.f32 %v1376_v11, %v1375_v63  ;;  %v1517_v43 = vpack.c.bf16 %v705_v9, %v705_v9  ;;  %v1533_v50 = vpack.c.bf16 %v817_v23, %v817_v23  ;;  %v1549_v52 = vpack.c.bf16 %v929_v36, %v929_v36 }
 0x1e5   : > { %v1489_v17 = vadd.f32 %v1488_v3, %v1487_v60  ;;  %v1565_v48 = vpack.c.bf16 %v1041_v24, %v1041_v24  ;;  %v1581_v8 = vpack.c.bf16 %v1153_v22, %v1153_v22  ;;  %v1597_v13 = vpack.c.bf16 %v1265_v15, %v1265_v15 }
 0x1e6   : > { %v1613_v31 = vpack.c.bf16 %v1377_v26, %v1377_v26  ;;  %v2035_v1 = vunpack.c.l.b16 %v1517_v43  ;;  %v2051_v20 = vunpack.c.l.b16 %v1533_v50  ;;  %v2067_v45 = vunpack.c.l.b16 %v1549_v52 }
 0x1e7   : > { %v1629_v14 = vpack.c.bf16 %v1489_v17, %v1489_v17  ;;  %v2083_v33 = vunpack.c.l.b16 %v1565_v48  ;;  %v2099_v16 = vunpack.c.l.b16 %v1581_v8  ;;  %v2115_v35 = vunpack.c.l.b16 %v1597_v13 }
 0x1e8   : > { %v2131_v27 = vunpack.c.l.b16 %v1613_v31  ;;  %v2248_v21 = vsel %vm2150_vm0, %v2051_v20, %v2035_v1  ;;  %v367_v10 = vunpack.c.h.bf16 %v6992_v0  ;;  %v383_v38 = vunpack.c.h.bf16 %v7041_v5 }
 0x1e9   : > { %v2147_v4 = vunpack.c.l.b16 %v1629_v14  ;;  %v2249_v7 = vsel %vm2152_vm1, %v2067_v45, %v2248_v21  ;;  %v399_v61 = vunpack.c.h.bf16 %v7047_v56  ;;  %v415_v54 = vunpack.c.h.bf16 %v7073_v49 }
 0x1ea   : > { %v2250_v37 = vsel %vm2154_vm2, %v2083_v33, %v2249_v7  ;;  %v431_v34 = vunpack.c.h.bf16 %v7076_v42  ;;  %v447_v6 = vunpack.c.h.bf16 %v7079_v32  ;;  %v463_v30 = vunpack.c.h.bf16 %v7082_v29 }
 0x1eb   : > { %v2251_v57 = vsel %vm2156_vm3, %v2099_v16, %v2250_v37  ;;  %v479_v0 = vunpack.c.h.bf16 %v7085_v41  ;;  %v495_v2 = vunpack.c.h.bf16 %v7088_v51  ;;  %v511_v56 = vunpack.c.h.bf16 %v7091_v59 }
 0x1ec   : > { %v2252_v5 = vsel %vm2158_vm4, %v2115_v35, %v2251_v57  ;;  %v527_v12 = vunpack.c.h.bf16 %v7095_v44  ;;  %v543_v49 = vunpack.c.h.bf16 %v7098_v39  ;;  %v559_v32 = vunpack.c.h.bf16 %v7101_v46 }
 0x1ed   : > { %v2253_v42 = vsel %vm2160_vm5, %v2131_v27, %v2252_v5  ;;  %v575_v62 = vunpack.c.h.bf16 %v7106_v47  ;;  %v591_v29 = vunpack.c.h.bf16 %v7109_v53  ;;  %v607_v51 = vunpack.c.h.bf16 %v7112_v58 }
 0x1ee   : > { %v2254_v41 = vsel %vm2162_vm6, %v2147_v4, %v2253_v42  ;;  %v713_v63 = vadd.f32 %v383_v38, %v367_v10  ;;  %v825_v18 = vadd.f32 %v415_v54, %v399_v61  ;;  %v937_v59 = vadd.f32 %v447_v6, %v431_v34 }
 0x1ef   : > { %v7185_v40 = vpack.c.b16 %v2254_v41, %v2254_v41  ;;  %v1049_v44 = vadd.f32 %v479_v0, %v463_v30  ;;  %v1161_v25 = vadd.f32 %v511_v56, %v495_v2  ;;  %v1273_v9 = vadd.f32 %v543_v49, %v527_v12 }
 0x1f0   : > { %v714_v39 = vrot.slane %v713_v63, 4  ;;  %v826_v60 = vrot.slane %v825_v18, 4  ;;  %v1385_v23 = vadd.f32 %v575_v62, %v559_v32  ;;  %v938_v46 = vrot.slane %v937_v59, 4  ;;  %v5164_v62 = vld [vmem:[#allocation5 + $0x64] sm:$0xf] }
 0x1f1   : > { %3758 = vmatmul.bf16.vlgmr.msrb.gmra.mxu1 %v7185_v40  ;;  %v1050_v47 = vrot.slane %v1049_v44, 4  ;;  %v1162_v53 = vrot.slane %v1161_v25, 4  ;;  %v1497_v19 = vadd.f32 %v607_v51, %v591_v29  ;;  %v1274_v58 = vrot.slane %v1273_v9, 4  ;;  %v4173_v29 = vld [vmem:[#allocation5 + $0x68] sm:$0xf0] }
 0x1f2   : > { %v715_v11 = vadd.f32 %v714_v39, %v713_v63  ;;  %v827_v36 = vadd.f32 %v826_v60, %v825_v18  ;;  %v1386_v24 = vrot.slane %v1385_v23, 4  ;;  %v939_v22 = vadd.f32 %v938_v46, %v937_v59  ;;  %v5180_v59 = vld [vmem:[#allocation5 + $0xe4] sm:$0xf]  ;;  %v4301_v46 = vld [vmem:[#allocation5 + $0x168] sm:$0xf0] }
 0x1f3   : > { %v1051_v3 = vadd.f32 %v1050_v47, %v1049_v44  ;;  %v1163_v15 = vadd.f32 %v1162_v53, %v1161_v25  ;;  %v1498_v26 = vrot.slane %v1497_v19, 4  ;;  %v1275_v17 = vadd.f32 %v1274_v58, %v1273_v9  ;;  %v4237_v44 = vld [vmem:[#allocation5 + $0xe8] sm:$0xf0]  ;;  %v5196_v25 = vld [vmem:[#allocation5 + $0x164] sm:$0xf] }
 0x1f4   : > { %v716_v43 = vrot.slane %v715_v11, 2  ;;  %v828_v50 = vrot.slane %v827_v36, 2  ;;  %v1387_v52 = vadd.f32 %v1386_v24, %v1385_v23  ;;  %v940_v48 = vrot.slane %v939_v22, 2  ;;  %v5212_v47 = vld [vmem:[#allocation5 + $0x1e4] sm:$0xf] }
 0x1f5   : > { %v1052_v8 = vrot.slane %v1051_v3, 2  ;;  %v1164_v13 = vrot.slane %v1163_v15, 2  ;;  %v1499_v31 = vadd.f32 %v1498_v26, %v1497_v19  ;;  %v1276_v14 = vrot.slane %v1275_v17, 2  ;;  %v4365_v53 = vld [vmem:[#allocation5 + $0x1e8] sm:$0xf0] }
 0x1f6   : > { %v717_v1 = vadd.f32 %v716_v43, %v715_v11  ;;  %v829_v20 = vadd.f32 %v828_v50, %v827_v36  ;;  %v1388_v45 = vrot.slane %v1387_v52, 2  ;;  %v941_v33 = vadd.f32 %v940_v48, %v939_v22  ;;  %v5162_v24 = vld [vmem:[#allocation5 + $0x54] sm:$0xf]  ;;  %v4165_v22 = vld [vmem:[#allocation5 + $0x58] sm:$0xf0] }
 0x1f7   : > { %v1053_v16 = vadd.f32 %v1052_v8, %v1051_v3  ;;  %v1165_v35 = vadd.f32 %v1164_v13, %v1163_v15  ;;  %v1500_v27 = vrot.slane %v1499_v31, 2  ;;  %v1277_v4 = vadd.f32 %v1276_v14, %v1275_v17  ;;  %v5178_v3 = vld [vmem:[#allocation5 + $0xd4] sm:$0xf]  ;;  %v4229_v50 = vld [vmem:[#allocation5 + $0xd8] sm:$0xf0] }
 0x1f8   : > { %v718_v21 = vrot.slane %v717_v1, 1  ;;  %v830_v10 = vrot.slane %v829_v20, 1  ;;  %v1389_v7 = vadd.f32 %v1388_v45, %v1387_v52  ;;  %v942_v38 = vrot.slane %v941_v33, 1  ;;  %v5194_v17 = vld [vmem:[#allocation5 + $0x154] sm:$0xf] }
 0x1f9   : > { %v1054_v61 = vrot.slane %v1053_v16, 1  ;;  %v1166_v37 = vrot.slane %v1165_v35, 1  ;;  %v1501_v54 = vadd.f32 %v1500_v27, %v1499_v31  ;;  %v1278_v57 = vrot.slane %v1277_v4, 1  ;;  %v4293_v52 = vld [vmem:[#allocation5 + $0x158] sm:$0xf0] }
 0x1fa   : > { %v719_v34 = vadd.f32 %v718_v21, %v717_v1  ;;  %v831_v6 = vadd.f32 %v830_v10, %v829_v20  ;;  %v1390_v30 = vrot.slane %v1389_v7, 1  ;;  %v943_v0 = vadd.f32 %v942_v38, %v941_v33  ;;  %v5210_v1 = vld [vmem:[#allocation5 + $0x1d4] sm:$0xf]  ;;  %v4357_v20 = vld [vmem:[#allocation5 + $0x1d8] sm:$0xf0] }
 0x1fb   : > { %v1055_v2 = vadd.f32 %v1054_v61, %v1053_v16  ;;  %v1167_v5 = vadd.f32 %v1166_v37, %v1165_v35  ;;  %v1502_v56 = vrot.slane %v1501_v54, 1  ;;  %v1279_v12 = vadd.f32 %v1278_v57, %v1277_v4  ;;  %v5160_v10 = vld [vmem:[#allocation5 + $0x44] sm:$0xf]  ;;  %v4157_v4 = vld [vmem:[#allocation5 + $0x48] sm:$0xf0] }
 0x1fc   : > { %v1391_v49 = vadd.f32 %v1390_v30, %v1389_v7  ;;  %v1519_v42 = vpack.c.bf16 %v719_v34, %v719_v34  ;;  %v1535_v32 = vpack.c.bf16 %v831_v6, %v831_v6  ;;  %v1551_v51 = vpack.c.bf16 %v943_v0, %v943_v0  ;;  %v5176_v7 = vld [vmem:[#allocation5 + $0xc4] sm:$0xf]  ;;  %v4221_v37 = vld [vmem:[#allocation5 + $0xc8] sm:$0xf0] }
 0x1fd   : > { %v1503_v41 = vadd.f32 %v1502_v56, %v1501_v54  ;;  %v1567_v63 = vpack.c.bf16 %v1055_v2, %v1055_v2  ;;  %v1583_v18 = vpack.c.bf16 %v1167_v5, %v1167_v5  ;;  %v1599_v39 = vpack.c.bf16 %v1279_v12, %v1279_v12  ;;  %v5192_v54 = vld [vmem:[#allocation5 + $0x144] sm:$0xf]  ;;  %v4285_v34 = vld [vmem:[#allocation5 + $0x148] sm:$0xf0] }
 0x1fe   : > { %v1615_v60 = vpack.c.bf16 %v1391_v49, %v1391_v49  ;;  %v2037_v9 = vunpack.c.l.b16 %v1519_v42  ;;  %v2053_v23 = vunpack.c.l.b16 %v1535_v32  ;;  %v2069_v11 = vunpack.c.l.b16 %v1551_v51  ;;  %v5208_v57 = vld [vmem:[#allocation5 + $0x1c4] sm:$0xf]  ;;  %v4349_v30 = vld [vmem:[#allocation5 + $0x1c8] sm:$0xf0]  ;;  %v5158_v49 = vld [vmem:[#allocation5 + $0x34] sm:$0xf] }
 0x1ff   : > { %v1631_v19 = vpack.c.bf16 %v1503_v41, %v1503_v41  ;;  %v2085_v36 = vunpack.c.l.b16 %v1567_v63  ;;  %v2101_v58 = vunpack.c.l.b16 %v1583_v18  ;;  %v2117_v15 = vunpack.c.l.b16 %v1599_v39  ;;  %v4149_v42 = vld [vmem:[#allocation5 + $0x38] sm:$0xf0]  ;;  %v5174_v32 = vld [vmem:[#allocation5 + $0xb4] sm:$0xf]  ;;  %v5156_v39 = vld [vmem:[#allocation5 + $0x24] sm:$0xf] }
 0x200   : > { %v2262_v26 = vsel %vm2150_vm0, %v2053_v23, %v2037_v9  ;;  %v4176_v43 = vor.u32 %v5164_v62, %v4173_v29  ;;  %v2133_v48 = vunpack.c.l.b16 %v1615_v60  ;;  %v4240_v13 = vor.u32 %v5180_v59, %v4237_v44  ;;  %v4213_v29 = vld [vmem:[#allocation5 + $0xb8] sm:$0xf0]  ;;  %v5190_v41 = vld [vmem:[#allocation5 + $0x134] sm:$0xf]  ;;  %v4141_v60 = vld [vmem:[#allocation5 + $0x28] sm:$0xf0] }
 0x201   : > { %v2263_v8 = vsel %vm2152_vm1, %v2069_v11, %v2262_v26  ;;  %v4304_v31 = vor.u32 %v5196_v25, %v4301_v46  ;;  %v2149_v14 = vunpack.c.l.b16 %v1631_v19  ;;  %v4368_v33 = vor.u32 %v5212_v47, %v4365_v53  ;;  %v4277_v51 = vld [vmem:[#allocation5 + $0x138] sm:$0xf0]  ;;  %v5206_v63 = vld [vmem:[#allocation5 + $0x1b4] sm:$0xf]  ;;  %v5172_v9 = vld [vmem:[#allocation5 + $0xa4] sm:$0xf] }
 0x202   : > { %v2264_v45 = vsel %vm2154_vm2, %v2085_v36, %v2263_v8  ;;  %3790 = vmatpush.bf16.msra.mxu0 %v4176_v43  ;;  %v4168_v16 = vor.u32 %v5162_v24, %v4165_v22  ;;  %3803 = vmatpush.bf16.msra.mxu1 %v4240_v13  ;;  %v4232_v27 = vor.u32 %v5178_v3, %v4229_v50  ;;  %v4341_v18 = vld [vmem:[#allocation5 + $0x1b8] sm:$0xf0]  ;;  %v4205_v46 = vld [vmem:[#allocation5 + $0xa8] sm:$0xf0]  ;;  %v5188_v47 = vld [vmem:[#allocation5 + $0x124] sm:$0xf] }
 0x203   : > { %v2265_v35 = vsel %vm2156_vm3, %v2101_v58, %v2264_v45  ;;  %3816 = vmatpush.bf16.msra.mxu2 %v4304_v31  ;;  %v4296_v21 = vor.u32 %v5194_v17, %v4293_v52  ;;  %3829 = vmatpush.bf16.msra.mxu3 %v4368_v33  ;;  %v4360_v61 = vor.u32 %v5210_v1, %v4357_v20  ;;  %v4269_v53 = vld [vmem:[#allocation5 + $0x128] sm:$0xf0]  ;;  %v5204_v19 = vld [vmem:[#allocation5 + $0x1a4] sm:$0xf]  ;;  %v5154_v22 = vld [vmem:[#allocation5 + $0x14] sm:$0xf] }
 0x204   : > { %v2266_v38 = vsel %vm2158_vm4, %v2117_v15, %v2265_v35  ;;  %v4160_v2 = vor.u32 %v5160_v10, %v4157_v4  ;;  %v4224_v56 = vor.u32 %v5176_v7, %v4221_v37  ;;  %v4288_v12 = vor.u32 %v5192_v54, %v4285_v34  ;;  %v4333_v11 = vld [vmem:[#allocation5 + $0x1a8] sm:$0xf0]  ;;  %v4133_v3 = vld [vmem:[#allocation5 + $0x18] sm:$0xf0]  ;;  %v5170_v15 = vld [vmem:[#allocation5 + $0x94] sm:$0xf] }
 0x205   : > { %v2267_v6 = vsel %vm2160_vm5, %v2133_v48, %v2266_v38  ;;  %v4352_v62 = vor.u32 %v5208_v57, %v4349_v30  ;;  %v4152_v59 = vor.u32 %v5158_v49, %v4149_v42  ;;  %v4216_v44 = vor.u32 %v5174_v32, %v4213_v29  ;;  %v4197_v43 = vld [vmem:[#allocation5 + $0x98] sm:$0xf0]  ;;  %v5186_v50 = vld [vmem:[#allocation5 + $0x114] sm:$0xf]  ;;  %v5152_v13 = vld [vmem:[#allocation5 + $0x4] sm:$0xf] }
 0x206   : > { %v2268_v0 = vsel %vm2162_vm6, %v2149_v14, %v2267_v6  ;;  %3791 = vmatpush.bf16.msra.mxu0 %v4168_v16  ;;  %3804 = vmatpush.bf16.msra.mxu1 %v4232_v27  ;;  %v4280_v25 = vor.u32 %v5190_v41, %v4277_v51  ;;  %v4344_v23 = vor.u32 %v5206_v63, %v4341_v18  ;;  %v4261_v17 = vld [vmem:[#allocation5 + $0x118] sm:$0xf0]  ;;  %v5202_v52 = vld [vmem:[#allocation5 + $0x194] sm:$0xf]  ;;  %v4125_v31 = vld [vmem:[#allocation5 + $0x8] sm:$0xf0] }
 0x207   : > { %v7195_v5 = vpack.c.b16 %v2268_v0, %v2268_v0  ;;  %3817 = vmatpush.bf16.msra.mxu2 %v4296_v21  ;;  %3830 = vmatpush.bf16.msra.mxu3 %v4360_v61  ;;  %v4144_v36 = vor.u32 %v5156_v39, %v4141_v60  ;;  %v4208_v58 = vor.u32 %v5172_v9, %v4205_v46  ;;  %v4325_v48 = vld [vmem:[#allocation5 + $0x198] sm:$0xf0]  ;;  %v5168_v14 = vld [vmem:[#allocation5 + $0x84] sm:$0xf]  ;;  %v4189_v45 = vld [vmem:[#allocation5 + $0x88] sm:$0xf0]  ;;  %v3590_v39 = vpop.f32.mrf.mxu0  ;;  %v3603_v60 = vpop.f32.mrf.mxu1 }
 0x208   : > { %v4272_v24 = vor.u32 %v5188_v47, %v4269_v53  ;;  %v4336_v26 = vor.u32 %v5204_v19, %v4333_v11  ;;  %v4136_v8 = vor.u32 %v5154_v22, %v4133_v3  ;;  %v4200_v1 = vor.u32 %v5170_v15, %v4197_v43  ;;  %v5184_v33 = vld [vmem:[#allocation5 + $0x104] sm:$0xf]  ;;  %v4253_v35 = vld [vmem:[#allocation5 + $0x108] sm:$0xf0]  ;;  %v5230_v10 = vld [vmem:[#allocation5 + $0x274] sm:$0xf] }
 0x209   : > { %3784 = vmatmul.bf16.vlgmr.msrb.gmra.mxu3 %v7195_v5  ;;  %v4264_v20 = vor.u32 %v5186_v50, %v4261_v17  ;;  %v4328_v16 = vor.u32 %v5202_v52, %v4325_v48  ;;  %v5200_v27 = vld [vmem:[#allocation5 + $0x184] sm:$0xf]  ;;  %v4317_v21 = vld [vmem:[#allocation5 + $0x188] sm:$0xf0]  ;;  %v4437_v4 = vld [vmem:[#allocation5 + $0x278] sm:$0xf0]  ;;  %v4128_v38 = vor.u32 %v5152_v13, %v4125_v31  ;;  %v4192_v34 = vor.u32 %v5168_v14, %v4189_v45  ;;  %v3616_v52 = vpop.f32.mrf.mxu2  ;;  %v3629_v48 = vpop.f32.mrf.mxu3 }
 0x20a   : > { %3792 = vmatpush.bf16.msra.mxu0 %v4160_v2  ;;  %3805 = vmatpush.bf16.msra.mxu1 %v4224_v56  ;;  %v5246_v7 = vld [vmem:[#allocation5 + $0x2f4] sm:$0xf]  ;;  %v4501_v61 = vld [vmem:[#allocation5 + $0x2f8] sm:$0xf0]  ;;  %v4256_v6 = vor.u32 %v5184_v33, %v4253_v35  ;;  %v4320_v0 = vor.u32 %v5200_v27, %v4317_v21  ;;  %v4440_v2 = vor.u32 %v5230_v10, %v4437_v4  ;;  %v5228_v49 = vld [vmem:[#allocation5 + $0x264] sm:$0xf] }
 0x20b   : > { %3818 = vmatpush.bf16.msra.mxu2 %v4288_v12  ;;  %3831 = vmatpush.bf16.msra.mxu3 %v4352_v62  ;;  %v5262_v37 = vld [vmem:[#allocation5 + $0x374] sm:$0xf]  ;;  %v4565_v54 = vld [vmem:[#allocation5 + $0x378] sm:$0xf0]  ;;  %v4504_v56 = vor.u32 %v5246_v7, %v4501_v61  ;;  %v4429_v42 = vld [vmem:[#allocation5 + $0x268] sm:$0xf0] }
 0x20c   : > { %v5278_v57 = vld [vmem:[#allocation5 + $0x3f4] sm:$0xf]  ;;  %v4629_v30 = vld [vmem:[#allocation5 + $0x3f8] sm:$0xf0]  ;;  %v4568_v12 = vor.u32 %v5262_v37, %v4565_v54  ;;  %v5244_v32 = vld [vmem:[#allocation5 + $0x2e4] sm:$0xf] }
 0x20d   : > { %v4632_v62 = vor.u32 %v5278_v57, %v4629_v30  ;;  %v4493_v29 = vld [vmem:[#allocation5 + $0x2e8] sm:$0xf0]  ;;  %v5260_v41 = vld [vmem:[#allocation5 + $0x364] sm:$0xf]  ;;  %v5242_v46 = vld [vmem:[#allocation5 + $0x2d4] sm:$0xf] }
 0x20e   : > { %3793 = vmatpush.bf16.msra.mxu0 %v4152_v59  ;;  %3806 = vmatpush.bf16.msra.mxu1 %v4216_v44  ;;  %v4557_v51 = vld [vmem:[#allocation5 + $0x368] sm:$0xf0]  ;;  %v5276_v63 = vld [vmem:[#allocation5 + $0x3e4] sm:$0xf]  ;;  %v4432_v59 = vor.u32 %v5228_v49, %v4429_v42  ;;  %v5226_v44 = vld [vmem:[#allocation5 + $0x254] sm:$0xf]  ;;  %v4496_v9 = vor.u32 %v5244_v32, %v4493_v29 }
 0x20f   : > { %3819 = vmatpush.bf16.msra.mxu2 %v4280_v25  ;;  %3832 = vmatpush.bf16.msra.mxu3 %v4344_v23  ;;  %v4621_v18 = vld [vmem:[#allocation5 + $0x3e8] sm:$0xf0]  ;;  %v4421_v25 = vld [vmem:[#allocation5 + $0x258] sm:$0xf0]  ;;  %v4560_v23 = vor.u32 %v5260_v41, %v4557_v51  ;;  %v7198_v53 = vld [vmem:[#allocation7] sm:$0x3]  ;;  %v3592_v7 = vpop.f32.mrf.mxu0 }
 0x210   : > { %v4485_v47 = vld [vmem:[#allocation5 + $0x2d8] sm:$0xf0]  ;;  %v4624_v19 = vor.u32 %v5276_v63, %v4621_v18  ;;  %v5258_v11 = vld [vmem:[#allocation5 + $0x354] sm:$0xf]  ;;  %v7438_v15 = vld [vmem:[#allocation12_spill] sm:$0xff]  ;;  %v4424_v43 = vor.u32 %v5226_v44, %v4421_v25 }
 0x211   : > { %v5274_v22 = vld [vmem:[#allocation5 + $0x3d4] sm:$0xf]  ;;  %v4613_v3 = vld [vmem:[#allocation5 + $0x3d8] sm:$0xf0]  ;;  %v5224_v31 = vld [vmem:[#allocation5 + $0x244] sm:$0xf]  ;;  %v3618_v32 = vpop.f32.mrf.mxu2 }
 0x212   : > { %3794 = vmatpush.bf16.msra.mxu0 %v4144_v36  ;;  %3807 = vmatpush.bf16.msra.mxu1 %v4208_v58  ;;  %v4549_v36 = vld [vmem:[#allocation5 + $0x358] sm:$0xf0]  ;;  %v7440_v50 = vld [vmem:[#allocation14_spill] sm:$0xff]  ;;  %v4616_v14 = vor.u32 %v5274_v22, %v4613_v3  ;;  %v4477_v45 = vld [vmem:[#allocation5 + $0x2c8] sm:$0xf0] }
 0x213   : > { %3820 = vmatpush.bf16.msra.mxu2 %v4272_v24  ;;  %3833 = vmatpush.bf16.msra.mxu3 %v4336_v26  ;;  %v7437_v58 = vld [vmem:[#allocation15_spill] sm:$0xff]  ;;  %v1890_v24 = vperm.slane %v7198_v53, 0  ;;  %v7439_v26 = vld [vmem:[#allocation13_spill] sm:$0xff]  ;;  %v4552_v13 = vor.u32 %v5258_v11, %v4549_v36  ;;  %v5256_v33 = vld [vmem:[#allocation5 + $0x344] sm:$0xf] }
 0x214   : > { %v5272_v27 = vld [vmem:[#allocation5 + $0x3c4] sm:$0xf]  ;;  %v4605_v21 = vld [vmem:[#allocation5 + $0x3c8] sm:$0xf0]  ;;  %v5222_v54 = vld [vmem:[#allocation5 + $0x234] sm:$0xf] }
 0x215   : > { %v3591_v17 = vadd.f32 %v3590_v39, %v1890_v24  ;;  %v4608_v57 = vor.u32 %v5272_v27, %v4605_v21  ;;  %v4469_v30 = vld [vmem:[#allocation5 + $0x2b8] sm:$0xf0]  ;;  %v5220_v51 = vld [vmem:[#allocation5 + $0x224] sm:$0xf]  ;;  %v4397_v63 = vld [vmem:[#allocation5 + $0x228] sm:$0xf0] }
 0x216   : > { %3795 = vmatpush.bf16.msra.mxu0 %v4136_v8  ;;  %3808 = vmatpush.bf16.msra.mxu1 %v4200_v1  ;;  %v4488_v8 = vor.u32 %v5242_v46, %v4485_v47  ;;  %v4413_v1 = vld [vmem:[#allocation5 + $0x248] sm:$0xf0]  ;;  %v4597_v49 = vld [vmem:[#allocation5 + $0x3b8] sm:$0xf0]  ;;  %v5236_v18 = vld [vmem:[#allocation5 + $0x2a4] sm:$0xf] }
 0x217   : > { %3821 = vmatpush.bf16.msra.mxu2 %v4264_v20  ;;  %3834 = vmatpush.bf16.msra.mxu3 %v4328_v16  ;;  %v5240_v20 = vld [vmem:[#allocation5 + $0x2c4] sm:$0xf]  ;;  %v4541_v16 = vld [vmem:[#allocation5 + $0x348] sm:$0xf0]  ;;  %v3604_v35 = vadd.f32 %v3603_v60, %v3591_v17  ;;  %v4416_v10 = vor.u32 %v5224_v31, %v4413_v1  ;;  %v3642_v46 = vpop.f32.mrf.mxu0  ;;  %v5218_v36 = vld [vmem:[#allocation5 + $0x214] sm:$0xf] }
 0x218   : > { %v4480_v61 = vor.u32 %v5240_v20, %v4477_v45  ;;  %v4544_v37 = vor.u32 %v5256_v33, %v4541_v16  ;;  %v4461_v44 = vld [vmem:[#allocation5 + $0x2a8] sm:$0xf0]  ;;  %v5252_v25 = vld [vmem:[#allocation5 + $0x324] sm:$0xf]  ;;  %v5234_v24 = vld [vmem:[#allocation5 + $0x294] sm:$0xf] }
 0x219   : > { %v3617_v4 = vadd.f32 %v3616_v52, %v3604_v35  ;;  %v4525_v39 = vld [vmem:[#allocation5 + $0x328] sm:$0xf0]  ;;  %v5268_v60 = vld [vmem:[#allocation5 + $0x3a4] sm:$0xf]  ;;  %v4581_v17 = vld [vmem:[#allocation5 + $0x398] sm:$0xf0]  ;;  %v3668_v31 = vpop.f32.mrf.mxu2 }
 0x21a   : > { %3796 = vmatpush.bf16.msra.mxu0 %v4128_v38  ;;  %3809 = vmatpush.bf16.msra.mxu1 %v4192_v34  ;;  %v3605_v38 = vpop.f32.mrf.mxu1  ;;  %v4405_v34 = vld [vmem:[#allocation5 + $0x238] sm:$0xf0]  ;;  %v4528_v11 = vor.u32 %v5252_v25, %v4525_v39  ;;  %v5232_v45 = vld [vmem:[#allocation5 + $0x284] sm:$0xf]  ;;  %v4445_v33 = vld [vmem:[#allocation5 + $0x288] sm:$0xf0] }
 0x21b   : > { %3822 = vmatpush.bf16.msra.mxu2 %v4256_v6  ;;  %3835 = vmatpush.bf16.msra.mxu3 %v4320_v0  ;;  %v5238_v6 = vld [vmem:[#allocation5 + $0x2b4] sm:$0xf]  ;;  %v4408_v42 = vor.u32 %v5222_v54, %v4405_v34  ;;  %v5248_v16 = vld [vmem:[#allocation5 + $0x304] sm:$0xf]  ;;  %v4509_v21 = vld [vmem:[#allocation5 + $0x308] sm:$0xf0] }
 0x21c   : > { %v5254_v0 = vld [vmem:[#allocation5 + $0x334] sm:$0xf]  ;;  %v4472_v29 = vor.u32 %v5238_v6, %v4469_v30  ;;  %v4693_v38 = vld [vmem:[#allocation5 + $0x478] sm:$0xf0]  ;;  %v4813_v25 = vld [vmem:[#allocation5 + $0x568] sm:$0xf0] }
 0x21d   : > { %3797 = vmatmul.bf16.vlgmr.msra.gmra.mxu0 %v7438_v15  ;;  %3810 = vmatmul.bf16.vlgmr.msra.gmra.mxu1 %v7440_v50  ;;  %v4453_v15 = vld [vmem:[#allocation5 + $0x298] sm:$0xf0]  ;;  %v5266_v50 = vld [vmem:[#allocation5 + $0x394] sm:$0xf] }
 0x21e   : > { %3841 = vmatpush.bf16.msrb.mxu0 %v4440_v2  ;;  %3854 = vmatpush.bf16.msrb.mxu1 %v4504_v56  ;;  %v4533_v2 = vld [vmem:[#allocation5 + $0x338] sm:$0xf0]  ;;  %v3630_v56 = vadd.f32 %v3629_v48, %v3617_v4  ;;  %v4456_v20 = vor.u32 %v5234_v24, %v4453_v15  ;;  %v4584_v27 = vor.u32 %v5266_v50, %v4581_v17  ;;  %v4573_v4 = vld [vmem:[#allocation5 + $0x388] sm:$0xf0]  ;;  %v5294_v7 = vld [vmem:[#allocation5 + $0x474] sm:$0xf] }
 0x21f   : > { %3867 = vmatpush.bf16.msrb.mxu2 %v4568_v12  ;;  %3880 = vmatpush.bf16.msrb.mxu3 %v4632_v62  ;;  %v5270_v12 = vld [vmem:[#allocation5 + $0x3b4] sm:$0xf]  ;;  %v3631_v62 = vpop.f32.mrf.mxu3  ;;  %v4536_v41 = vor.u32 %v5254_v0, %v4533_v2  ;;  %v4757_v34 = vld [vmem:[#allocation5 + $0x4f8] sm:$0xf0]  ;;  %v3644_v30 = vpop.f32.mrf.mxu0  ;;  %v4448_v2 = vor.u32 %v5232_v45, %v4445_v33  ;;  %v4696_v32 = vor.u32 %v5294_v7, %v4693_v38  ;;  %v7443_v50 = vld [vmem:[#allocation16_spill] sm:$0xff] }
 0x220   : > { %3823 = vmatmul.bf16.vlgmr.msra.gmra.mxu2 %v7437_v58  ;;  %3836 = vmatmul.bf16.vlgmr.msra.gmra.mxu3 %v7439_v26  ;;  %v4389_v58 = vld [vmem:[#allocation5 + $0x218] sm:$0xf0]  ;;  %v3643_v22 = vadd.f32 %v3642_v46, %v3630_v56  ;;  %v5250_v26 = vld [vmem:[#allocation5 + $0x314] sm:$0xf]  ;;  %v4512_v56 = vor.u32 %v5248_v16, %v4509_v21  ;;  %v4733_v33 = vld [vmem:[#allocation5 + $0x4c8] sm:$0xf0] }
 0x221   : > { %v4392_v48 = vor.u32 %v5218_v36, %v4389_v58  ;;  %v5326_v6 = vld [vmem:[#allocation5 + $0x574] sm:$0xf]  ;;  %v3670_v39 = vpop.f32.mrf.mxu2  ;;  %v4677_v36 = vld [vmem:[#allocation5 + $0x458] sm:$0xf0]  ;;  %v5320_v16 = vld [vmem:[#allocation5 + $0x544] sm:$0xf] }
 0x222   : > { %3842 = vmatpush.bf16.msrb.mxu0 %v4432_v59  ;;  %3855 = vmatpush.bf16.msrb.mxu1 %v4496_v9  ;;  %v4600_v59 = vor.u32 %v5270_v12, %v4597_v49  ;;  %v4589_v9 = vld [vmem:[#allocation5 + $0x3a8] sm:$0xf0]  ;;  %v3655_v47 = vpop.f32.mrf.mxu1  ;;  %v5342_v12 = vld [vmem:[#allocation5 + $0x5f4] sm:$0xf]  ;;  %v4885_v49 = vld [vmem:[#allocation5 + $0x5f8] sm:$0xf0] }
 0x223   : > { %3868 = vmatpush.bf16.msrb.mxu2 %v4560_v23  ;;  %3881 = vmatpush.bf16.msrb.mxu3 %v4624_v19  ;;  %v4400_v23 = vor.u32 %v5220_v51, %v4397_v63  ;;  %v4464_v19 = vor.u32 %v5236_v18, %v4461_v44  ;;  %v4592_v3 = vor.u32 %v5268_v60, %v4589_v9  ;;  %v4685_v51 = vld [vmem:[#allocation5 + $0x468] sm:$0xf0]  ;;  %v5308_v63 = vld [vmem:[#allocation5 + $0x4e4] sm:$0xf]  ;;  %v5306_v58 = vld [vmem:[#allocation5 + $0x4d4] sm:$0xf] }
 0x224   : > { %v3656_v52 = vadd.f32 %v3655_v47, %v3643_v22  ;;  %v4888_v18 = vor.u32 %v5342_v12, %v4885_v49  ;;  %v5324_v44 = vld [vmem:[#allocation5 + $0x564] sm:$0xf]  ;;  %v5322_v15 = vld [vmem:[#allocation5 + $0x554] sm:$0xf]  ;;  %v4861_v21 = vld [vmem:[#allocation5 + $0x5c8] sm:$0xf0] }
 0x225   : > { %v5340_v9 = vld [vmem:[#allocation5 + $0x5e4] sm:$0xf]  ;;  %v5338_v17 = vld [vmem:[#allocation5 + $0x5d4] sm:$0xf] }
 0x226   : > { %3843 = vmatpush.bf16.msrb.mxu0 %v4424_v43  ;;  %3856 = vmatpush.bf16.msrb.mxu1 %v4488_v8  ;;  %v4517_v43 = vld [vmem:[#allocation5 + $0x318] sm:$0xf0]  ;;  %v5216_v8 = vld [vmem:[#allocation5 + $0x204] sm:$0xf]  ;;  %v3669_v35 = vadd.f32 %v3668_v31, %v3656_v52  ;;  %v5286_v38 = vld [vmem:[#allocation5 + $0x434] sm:$0xf] }
 0x227   : > { %3869 = vmatpush.bf16.msrb.mxu2 %v4552_v13  ;;  %3882 = vmatpush.bf16.msrb.mxu3 %v4616_v14  ;;  %v4381_v13 = vld [vmem:[#allocation5 + $0x208] sm:$0xf0]  ;;  %v3681_v1 = vpop.f32.mrf.mxu3  ;;  %v4520_v14 = vor.u32 %v5250_v26, %v4517_v43  ;;  %v7441_v22 = vld [vmem:[#allocation20_spill] sm:$0xff]  ;;  %v4805_v26 = vld [vmem:[#allocation5 + $0x558] sm:$0xf0] }
 0x228   : > { %v4384_v54 = vor.u32 %v5216_v8, %v4381_v13  ;;  %v7442_v43 = vld [vmem:[#allocation21_spill] sm:$0xff]  ;;  %v4869_v52 = vld [vmem:[#allocation5 + $0x5d8] sm:$0xf0]  ;;  %v4808_v31 = vor.u32 %v5322_v15, %v4805_v26  ;;  %v5318_v30 = vld [vmem:[#allocation5 + $0x534] sm:$0xf] }
 0x229   : > { %v7444_v8 = vld [vmem:[#allocation17_spill] sm:$0xff]  ;;  %v4872_v45 = vor.u32 %v5338_v17, %v4869_v52  ;;  %v5330_v15 = vld [vmem:[#allocation5 + $0x594] sm:$0xf]  ;;  %v4837_v26 = vld [vmem:[#allocation5 + $0x598] sm:$0xf0] }
 0x22a   : > { %3844 = vmatpush.bf16.msrb.mxu0 %v4416_v10  ;;  %3857 = vmatpush.bf16.msrb.mxu1 %v4480_v61  ;;  %v5264_v10 = vld [vmem:[#allocation5 + $0x384] sm:$0xf]  ;;  %v5310_v61 = vld [vmem:[#allocation5 + $0x4f4] sm:$0xf]  ;;  %v3657_v0 = vpop.f32.mrf.mxu1  ;;  %v4637_v17 = vld [vmem:[#allocation5 + $0x408] sm:$0xf0] }
 0x22b   : > { %3870 = vmatpush.bf16.msrb.mxu2 %v4544_v37  ;;  %3883 = vmatpush.bf16.msrb.mxu3 %v4608_v57  ;;  %v7205_v37 = vadd.f32 %v3681_v1, %v3669_v35  ;;  %v4821_v57 = vld [vmem:[#allocation5 + $0x578] sm:$0xf0]  ;;  %v4760_v62 = vor.u32 %v5310_v61, %v4757_v34  ;;  %v5288_v1 = vld [vmem:[#allocation5 + $0x444] sm:$0xf]  ;;  %v4797_v35 = vld [vmem:[#allocation5 + $0x548] sm:$0xf0]  ;;  %v7211_v34 = vpop.f32.mrf.mxu0 }
 0x22c   : > { %v4800_v7 = vor.u32 %v5320_v16, %v4797_v35  ;;  %v4661_v61 = vld [vmem:[#allocation5 + $0x438] sm:$0xf0]  ;;  %v5358_v16 = vld [vmem:[#allocation5 + $0x674] sm:$0xf] }
 0x22d   : > { %v4789_v0 = vld [vmem:[#allocation5 + $0x538] sm:$0xf0]  ;;  %v4664_v12 = vor.u32 %v5286_v38, %v4661_v61 }
 0x22e   : > { %3845 = vmatpush.bf16.msrb.mxu0 %v4408_v42  ;;  %3858 = vmatpush.bf16.msrb.mxu1 %v4472_v29  ;;  %v4576_v42 = vor.u32 %v5264_v10, %v4573_v4  ;;  %v4824_v29 = vor.u32 %v5326_v6, %v4821_v57  ;;  %v4725_v57 = vld [vmem:[#allocation5 + $0x4b8] sm:$0xf0] }
 0x22f   : > { %3871 = vmatpush.bf16.msrb.mxu2 %v4536_v41  ;;  %3884 = vmatpush.bf16.msrb.mxu3 %v4600_v59  ;;  %v5292_v41 = vld [vmem:[#allocation5 + $0x464] sm:$0xf]  ;;  %v4749_v59 = vld [vmem:[#allocation5 + $0x4e8] sm:$0xf0]  ;;  %v3683_v60 = vpop.f32.mrf.mxu3  ;;  %v4949_v35 = vld [vmem:[#allocation5 + $0x678] sm:$0xf0] }
 0x230   : > { %v4688_v46 = vor.u32 %v5292_v41, %v4685_v51  ;;  %v4752_v47 = vor.u32 %v5308_v63, %v4749_v59  ;;  %v5300_v41 = vld [vmem:[#allocation5 + $0x4a4] sm:$0xf]  ;;  %v4717_v63 = vld [vmem:[#allocation5 + $0x4a8] sm:$0xf0]  ;;  %v7215_v60 = vpop.f32.mrf.mxu2 }
 0x231   : > { %v4781_v59 = vld [vmem:[#allocation5 + $0x528] sm:$0xf0] }
 0x232   : > { %3846 = vmatpush.bf16.msrb.mxu0 %v4400_v23  ;;  %3859 = vmatpush.bf16.msrb.mxu1 %v4464_v19  ;;  %v4877_v23 = vld [vmem:[#allocation5 + $0x5e8] sm:$0xf0]  ;;  %v4816_v19 = vor.u32 %v5324_v44, %v4813_v25  ;;  %v7213_v49 = vpop.f32.mrf.mxu1  ;;  %v5332_v44 = vld [vmem:[#allocation5 + $0x5a4] sm:$0xf] }
 0x233   : > { %3872 = vmatpush.bf16.msrb.mxu2 %v4528_v11  ;;  %3885 = vmatpush.bf16.msrb.mxu3 %v4592_v3  ;;  %v5290_v11 = vld [vmem:[#allocation5 + $0x454] sm:$0xf]  ;;  %v4880_v24 = vor.u32 %v5340_v9, %v4877_v23  ;;  %v4741_v3 = vld [vmem:[#allocation5 + $0x4d8] sm:$0xf0]  ;;  %v4845_v25 = vld [vmem:[#allocation5 + $0x5a8] sm:$0xf0]  ;;  %v4720_v23 = vor.u32 %v5300_v41, %v4717_v63 }
 0x234   : > { %v4744_v13 = vor.u32 %v5306_v58, %v4741_v3  ;;  %v4848_v58 = vor.u32 %v5332_v44, %v4845_v25  ;;  %v4773_v3 = vld [vmem:[#allocation5 + $0x518] sm:$0xf0]  ;;  %v5005_v41 = vld [vmem:[#allocation5 + $0x6e8] sm:$0xf0] }
 0x235   : > { %v5069_v63 = vld [vmem:[#allocation5 + $0x768] sm:$0xf0] }
 0x236   : > { %3847 = vmatpush.bf16.msrb.mxu0 %v4392_v48  ;;  %3860 = vmatpush.bf16.msrb.mxu1 %v4456_v20  ;;  %v4680_v48 = vor.u32 %v5290_v11, %v4677_v36  ;;  %v4669_v20 = vld [vmem:[#allocation5 + $0x448] sm:$0xf0]  ;;  %v5298_v11 = vld [vmem:[#allocation5 + $0x494] sm:$0xf]  ;;  %v3696_v36 = vpop.f32.mrf.mxu0 }
 0x237   : > { %3873 = vmatpush.bf16.msrb.mxu2 %v4520_v14  ;;  %3886 = vmatpush.bf16.msrb.mxu3 %v4584_v27  ;;  %v5304_v14 = vld [vmem:[#allocation5 + $0x4c4] sm:$0xf]  ;;  %v4672_v10 = vor.u32 %v5288_v1, %v4669_v20  ;;  %v7217_v9 = vpop.f32.mrf.mxu3  ;;  %v4840_v20 = vor.u32 %v5330_v15, %v4837_v26  ;;  %v7447_v15 = vld [vmem:[#allocation19_spill] sm:$0xff]  ;;  %v5402_v26 = vld [vmem:[#allocation5 + $0x7d4] sm:$0xf] }
 0x238   : > { %v5336_v27 = vld [vmem:[#allocation5 + $0x5c4] sm:$0xf]  ;;  %v4736_v4 = vor.u32 %v5304_v14, %v4733_v33  ;;  %v4765_v14 = vld [vmem:[#allocation5 + $0x508] sm:$0xf0]  ;;  %v3722_v38 = vpop.f32.mrf.mxu2 }
 0x239   : > { %v4864_v6 = vor.u32 %v5336_v27, %v4861_v21  ;;  %v5312_v1 = vld [vmem:[#allocation5 + $0x504] sm:$0xf]  ;;  %v4829_v33 = vld [vmem:[#allocation5 + $0x588] sm:$0xf0]  ;;  %v5374_v27 = vld [vmem:[#allocation5 + $0x6f4] sm:$0xf] }
 0x23a   : > { %3848 = vmatpush.bf16.msrb.mxu0 %v4384_v54  ;;  %3861 = vmatpush.bf16.msrb.mxu1 %v4448_v2  ;;  %v5302_v54 = vld [vmem:[#allocation5 + $0x4b4] sm:$0xf]  ;;  %v3709_v52 = vpop.f32.mrf.mxu1 }
 0x23b   : > { %3874 = vmatpush.bf16.msrb.mxu2 %v4512_v56  ;;  %3887 = vmatpush.bf16.msrb.mxu3 %v4576_v42  ;;  %v5334_v2 = vld [vmem:[#allocation5 + $0x5b4] sm:$0xf]  ;;  %v4853_v56 = vld [vmem:[#allocation5 + $0x5b8] sm:$0xf0]  ;;  %v4728_v42 = vor.u32 %v5302_v54, %v4725_v57 }
 0x23c   : > { %v4856_v51 = vor.u32 %v5334_v2, %v4853_v56  ;;  %v5406_v57 = vld [vmem:[#allocation5 + $0x7f4] sm:$0xf]  ;;  %v4952_v2 = vor.u32 %v5358_v16, %v4949_v35  ;;  %v5400_v16 = vld [vmem:[#allocation5 + $0x7c4] sm:$0xf]  ;;  %v5117_v35 = vld [vmem:[#allocation5 + $0x7c8] sm:$0xf0] }
 0x23d   : > { %3849 = vmatmul.bf16.vlgmr.msrb.gmra.mxu0 %v7442_v43  ;;  %3862 = vmatmul.bf16.vlgmr.msrb.gmra.mxu1 %v7444_v8  ;;  %v5366_v38 = vld [vmem:[#allocation5 + $0x6b4] sm:$0xf] }
 0x23e   : > { %3893 = vmatpush.bf16.msra.mxu0 %v4696_v32  ;;  %3906 = vmatpush.bf16.msra.mxu1 %v4760_v62  ;;  %v4792_v32 = vor.u32 %v5318_v30, %v4789_v0  ;;  %v5284_v62 = vld [vmem:[#allocation5 + $0x424] sm:$0xf]  ;;  %v5141_v30 = vld [vmem:[#allocation5 + $0x7f8] sm:$0xf0] }
 0x23f   : > { %3919 = vmatpush.bf16.msra.mxu2 %v4824_v29  ;;  %3932 = vmatpush.bf16.msra.mxu3 %v4888_v18  ;;  %v4653_v29 = vld [vmem:[#allocation5 + $0x428] sm:$0xf0]  ;;  %v5316_v18 = vld [vmem:[#allocation5 + $0x524] sm:$0xf]  ;;  %v3735_v61 = vpop.f32.mrf.mxu3 }
 0x240   : > { %3875 = vmatmul.bf16.vlgmr.msrb.gmra.mxu2 %v7441_v22  ;;  %3888 = vmatmul.bf16.vlgmr.msrb.gmra.mxu3 %v7443_v50  ;;  %v4656_v39 = vor.u32 %v5284_v62, %v4653_v29  ;;  %v5314_v22 = vld [vmem:[#allocation5 + $0x514] sm:$0xf]  ;;  %v5280_v50 = vld [vmem:[#allocation5 + $0x404] sm:$0xf]  ;;  %v5144_v29 = vor.u32 %v5406_v57, %v5141_v30  ;;  %v5045_v30 = vld [vmem:[#allocation5 + $0x738] sm:$0xf0] }
 0x241   : > { %v4776_v8 = vor.u32 %v5314_v22, %v4773_v3  ;;  %v4640_v21 = vor.u32 %v5280_v50, %v4637_v17  ;;  %v5372_v62 = vld [vmem:[#allocation5 + $0x6e4] sm:$0xf]  ;;  %v5061_v22 = vld [vmem:[#allocation5 + $0x758] sm:$0xf0]  ;;  %v7446_v3 = vld [vmem:[#allocation18_spill] sm:$0xff] }
 0x242   : > { %3894 = vmatpush.bf16.msra.mxu0 %v4688_v46  ;;  %3907 = vmatpush.bf16.msra.mxu1 %v4752_v47  ;;  %v4784_v46 = vor.u32 %v5316_v18, %v4781_v59  ;;  %v5282_v47 = vld [vmem:[#allocation5 + $0x414] sm:$0xf]  ;;  %v5404_v18 = vld [vmem:[#allocation5 + $0x7e4] sm:$0xf]  ;;  %v5133_v59 = vld [vmem:[#allocation5 + $0x7e8] sm:$0xf0]  ;;  %v5008_v25 = vor.u32 %v5372_v62, %v5005_v41 }
 0x243   : > { %3920 = vmatpush.bf16.msra.mxu2 %v4816_v19  ;;  %3933 = vmatpush.bf16.msra.mxu3 %v4880_v24  ;;  %v4645_v19 = vld [vmem:[#allocation5 + $0x418] sm:$0xf0]  ;;  %v5136_v36 = vor.u32 %v5404_v18, %v5133_v59  ;;  %v5382_v57 = vld [vmem:[#allocation5 + $0x734] sm:$0xf]  ;;  %v5348_v62 = vld [vmem:[#allocation5 + $0x624] sm:$0xf] }
 0x244   : > { %v4709_v24 = vld [vmem:[#allocation5 + $0x498] sm:$0xf0]  ;;  %v4648_v43 = vor.u32 %v5282_v47, %v4645_v19  ;;  %v5370_v47 = vld [vmem:[#allocation5 + $0x6d4] sm:$0xf]  ;;  %v7219_v19 = vpop.f32.mrf.mxu0  ;;  %v5364_v41 = vld [vmem:[#allocation5 + $0x6a4] sm:$0xf] }
 0x245   : > { %v7448_v50 = vld [vmem:[#allocation27_spill] sm:$0xff]  ;;  %v5380_v18 = vld [vmem:[#allocation5 + $0x724] sm:$0xf]  ;;  %v5037_v59 = vld [vmem:[#allocation5 + $0x728] sm:$0xf0] }
 0x246   : > { %3895 = vmatpush.bf16.msra.mxu0 %v4680_v48  ;;  %3908 = vmatpush.bf16.msra.mxu1 %v4744_v13  ;;  %v4712_v48 = vor.u32 %v5298_v11, %v4709_v24  ;;  %v5296_v13 = vld [vmem:[#allocation5 + $0x484] sm:$0xf]  ;;  %v5386_v24 = vld [vmem:[#allocation5 + $0x754] sm:$0xf] }
 0x247   : > { %3921 = vmatpush.bf16.msra.mxu2 %v4808_v31  ;;  %3934 = vmatpush.bf16.msra.mxu3 %v4872_v45  ;;  %v4701_v31 = vld [vmem:[#allocation5 + $0x488] sm:$0xf0]  ;;  %v5328_v45 = vld [vmem:[#allocation5 + $0x584] sm:$0xf] }
 0x248   : > { %v4704_v54 = vor.u32 %v5296_v13, %v4701_v31  ;;  %v4832_v0 = vor.u32 %v5328_v45, %v4829_v33  ;;  %v7445_v11 = vld [vmem:[#allocation24_spill] sm:$0xff]  ;;  %v4925_v31 = vld [vmem:[#allocation5 + $0x648] sm:$0xf0] }
 0x249   : > { %v5352_v13 = vld [vmem:[#allocation5 + $0x644] sm:$0xf]  ;;  %v5053_v33 = vld [vmem:[#allocation5 + $0x748] sm:$0xf0] }
 0x24a   : > { %3896 = vmatpush.bf16.msra.mxu0 %v4672_v10  ;;  %3909 = vmatpush.bf16.msra.mxu1 %v4736_v4  ;;  %v5013_v10 = vld [vmem:[#allocation5 + $0x6f8] sm:$0xf0]  ;;  %v5390_v4 = vld [vmem:[#allocation5 + $0x774] sm:$0xf]  ;;  %v5384_v45 = vld [vmem:[#allocation5 + $0x744] sm:$0xf] }
 0x24b   : > { %3922 = vmatpush.bf16.msra.mxu2 %v4800_v7  ;;  %3935 = vmatpush.bf16.msra.mxu3 %v4864_v6  ;;  %v5077_v7 = vld [vmem:[#allocation5 + $0x778] sm:$0xf0]  ;;  %v4768_v6 = vor.u32 %v5312_v1, %v4765_v14  ;;  %v5016_v56 = vor.u32 %v5374_v27, %v5013_v10  ;;  %v5368_v1 = vld [vmem:[#allocation5 + $0x6c4] sm:$0xf]  ;;  %v4989_v14 = vld [vmem:[#allocation5 + $0x6c8] sm:$0xf0]  ;;  %v4928_v27 = vor.u32 %v5352_v13, %v4925_v31 }
 0x24c   : > { %v5056_v10 = vor.u32 %v5384_v45, %v5053_v33  ;;  %v3748_v61 = vpop.f32.mrf.mxu0  ;;  %v5360_v13 = vld [vmem:[#allocation5 + $0x684] sm:$0xf] }
 0x24d   : > { %v5392_v33 = vld [vmem:[#allocation5 + $0x784] sm:$0xf] }
 0x24e   : > { %3897 = vmatpush.bf16.msra.mxu0 %v4664_v12  ;;  %3910 = vmatpush.bf16.msra.mxu1 %v4728_v42  ;;  %v5080_v12 = vor.u32 %v5390_v4, %v5077_v7  ;;  %v5356_v42 = vld [vmem:[#allocation5 + $0x664] sm:$0xf]  ;;  %v5350_v4 = vld [vmem:[#allocation5 + $0x634] sm:$0xf]  ;;  %v4917_v7 = vld [vmem:[#allocation5 + $0x638] sm:$0xf0] }
 0x24f   : > { %3923 = vmatpush.bf16.msra.mxu2 %v4792_v32  ;;  %3936 = vmatpush.bf16.msra.mxu3 %v4856_v51  ;;  %v4941_v32 = vld [vmem:[#allocation5 + $0x668] sm:$0xf0]  ;;  %v5388_v51 = vld [vmem:[#allocation5 + $0x764] sm:$0xf] }
 0x250   : > { %v4944_v44 = vor.u32 %v5356_v42, %v4941_v32  ;;  %v5048_v32 = vor.u32 %v5382_v57, %v5045_v30 }
 0x252   : > { %3898 = vmatpush.bf16.msra.mxu0 %v4656_v39  ;;  %3911 = vmatpush.bf16.msra.mxu1 %v4720_v23  ;;  %v5072_v39 = vor.u32 %v5388_v51, %v5069_v63  ;;  %v5354_v23 = vld [vmem:[#allocation5 + $0x654] sm:$0xf]  ;;  %v4973_v63 = vld [vmem:[#allocation5 + $0x6a8] sm:$0xf0] }
 0x253   : > { %3924 = vmatpush.bf16.msra.mxu2 %v4784_v46  ;;  %3937 = vmatpush.bf16.msra.mxu3 %v4848_v58  ;;  %v4933_v46 = vld [vmem:[#allocation5 + $0x658] sm:$0xf0] }
 0x254   : > { %v4997_v58 = vld [vmem:[#allocation5 + $0x6d8] sm:$0xf0]  ;;  %v4936_v17 = vor.u32 %v5354_v23, %v4933_v46  ;;  %v4976_v23 = vor.u32 %v5364_v41, %v4973_v63  ;;  %v5040_v46 = vor.u32 %v5380_v18, %v5037_v59 }
 0x256   : > { %3899 = vmatpush.bf16.msra.mxu0 %v4648_v43  ;;  %3912 = vmatpush.bf16.msra.mxu1 %v4712_v48  ;;  %v5125_v43 = vld [vmem:[#allocation5 + $0x7d8] sm:$0xf0]  ;;  %v5000_v48 = vor.u32 %v5370_v47, %v4997_v58  ;;  %v5346_v47 = vld [vmem:[#allocation5 + $0x614] sm:$0xf] }
 0x257   : > { %3925 = vmatpush.bf16.msra.mxu2 %v4776_v8  ;;  %3938 = vmatpush.bf16.msra.mxu3 %v4840_v20  ;;  %v5064_v8 = vor.u32 %v5386_v24, %v5061_v22  ;;  %v5128_v20 = vor.u32 %v5402_v26, %v5125_v43  ;;  %v4965_v24 = vld [vmem:[#allocation5 + $0x698] sm:$0xf0]  ;;  %v5378_v22 = vld [vmem:[#allocation5 + $0x714] sm:$0xf] }
 0x258   : > { %v5093_v26 = vld [vmem:[#allocation5 + $0x798] sm:$0xf0] }
 0x25a   : > { %3900 = vmatpush.bf16.msra.mxu0 %v4640_v21  ;;  %3913 = vmatpush.bf16.msra.mxu1 %v4704_v54  ;;  %v4992_v21 = vor.u32 %v5368_v1, %v4989_v14  ;;  %v5120_v54 = vor.u32 %v5400_v16, %v5117_v35  ;;  %v4957_v1 = vld [vmem:[#allocation5 + $0x688] sm:$0xf0] }
 0x25b   : > { %3926 = vmatpush.bf16.msra.mxu2 %v4768_v6  ;;  %3939 = vmatpush.bf16.msra.mxu3 %v4832_v0  ;;  %v4981_v6 = vld [vmem:[#allocation5 + $0x6b8] sm:$0xf0]  ;;  %v5398_v0 = vld [vmem:[#allocation5 + $0x7b4] sm:$0xf]  ;;  %v5021_v14 = vld [vmem:[#allocation5 + $0x708] sm:$0xf0] }
 0x25c   : > { %v7225_v52 = vpop.f32.mrf.mxu2  ;;  %v4984_v42 = vor.u32 %v5366_v38, %v4981_v6  ;;  %v5085_v16 = vld [vmem:[#allocation5 + $0x788] sm:$0xf0] }
 0x25d   : > { %3901 = vmatmul.bf16.vlgmr.msra.gmra.mxu0 %v7445_v11  ;;  %3914 = vmatmul.bf16.vlgmr.msra.gmra.mxu1 %v7447_v15  ;;  %v4901_v11 = vld [vmem:[#allocation5 + $0x618] sm:$0xf0]  ;;  %v5394_v15 = vld [vmem:[#allocation5 + $0x794] sm:$0xf] }
 0x25e   : > { %3945 = vmatpush.bf16.msrb.mxu0 %v4952_v2  ;;  %3958 = vmatpush.bf16.msrb.mxu1 %v5016_v56  ;;  %v5109_v2 = vld [vmem:[#allocation5 + $0x7b8] sm:$0xf0]  ;;  %v4920_v56 = vor.u32 %v5350_v4, %v4917_v7  ;;  %v4904_v43 = vor.u32 %v5346_v47, %v4901_v11  ;;  %v5096_v31 = vor.u32 %v5394_v15, %v5093_v26 }
 0x25f   : > { %3971 = vmatpush.bf16.msrb.mxu2 %v5080_v12  ;;  %3984 = vmatpush.bf16.msrb.mxu3 %v5144_v29  ;;  %v4909_v29 = vld [vmem:[#allocation5 + $0x628] sm:$0xf0]  ;;  %v5112_v51 = vor.u32 %v5398_v0, %v5109_v2  ;;  %v3695_v7 = vadd.f32 %v7211_v34, %v7205_v37 }
 0x260   : > { %3927 = vmatmul.bf16.vlgmr.msra.gmra.mxu2 %v7446_v3  ;;  %3940 = vmatmul.bf16.vlgmr.msra.gmra.mxu3 %v7448_v50  ;;  %v5029_v3 = vld [vmem:[#allocation5 + $0x718] sm:$0xf0] }
 0x261   : > { %v3708_v38 = vadd.f32 %v7213_v49, %v3695_v7 }
 0x262   : > { %3946 = vmatpush.bf16.msrb.mxu0 %v4944_v44  ;;  %3959 = vmatpush.bf16.msrb.mxu1 %v5008_v25  ;;  %v5396_v44 = vld [vmem:[#allocation5 + $0x7a4] sm:$0xf]  ;;  %v5101_v25 = vld [vmem:[#allocation5 + $0x7a8] sm:$0xf0] }
 0x263   : > { %3972 = vmatpush.bf16.msrb.mxu2 %v5072_v39  ;;  %3985 = vmatpush.bf16.msrb.mxu3 %v5136_v36  ;;  %v4912_v39 = vor.u32 %v5348_v62, %v4909_v29  ;;  %v5362_v36 = vld [vmem:[#allocation5 + $0x694] sm:$0xf]  ;;  %v5104_v58 = vor.u32 %v5396_v44, %v5101_v25  ;;  %v3721_v61 = vadd.f32 %v7215_v60, %v3708_v38 }
 0x264   : > { %v3774_v12 = vpop.f32.mrf.mxu2  ;;  %v4968_v50 = vor.u32 %v5362_v36, %v4965_v24 }
 0x266   : > { %3947 = vmatpush.bf16.msrb.mxu0 %v4936_v17  ;;  %3960 = vmatpush.bf16.msrb.mxu1 %v5000_v48  ;;  %v5032_v17 = vor.u32 %v5378_v22, %v5029_v3  ;;  %v5344_v48 = vld [vmem:[#allocation5 + $0x604] sm:$0xf] }
 0x267   : > { %3973 = vmatpush.bf16.msrb.mxu2 %v5064_v8  ;;  %3986 = vmatpush.bf16.msrb.mxu3 %v5128_v20  ;;  %v4893_v8 = vld [vmem:[#allocation5 + $0x608] sm:$0xf0]  ;;  %v5376_v20 = vld [vmem:[#allocation5 + $0x704] sm:$0xf] }
 0x268   : > { %v4896_v35 = vor.u32 %v5344_v48, %v4893_v8 }
 0x26a   : > { %3948 = vmatpush.bf16.msrb.mxu0 %v4928_v27  ;;  %3961 = vmatpush.bf16.msrb.mxu1 %v4992_v21  ;;  %v4960_v27 = vor.u32 %v5360_v13, %v4957_v1  ;;  %v5024_v21 = vor.u32 %v5376_v20, %v5021_v14 }
 0x26b   : > { %3974 = vmatpush.bf16.msrb.mxu2 %v5056_v10  ;;  %3987 = vmatpush.bf16.msrb.mxu3 %v5120_v54  ;;  %v5088_v10 = vor.u32 %v5392_v33, %v5085_v16  ;;  %v3734_v54 = vadd.f32 %v7217_v9, %v3721_v61 }
 0x26d   : > { %v3747_v6 = vadd.f32 %v7219_v19, %v3734_v54 }
 0x26e   : > { %3949 = vmatpush.bf16.msrb.mxu0 %v4920_v56  ;;  %3962 = vmatpush.bf16.msrb.mxu1 %v4984_v42  ;;  %v3759_v45 = vpop.f32.mrf.mxu1 }
 0x26f   : > { %3975 = vmatpush.bf16.msrb.mxu2 %v5048_v32  ;;  %3988 = vmatpush.bf16.msrb.mxu3 %v5112_v51  ;;  %v3760_v57 = vadd.f32 %v3759_v45, %v3747_v6 }
 0x271   : > { %v3773_v30 = vadd.f32 %v7225_v52, %v3760_v57 }
 0x272   : > { %3950 = vmatpush.bf16.msrb.mxu0 %v4912_v39  ;;  %3963 = vmatpush.bf16.msrb.mxu1 %v4976_v23 }
 0x273   : > { %3976 = vmatpush.bf16.msrb.mxu2 %v5040_v46  ;;  %3989 = vmatpush.bf16.msrb.mxu3 %v5104_v58 }
 0x276   : > { %3951 = vmatpush.bf16.msrb.mxu0 %v4904_v43  ;;  %3964 = vmatpush.bf16.msrb.mxu1 %v4968_v50  ;;  %v3761_v4 = vpop.f32.mrf.mxu1 }
 0x277   : > { %3977 = vmatpush.bf16.msrb.mxu2 %v5032_v17  ;;  %3990 = vmatpush.bf16.msrb.mxu3 %v5096_v31 }
 0x27a   : > { %3952 = vmatpush.bf16.msrb.mxu0 %v4896_v35  ;;  %3965 = vmatpush.bf16.msrb.mxu1 %v4960_v27 }
 0x27b   : > { %3978 = vmatpush.bf16.msrb.mxu2 %v5024_v21  ;;  %3991 = vmatpush.bf16.msrb.mxu3 %v5088_v10 }
 0x27d   : > { %3953 = vmatmul.bf16.vlgmr.msrb.gmra.mxu0 %v7133_v28  ;;  %3966 = vmatmul.bf16.vlgmr.msrb.gmra.mxu1 %v7185_v40  ;;  %v1891_v40 = vperm.slane %v7198_v53, 1 }
 0x27e   : > { %3979 = vmatmul.bf16.vlgmr.msrb.gmra.mxu2 %v7159_v55  ;;  %3992 = vmatmul.bf16.vlgmr.msrb.gmra.mxu3 %v7195_v5 }
 0x28c   : > { %v3785_v37 = vpop.f32.mrf.mxu3 }
 0x28d   : > { %v3786_v28 = vadd.f32 %v3785_v37, %v3773_v30 }
 0x28f   : > { %v3997_v34 = vmax.f32 %v3786_v28, 0.0 }
 0x291   : > { %3999 = vst [vmem:[%s7239_s23] sm:$0xff] %v3997_v34 }
 0x294   : > { %v3787_v55 = vpop.f32.mrf.mxu3 }
 0x29a   : > { %v3798_v5 = vpop.f32.mrf.mxu0  ;;  %v3811_v60 = vpop.f32.mrf.mxu1 }
 0x29b   : > { %v3799_v49 = vadd.f32 %v3798_v5, %v1891_v40 }
 0x29d   : > { %v3812_v9 = vadd.f32 %v3811_v60, %v3799_v49 }
 0x2a2   : > { %v3800_v52 = vpop.f32.mrf.mxu0  ;;  %v3813_v12 = vpop.f32.mrf.mxu1 }
 0x2a3   : > { %v3824_v0 = vpop.f32.mrf.mxu2  ;;  %v3837_v2 = vpop.f32.mrf.mxu3 }
 0x2a4   : > { %v3825_v19 = vadd.f32 %v3824_v0, %v3812_v9 }
 0x2a6   : > { %v3838_v56 = vadd.f32 %v3837_v2, %v3825_v19 }
 0x2ab   : > { %v3826_v42 = vpop.f32.mrf.mxu2  ;;  %v3839_v32 = vpop.f32.mrf.mxu3 }
 0x2ba   : > { %v3850_v62 = vpop.f32.mrf.mxu0  ;;  %v3863_v29 = vpop.f32.mrf.mxu1 }
 0x2bb   : > { %v3851_v39 = vadd.f32 %v3850_v62, %v3838_v56 }
 0x2bd   : > { %v3864_v11 = vadd.f32 %v3863_v29, %v3851_v39 }
 0x2c2   : > { %v3852_v63 = vpop.f32.mrf.mxu0  ;;  %v3865_v18 = vpop.f32.mrf.mxu1 }
 0x2c3   : > { %v3876_v41 = vpop.f32.mrf.mxu2  ;;  %v3889_v51 = vpop.f32.mrf.mxu3 }
 0x2c4   : > { %v3877_v58 = vadd.f32 %v3876_v41, %v3864_v11 }
 0x2c6   : > { %v3890_v3 = vadd.f32 %v3889_v51, %v3877_v58 }
 0x2cb   : > { %v3878_v59 = vpop.f32.mrf.mxu2  ;;  %v3891_v53 = vpop.f32.mrf.mxu3 }
 0x2da   : > { %v3902_v44 = vpop.f32.mrf.mxu0  ;;  %v3915_v25 = vpop.f32.mrf.mxu1 }
 0x2db   : > { %v3903_v15 = vadd.f32 %v3902_v44, %v3890_v3 }
 0x2dd   : > { %v3916_v26 = vadd.f32 %v3915_v25, %v3903_v15 }
 0x2e2   : > { %v3904_v47 = vpop.f32.mrf.mxu0  ;;  %v3917_v36 = vpop.f32.mrf.mxu1 }
 0x2e3   : > { %v3928_v23 = vpop.f32.mrf.mxu2  ;;  %v3941_v46 = vpop.f32.mrf.mxu3 }
 0x2e4   : > { %v3929_v43 = vadd.f32 %v3928_v23, %v3916_v26 }
 0x2e6   : > { %v3942_v50 = vadd.f32 %v3941_v46, %v3929_v43 }
 0x2eb   : > { %v3930_v24 = vpop.f32.mrf.mxu2  ;;  %v3943_v22 = vpop.f32.mrf.mxu3 }
 0x2fa   : > { %v3954_v17 = vpop.f32.mrf.mxu0  ;;  %v3967_v48 = vpop.f32.mrf.mxu1 }
 0x2fb   : > { %v3955_v8 = vadd.f32 %v3954_v17, %v3942_v50 }
 0x2fd   : > { %v3968_v13 = vadd.f32 %v3967_v48, %v3955_v8 }
 0x301   : > { %v3980_v31 = vpop.f32.mrf.mxu2  ;;  %v3993_v20 = vpop.f32.mrf.mxu3 }
 0x302   : > { %v3981_v1 = vadd.f32 %v3980_v31, %v3968_v13  ;;  %v3956_v14 = vpop.f32.mrf.mxu0  ;;  %v3969_v45 = vpop.f32.mrf.mxu1 }
 0x304   : > { %v3994_v33 = vadd.f32 %v3993_v20, %v3981_v1 }
 0x306   : > { %v3998_v16 = vmax.f32 %v3994_v33, 0.0 }
 0x308   : > { %4000 = vst [vmem:[%s7239_s23 + $0x8] sm:$0xff] %v3998_v16 }
 0x309   : > { %v3982_v35 = vpop.f32.mrf.mxu2 }
 0x30a   : > { %5597 = shalt.err (!%p5594_p10)
}
 0x30b   : > { %5419 = dma.vmem_to_hbm [thread:$0]  (%p5734_p3), %s4016_s4, 256, %s4018_s5, %s4002_s16   ;;  %v3995_v27 = vpop.f32.mrf.mxu3 }
 0x30c PF: > { %s4029_s22 = sand.u32 1, %s5628_s12   ;;  %p7449_p12 = scmp.ge.s32.totalorder %s5640_s15, 2 }
 0x30d   : > { %s4030_s25 = scalar_lea.sflag [#allocation4], %s4029_s22 }
 0x30e   : > { %p5433_p13 = pnand %p7449_p12, %p5703_p6 }
 0x310   : > { %p5434_p0 = pneg %p5433_p13 }
 0x312   : > { %5623 = dma.done.wait (%p5434_p0), %s4030_s25, 256  }
 0x313   : > { %5625 = vsyncadd (%p5434_p0), %s4030_s25, 4294967040  ;;  %p17_p5 = scmp.ge.s32.totalorder %s5724_s6, 4   ;;  %s7450_s12 = smov %s5632_s13 }
 0x314   : > { %s7451_s13 = smov %s5636_s14  ;;  %s7452_s14 = smov %s5740_s10 }
 0x315   : > { %s7453_s15 = smov %s5724_s6  ;;  %19 = sbr.rel (!%p17_p5) target bundleno = 6 (0x6), region = 85 }
 0x31a   :  { %4036 = vsyncpa [#allocation3], 1 }
 0x31b   :  { %4038 = vsyncpa [#allocation3 + $0x1], 1 }
 0x31c   :  { %4039 = vsyncpa [#allocation6], 1 }
 0x31d   :  { %4040 = vsyncpa [#allocation4], 1 }
 0x31e   :  { %4042 = vsyncpa [#allocation4 + $0x1], 1 }

</bundles_post_ra>
